<compile_context>
chip_gen: v6e
topology: v6e:2x2x1
jax: 0.10.0
libtpu: 0.0.40
codegen_flags: <defaults>
</compile_context>

<pallas_src>
import jax
import jax.numpy as jnp
from jax.experimental import pallas as pl
from jax.experimental.pallas import tpu as pltpu

# MXU operand dtype: bf16 roughly triples effective MXU throughput and halves DMA bytes;
# accumulation stays f32.  Set to jnp.float32 for bit-faithful f32 semantics.
_MXU_DTYPE = jnp.bfloat16

# Below this many output elements, XLA's native conv beats a short Pallas grid.
_PALLAS_MIN_OUT_ELEMS = 1 << 18

# Conservative per-call VMEM budget: fits the default scoped-VMEM limit on
# v5e (16 MiB) / v6e (32 MiB) / v7x (32 MiB scoped, 64 MiB physical).
_VMEM_BUDGET_BYTES = 12 * 1024 * 1024


def _round_up(x, m):
    return (x + m - 1) // m * m


# ----------------------------------------------------------------------------
# Fused conv kernel: one (sample, H-tile) per grid step
# ----------------------------------------------------------------------------
def _make_fused_conv_kernel(KH, KW, tile_h, W, C):
    """
    x_ref   : (1, Hp, Wp, C)       MXU-dtype zero-padded NHWC sample (whole sample;
                                   DMA'd once per sample, reused across its H-tiles)
    w_ref   : (KH, KW, C, Coutp)   MXU-dtype weights, taps-major, Cout padded to 128
    o_ref   : (1, tile_h*W, Coutp) f32 output tile (spatial rows flattened -> lane-dense)
    acc_ref : (tile_h*W, Coutp)    f32 VMEM accumulator
    """

    def kernel(x_ref, w_ref, o_ref, acc_ref):
        row0 = pl.program_id(1) * tile_h          # top output row of this H-tile
        acc_ref[...] = jnp.zeros_like(acc_ref)
        for dy in range(KH):                      # static unroll over the KH*KW taps
            for dx in range(KW):
                patch = x_ref[0, pl.ds(row0 + dy, tile_h), pl.ds(dx, W), :]
                acc_ref[...] += jnp.dot(
                    patch.reshape(tile_h * W, C),
                    w_ref[dy, dx],
                    preferred_element_type=jnp.float32,
                )
        o_ref[0] = acc_ref[...].astype(o_ref.dtype)

    return kernel


def _pick_tile_h(H, W, C, Coutp, Hp, Wp, KH, KW):
    """Largest divisor of H whose blocks fit the per-generation VMEM budget."""
    bpe = jnp.dtype(_MXU_DTYPE).itemsize
    # resident across the grid: double-buffered padded sample + double-buffered weights
    fixed = 2 * Hp * Wp * C * bpe + 2 * KH * KW * C * Coutp * bpe
    for th in sorted((d for d in range(1, H + 1) if H % d == 0), reverse=True):
        if (th * W) % 8 != 0 and th != H:
            continue  # keep the flattened output/acc blocks sublane-aligned
        per_tile = 3 * th * W * Coutp * 4  # f32 acc + double-buffered f32 out tile
        if fixed + per_tile <= _VMEM_BUDGET_BYTES:
            return th
    # TODO(synk): very large samples need a halo-tiled H BlockSpec / manual DMA path.
    return 1


# ----------------------------------------------------------------------------
# Pallas forward path
# ----------------------------------------------------------------------------
@jax.jit
def _conv_forward_pallas(x_nchw, weight):
    N, C, H, W = x_nchw.shape
    Cout, _, KH, KW = weight.shape
    ph, pw = KH // 2, KW // 2
    Hp, Wp = H + 2 * ph, W + 2 * pw
    Coutp = _round_up(Cout, 128)     # lane-dense MXU columns & unmasked output stores

    # layout glue (small, done once in XLA): NCHW -> padded NHWC, OIHW -> (KH,KW,C,Coutp)
    x = jnp.transpose(x_nchw, (0, 2, 3, 1)).astype(_MXU_DTYPE)
    xp = jnp.pad(x, ((0, 0), (ph, ph), (pw, pw), (0, 0)))
    w = jnp.transpose(weight, (2, 3, 1, 0)).astype(_MXU_DTYPE)
    w = jnp.pad(w, ((0, 0), (0, 0), (0, 0), (0, Coutp - Cout)))

    tile_h = _pick_tile_h(H, W, C, Coutp, Hp, Wp, KH, KW)
    n_h = H // tile_h

    out = pl.pallas_call(
        _make_fused_conv_kernel(KH, KW, tile_h, W, C),
        out_shape=jax.ShapeDtypeStruct((N, H * W, Coutp), jnp.float32),
        grid_spec=pltpu.PrefetchScalarGridSpec(
            num_scalar_prefetch=0,
            grid=(N, n_h),
            in_specs=[
                # whole padded sample; block index depends only on n, so it is
                # fetched once per sample and reused across its H-tiles (no re-DMA).
                pl.BlockSpec((1, Hp, Wp, C), lambda n, h: (n, 0, 0, 0)),
                # weights fully resident for the whole grid.
                pl.BlockSpec((KH, KW, C, Coutp), lambda n, h: (0, 0, 0, 0)),
            ],
            out_specs=pl.BlockSpec((1, tile_h * W, Coutp), lambda n, h: (n, h, 0)),
            scratch_shapes=[pltpu.VMEM((tile_h * W, Coutp), jnp.float32)],
        ),
        compiler_params=pltpu.CompilerParams(
            dimension_semantics=("parallel", "parallel"),
        ),
    )(xp, w)

    out = out[:, :, :Cout].reshape(N, H, W, Cout)   # drop the Cout lane padding
    return jnp.transpose(out, (0, 3, 1, 2))         # back to NCHW


@jax.jit
def _conv_forward_xla(x_nchw, weight):
    KH, KW = weight.shape[2], weight.shape[3]
    return jax.lax.conv_general_dilated(
        x_nchw, weight,
        window_strides=(1, 1),
        padding=((KH // 2, KH // 2), (KW // 2, KW // 2)),
        dimension_numbers=("NCHW", "OIHW", "NCHW"),
    )


# ----------------------------------------------------------------------------
# ConvLayer.forward drop-in wrapper
# ----------------------------------------------------------------------------
def conv_layer_forward(x_nchw, weight, *, force_pallas=False):
    """
    x_nchw : (N, Cin+1, H, W) with the constant-1 channel at index 0
    weight : (Cout, Cin+1, KH, KW) bias-free conv weight
    returns: (N, Cout, H, W) -- stride 1, 'same' (k//2) zero padding,
             bn = Identity, scale = None, act = Identity (module defaults)
    """
    N, C, H, W = x_nchw.shape
    Cout, Cw, KH, KW = weight.shape
    assert C == Cw, "channel mismatch between input and weight"
    assert KH % 2 == 1 and KW % 2 == 1, \
        "padding=k//2 'same' conv equivalence assumed -> kernel size must be odd"
    # TODO(synk): stride != 1, BatchNorm2d, per-channel scale and non-identity act
    # variants of ConvLayer are not implemented (all are identity under the defaults).

    # Drop the constant-1 channel iff its weights are all zero (true after
    # ConvLayer.__init__; may be nonzero when a bias was folded in via
    # conv_to_const_conv, in which case we keep it).  Host-side, trace-free check.
    try:
        drop_const = bool(jnp.all(weight[:, 0] == 0))
    except jax.errors.ConcretizationTypeError:
        drop_const = False
    if drop_const and C > 1:
        x_nchw = x_nchw[:, 1:]
        weight = weight[:, 1:]

    if not force_pallas and N * H * W * Cout < _PALLAS_MIN_OUT_ELEMS:
        # Tiny layer: a 2-4 step Pallas grid cannot amortize per-step overhead.
        return _conv_forward_xla(x_nchw, weight)
    return _conv_forward_pallas(x_nchw, weight)


# ----------------------------------------------------------------------------
# Deterministic parameter init (mirrors ConvLayer.__init__ shapes)
# ----------------------------------------------------------------------------
def init_conv_layer_params(key, in_channel, out_channel, kernel_size):
    # self.conv = Conv2d(in_channel + 1, out_channel, k, bias=False, padding=k//2)
    w = jax.random.normal(
        key, (out_channel, in_channel + 1, kernel_size, kernel_size), jnp.float32
    ) * 0.1
    return w.at[:, 0].set(0.0)   # ConvLayer.__init__: weight[:, 0] = 0


if __name__ == "__main__":
    key = jax.random.PRNGKey(0)
    k_w, k_x = jax.random.split(key)

    batch, in_channel, out_channel, ksize, H, W = 2, 4, 8, 3, 16, 16
    weight = init_conv_layer_params(k_w, in_channel, out_channel, ksize)

    # input: constant-1 channel prepended at index 0 (module contract) + real channels
    x_data = jax.random.normal(k_x, (batch, in_channel, H, W), jnp.float32)
    ones = jnp.ones((batch, 1, H, W), jnp.float32)
    x = jnp.concatenate([ones, x_data], axis=1)          # (N, Cin+1, H, W)

    # force the Pallas path so the fused kernel is exercised even at this toy size
    out = conv_layer_forward(x, weight, force_pallas=True)
    out = jax.block_until_ready(out)
    assert out.shape == (batch, out_channel, H, W)

    pad = ((ksize // 2, ksize // 2), (ksize // 2, ksize // 2))
    dn = ("NCHW", "OIHW", "NCHW")

    # reference 1: same operands rounded to the MXU dtype -> tight tolerance
    ref_rounded = jax.lax.conv_general_dilated(
        x.astype(_MXU_DTYPE).astype(jnp.float32),
        weight.astype(_MXU_DTYPE).astype(jnp.float32),
        window_strides=(1, 1), padding=pad, dimension_numbers=dn)
    assert jnp.allclose(out, ref_rounded, atol=1e-3, rtol=1e-3), \
        "mismatch vs bf16-rounded reference conv"

    # reference 2: full f32 conv (module semantics) -> bf16 quantization tolerance
    ref_f32 = jax.lax.conv_general_dilated(
        x, weight, window_strides=(1, 1), padding=pad, dimension_numbers=dn)
    assert jnp.allclose(out, ref_f32, atol=5e-2, rtol=5e-2), \
        "mismatch vs f32 reference conv"

    print("KERNEL_OK")
</pallas_src>

<mosaic_0001>
module attributes {stable_mosaic.version = 11 : i64} {
  func.func @kernel(%arg0: i32, %arg1: i32, %arg2: memref<1x18x18x4xbf16, #tpu.memory_space<vmem>>, %arg3: memref<3x3x4x128xbf16, #tpu.memory_space<vmem>>, %arg4: memref<1x256x128xf32, #tpu.memory_space<vmem>>, %arg5: memref<256x128xf32, #tpu.memory_space<vmem>>) attributes {dimension_semantics = [#tpu.dimension_semantics<parallel>, #tpu.dimension_semantics<parallel>], iteration_bounds = array<i64: 2, 1>, scalar_prefetch = 0 : i64, scratch_operands = 1 : i64, tpu.core_type = #tpu.core_type<tc>, window_params = [{transform_indices = @transform_0, window_bounds = array<i64: 1, 18, 18, 4>}, {pipeline_mode = #tpu.pipeline_mode<synchronous>, transform_indices = @transform_1, window_bounds = array<i64: 3, 3, 4, 128>}, {transform_indices = @transform_2, window_bounds = array<i64: 1, 256, 128>}]} {
    %c16_i32 = arith.constant 16 : i32
    %0 = arith.muli %arg1, %c16_i32 : i32
    %cst = arith.constant 0.000000e+00 : f32
    %1 = vector.broadcast %cst : f32 to vector<256x128xf32>
    %c0 = arith.constant 0 : index
    %c0_0 = arith.constant 0 : index
    %2 = vector.load %arg5[%c0, %c0_0] : memref<256x128xf32, #tpu.memory_space<vmem>>, vector<256x128xf32>
    tpu.vector_store %arg5[%c0, %c0_0], %1 {strides = array<i32>} : memref<256x128xf32, #tpu.memory_space<vmem>>, vector<256x128xf32>,
    %c0_i32 = arith.constant 0 : i32
    %3 = arith.addi %0, %c0_i32 : i32
    %c0_1 = arith.constant 0 : index
    %4 = arith.index_cast %3 : i32 to index
    %c0_2 = arith.constant 0 : index
    %c0_3 = arith.constant 0 : index
    %5 = vector.load %arg2[%c0_1, %4, %c0_2, %c0_3] : memref<1x18x18x4xbf16, #tpu.memory_space<vmem>>, vector<1x16x16x4xbf16>
    %6 = vector.shape_cast %5 : vector<1x16x16x4xbf16> to vector<16x16x4xbf16>
    %c0_4 = arith.constant 0 : index
    %c0_5 = arith.constant 0 : index
    %7 = vector.load %arg5[%c0_4, %c0_5] : memref<256x128xf32, #tpu.memory_space<vmem>>, vector<256x128xf32>
    %8 = vector.shape_cast %6 : vector<16x16x4xbf16> to vector<256x4xbf16>
    %c0_6 = arith.constant 0 : index
    %c0_7 = arith.constant 0 : index
    %c0_8 = arith.constant 0 : index
    %c0_9 = arith.constant 0 : index
    %9 = vector.load %arg3[%c0_6, %c0_7, %c0_8, %c0_9] : memref<3x3x4x128xbf16, #tpu.memory_space<vmem>>, vector<1x1x4x128xbf16>
    %10 = vector.shape_cast %9 : vector<1x1x4x128xbf16> to vector<4x128xbf16>
    %cst_10 = arith.constant dense<0.000000e+00> : vector<256x128xf32>
    %11 = tpu.matmul %8, %10, %cst_10 {dimension_numbers = #tpu.dot_dimension_numbers<[1], [0], [0], [1], [0, 0, 1, 1], [], []>} : vector<256x4xbf16>, vector<4x128xbf16>, vector<256x128xf32> -> vector<256x128xf32>
    %12 = arith.addf %7, %11 : vector<256x128xf32>
    %c0_11 = arith.constant 0 : index
    %c0_12 = arith.constant 0 : index
    %13 = vector.load %arg5[%c0_11, %c0_12] : memref<256x128xf32, #tpu.memory_space<vmem>>, vector<256x128xf32>
    tpu.vector_store %arg5[%c0_11, %c0_12], %12 {strides = array<i32>} : memref<256x128xf32, #tpu.memory_space<vmem>>, vector<256x128xf32>,
    %c0_i32_13 = arith.constant 0 : i32
    %14 = arith.addi %0, %c0_i32_13 : i32
    %c0_14 = arith.constant 0 : index
    %15 = arith.index_cast %14 : i32 to index
    %c1 = arith.constant 1 : index
    %c0_15 = arith.constant 0 : index
    %16 = vector.load %arg2[%c0_14, %15, %c1, %c0_15] : memref<1x18x18x4xbf16, #tpu.memory_space<vmem>>, vector<1x16x16x4xbf16>
    %17 = vector.shape_cast %16 : vector<1x16x16x4xbf16> to vector<16x16x4xbf16>
    %c0_16 = arith.constant 0 : index
    %c0_17 = arith.constant 0 : index
    %18 = vector.load %arg5[%c0_16, %c0_17] : memref<256x128xf32, #tpu.memory_space<vmem>>, vector<256x128xf32>
    %19 = vector.shape_cast %17 : vector<16x16x4xbf16> to vector<256x4xbf16>
    %c0_18 = arith.constant 0 : index
    %c1_19 = arith.constant 1 : index
    %c0_20 = arith.constant 0 : index
    %c0_21 = arith.constant 0 : index
    %20 = vector.load %arg3[%c0_18, %c1_19, %c0_20, %c0_21] : memref<3x3x4x128xbf16, #tpu.memory_space<vmem>>, vector<1x1x4x128xbf16>
    %21 = vector.shape_cast %20 : vector<1x1x4x128xbf16> to vector<4x128xbf16>
    %cst_22 = arith.constant dense<0.000000e+00> : vector<256x128xf32>
    %22 = tpu.matmul %19, %21, %cst_22 {dimension_numbers = #tpu.dot_dimension_numbers<[1], [0], [0], [1], [0, 0, 1, 1], [], []>} : vector<256x4xbf16>, vector<4x128xbf16>, vector<256x128xf32> -> vector<256x128xf32>
    %23 = arith.addf %18, %22 : vector<256x128xf32>
    %c0_23 = arith.constant 0 : index
    %c0_24 = arith.constant 0 : index
    %24 = vector.load %arg5[%c0_23, %c0_24] : memref<256x128xf32, #tpu.memory_space<vmem>>, vector<256x128xf32>
    tpu.vector_store %arg5[%c0_23, %c0_24], %23 {strides = array<i32>} : memref<256x128xf32, #tpu.memory_space<vmem>>, vector<256x128xf32>,
    %c0_i32_25 = arith.constant 0 : i32
    %25 = arith.addi %0, %c0_i32_25 : i32
    %c0_26 = arith.constant 0 : index
    %26 = arith.index_cast %25 : i32 to index
    %c2 = arith.constant 2 : index
    %c0_27 = arith.constant 0 : index
    %27 = vector.load %arg2[%c0_26, %26, %c2, %c0_27] : memref<1x18x18x4xbf16, #tpu.memory_space<vmem>>, vector<1x16x16x4xbf16>
    %28 = vector.shape_cast %27 : vector<1x16x16x4xbf16> to vector<16x16x4xbf16>
    %c0_28 = arith.constant 0 : index
    %c0_29 = arith.constant 0 : index
    %29 = vector.load %arg5[%c0_28, %c0_29] : memref<256x128xf32, #tpu.memory_space<vmem>>, vector<256x128xf32>
    %30 = vector.shape_cast %28 : vector<16x16x4xbf16> to vector<256x4xbf16>
    %c0_30 = arith.constant 0 : index
    %c2_31 = arith.constant 2 : index
    %c0_32 = arith.constant 0 : index
    %c0_33 = arith.constant 0 : index
    %31 = vector.load %arg3[%c0_30, %c2_31, %c0_32, %c0_33] : memref<3x3x4x128xbf16, #tpu.memory_space<vmem>>, vector<1x1x4x128xbf16>
    %32 = vector.shape_cast %31 : vector<1x1x4x128xbf16> to vector<4x128xbf16>
    %cst_34 = arith.constant dense<0.000000e+00> : vector<256x128xf32>
    %33 = tpu.matmul %30, %32, %cst_34 {dimension_numbers = #tpu.dot_dimension_numbers<[1], [0], [0], [1], [0, 0, 1, 1], [], []>} : vector<256x4xbf16>, vector<4x128xbf16>, vector<256x128xf32> -> vector<256x128xf32>
    %34 = arith.addf %29, %33 : vector<256x128xf32>
    %c0_35 = arith.constant 0 : index
    %c0_36 = arith.constant 0 : index
    %35 = vector.load %arg5[%c0_35, %c0_36] : memref<256x128xf32, #tpu.memory_space<vmem>>, vector<256x128xf32>
    tpu.vector_store %arg5[%c0_35, %c0_36], %34 {strides = array<i32>} : memref<256x128xf32, #tpu.memory_space<vmem>>, vector<256x128xf32>,
    %c1_i32 = arith.constant 1 : i32
    %36 = arith.addi %0, %c1_i32 : i32
    %c0_37 = arith.constant 0 : index
    %37 = arith.index_cast %36 : i32 to index
    %c0_38 = arith.constant 0 : index
    %c0_39 = arith.constant 0 : index
    %38 = vector.load %arg2[%c0_37, %37, %c0_38, %c0_39] : memref<1x18x18x4xbf16, #tpu.memory_space<vmem>>, vector<1x16x16x4xbf16>
    %39 = vector.shape_cast %38 : vector<1x16x16x4xbf16> to vector<16x16x4xbf16>
    %c0_40 = arith.constant 0 : index
    %c0_41 = arith.constant 0 : index
    %40 = vector.load %arg5[%c0_40, %c0_41] : memref<256x128xf32, #tpu.memory_space<vmem>>, vector<256x128xf32>
    %41 = vector.shape_cast %39 : vector<16x16x4xbf16> to vector<256x4xbf16>
    %c1_42 = arith.constant 1 : index
    %c0_43 = arith.constant 0 : index
    %c0_44 = arith.constant 0 : index
    %c0_45 = arith.constant 0 : index
    %42 = vector.load %arg3[%c1_42, %c0_43, %c0_44, %c0_45] : memref<3x3x4x128xbf16, #tpu.memory_space<vmem>>, vector<1x1x4x128xbf16>
    %43 = vector.shape_cast %42 : vector<1x1x4x128xbf16> to vector<4x128xbf16>
    %cst_46 = arith.constant dense<0.000000e+00> : vector<256x128xf32>
    %44 = tpu.matmul %41, %43, %cst_46 {dimension_numbers = #tpu.dot_dimension_numbers<[1], [0], [0], [1], [0, 0, 1, 1], [], []>} : vector<256x4xbf16>, vector<4x128xbf16>, vector<256x128xf32> -> vector<256x128xf32>
    %45 = arith.addf %40, %44 : vector<256x128xf32>
    %c0_47 = arith.constant 0 : index
    %c0_48 = arith.constant 0 : index
    %46 = vector.load %arg5[%c0_47, %c0_48] : memref<256x128xf32, #tpu.memory_space<vmem>>, vector<256x128xf32>
    tpu.vector_store %arg5[%c0_47, %c0_48], %45 {strides = array<i32>} : memref<256x128xf32, #tpu.memory_space<vmem>>, vector<256x128xf32>,
    %c1_i32_49 = arith.constant 1 : i32
    %47 = arith.addi %0, %c1_i32_49 : i32
    %c0_50 = arith.constant 0 : index
    %48 = arith.index_cast %47 : i32 to index
    %c1_51 = arith.constant 1 : index
    %c0_52 = arith.constant 0 : index
    %49 = vector.load %arg2[%c0_50, %48, %c1_51, %c0_52] : memref<1x18x18x4xbf16, #tpu.memory_space<vmem>>, vector<1x16x16x4xbf16>
    %50 = vector.shape_cast %49 : vector<1x16x16x4xbf16> to vector<16x16x4xbf16>
    %c0_53 = arith.constant 0 : index
    %c0_54 = arith.constant 0 : index
    %51 = vector.load %arg5[%c0_53, %c0_54] : memref<256x128xf32, #tpu.memory_space<vmem>>, vector<256x128xf32>
    %52 = vector.shape_cast %50 : vector<16x16x4xbf16> to vector<256x4xbf16>
    %c1_55 = arith.constant 1 : index
    %c1_56 = arith.constant 1 : index
    %c0_57 = arith.constant 0 : index
    %c0_58 = arith.constant 0 : index
    %53 = vector.load %arg3[%c1_55, %c1_56, %c0_57, %c0_58] : memref<3x3x4x128xbf16, #tpu.memory_space<vmem>>, vector<1x1x4x128xbf16>
    %54 = vector.shape_cast %53 : vector<1x1x4x128xbf16> to vector<4x128xbf16>
    %cst_59 = arith.constant dense<0.000000e+00> : vector<256x128xf32>
    %55 = tpu.matmul %52, %54, %cst_59 {dimension_numbers = #tpu.dot_dimension_numbers<[1], [0], [0], [1], [0, 0, 1, 1], [], []>} : vector<256x4xbf16>, vector<4x128xbf16>, vector<256x128xf32> -> vector<256x128xf32>
    %56 = arith.addf %51, %55 : vector<256x128xf32>
    %c0_60 = arith.constant 0 : index
    %c0_61 = arith.constant 0 : index
    %57 = vector.load %arg5[%c0_60, %c0_61] : memref<256x128xf32, #tpu.memory_space<vmem>>, vector<256x128xf32>
    tpu.vector_store %arg5[%c0_60, %c0_61], %56 {strides = array<i32>} : memref<256x128xf32, #tpu.memory_space<vmem>>, vector<256x128xf32>,
    %c1_i32_62 = arith.constant 1 : i32
    %58 = arith.addi %0, %c1_i32_62 : i32
    %c0_63 = arith.constant 0 : index
    %59 = arith.index_cast %58 : i32 to index
    %c2_64 = arith.constant 2 : index
    %c0_65 = arith.constant 0 : index
    %60 = vector.load %arg2[%c0_63, %59, %c2_64, %c0_65] : memref<1x18x18x4xbf16, #tpu.memory_space<vmem>>, vector<1x16x16x4xbf16>
    %61 = vector.shape_cast %60 : vector<1x16x16x4xbf16> to vector<16x16x4xbf16>
    %c0_66 = arith.constant 0 : index
    %c0_67 = arith.constant 0 : index
    %62 = vector.load %arg5[%c0_66, %c0_67] : memref<256x128xf32, #tpu.memory_space<vmem>>, vector<256x128xf32>
    %63 = vector.shape_cast %61 : vector<16x16x4xbf16> to vector<256x4xbf16>
    %c1_68 = arith.constant 1 : index
    %c2_69 = arith.constant 2 : index
    %c0_70 = arith.constant 0 : index
    %c0_71 = arith.constant 0 : index
    %64 = vector.load %arg3[%c1_68, %c2_69, %c0_70, %c0_71] : memref<3x3x4x128xbf16, #tpu.memory_space<vmem>>, vector<1x1x4x128xbf16>
    %65 = vector.shape_cast %64 : vector<1x1x4x128xbf16> to vector<4x128xbf16>
    %cst_72 = arith.constant dense<0.000000e+00> : vector<256x128xf32>
    %66 = tpu.matmul %63, %65, %cst_72 {dimension_numbers = #tpu.dot_dimension_numbers<[1], [0], [0], [1], [0, 0, 1, 1], [], []>} : vector<256x4xbf16>, vector<4x128xbf16>, vector<256x128xf32> -> vector<256x128xf32>
    %67 = arith.addf %62, %66 : vector<256x128xf32>
    %c0_73 = arith.constant 0 : index
    %c0_74 = arith.constant 0 : index
    %68 = vector.load %arg5[%c0_73, %c0_74] : memref<256x128xf32, #tpu.memory_space<vmem>>, vector<256x128xf32>
    tpu.vector_store %arg5[%c0_73, %c0_74], %67 {strides = array<i32>} : memref<256x128xf32, #tpu.memory_space<vmem>>, vector<256x128xf32>,
    %c2_i32 = arith.constant 2 : i32
    %69 = arith.addi %0, %c2_i32 : i32
    %c0_75 = arith.constant 0 : index
    %70 = arith.index_cast %69 : i32 to index
    %c0_76 = arith.constant 0 : index
    %c0_77 = arith.constant 0 : index
    %71 = vector.load %arg2[%c0_75, %70, %c0_76, %c0_77] : memref<1x18x18x4xbf16, #tpu.memory_space<vmem>>, vector<1x16x16x4xbf16>
    %72 = vector.shape_cast %71 : vector<1x16x16x4xbf16> to vector<16x16x4xbf16>
    %c0_78 = arith.constant 0 : index
    %c0_79 = arith.constant 0 : index
    %73 = vector.load %arg5[%c0_78, %c0_79] : memref<256x128xf32, #tpu.memory_space<vmem>>, vector<256x128xf32>
    %74 = vector.shape_cast %72 : vector<16x16x4xbf16> to vector<256x4xbf16>
    %c2_80 = arith.constant 2 : index
    %c0_81 = arith.constant 0 : index
    %c0_82 = arith.constant 0 : index
    %c0_83 = arith.constant 0 : index
    %75 = vector.load %arg3[%c2_80, %c0_81, %c0_82, %c0_83] : memref<3x3x4x128xbf16, #tpu.memory_space<vmem>>, vector<1x1x4x128xbf16>
    %76 = vector.shape_cast %75 : vector<1x1x4x128xbf16> to vector<4x128xbf16>
    %cst_84 = arith.constant dense<0.000000e+00> : vector<256x128xf32>
    %77 = tpu.matmul %74, %76, %cst_84 {dimension_numbers = #tpu.dot_dimension_numbers<[1], [0], [0], [1], [0, 0, 1, 1], [], []>} : vector<256x4xbf16>, vector<4x128xbf16>, vector<256x128xf32> -> vector<256x128xf32>
    %78 = arith.addf %73, %77 : vector<256x128xf32>
    %c0_85 = arith.constant 0 : index
    %c0_86 = arith.constant 0 : index
    %79 = vector.load %arg5[%c0_85, %c0_86] : memref<256x128xf32, #tpu.memory_space<vmem>>, vector<256x128xf32>
    tpu.vector_store %arg5[%c0_85, %c0_86], %78 {strides = array<i32>} : memref<256x128xf32, #tpu.memory_space<vmem>>, vector<256x128xf32>,
    %c2_i32_87 = arith.constant 2 : i32
    %80 = arith.addi %0, %c2_i32_87 : i32
    %c0_88 = arith.constant 0 : index
    %81 = arith.index_cast %80 : i32 to index
    %c1_89 = arith.constant 1 : index
    %c0_90 = arith.constant 0 : index
    %82 = vector.load %arg2[%c0_88, %81, %c1_89, %c0_90] : memref<1x18x18x4xbf16, #tpu.memory_space<vmem>>, vector<1x16x16x4xbf16>
    %83 = vector.shape_cast %82 : vector<1x16x16x4xbf16> to vector<16x16x4xbf16>
    %c0_91 = arith.constant 0 : index
    %c0_92 = arith.constant 0 : index
    %84 = vector.load %arg5[%c0_91, %c0_92] : memref<256x128xf32, #tpu.memory_space<vmem>>, vector<256x128xf32>
    %85 = vector.shape_cast %83 : vector<16x16x4xbf16> to vector<256x4xbf16>
    %c2_93 = arith.constant 2 : index
    %c1_94 = arith.constant 1 : index
    %c0_95 = arith.constant 0 : index
    %c0_96 = arith.constant 0 : index
    %86 = vector.load %arg3[%c2_93, %c1_94, %c0_95, %c0_96] : memref<3x3x4x128xbf16, #tpu.memory_space<vmem>>, vector<1x1x4x128xbf16>
    %87 = vector.shape_cast %86 : vector<1x1x4x128xbf16> to vector<4x128xbf16>
    %cst_97 = arith.constant dense<0.000000e+00> : vector<256x128xf32>
    %88 = tpu.matmul %85, %87, %cst_97 {dimension_numbers = #tpu.dot_dimension_numbers<[1], [0], [0], [1], [0, 0, 1, 1], [], []>} : vector<256x4xbf16>, vector<4x128xbf16>, vector<256x128xf32> -> vector<256x128xf32>
    %89 = arith.addf %84, %88 : vector<256x128xf32>
    %c0_98 = arith.constant 0 : index
    %c0_99 = arith.constant 0 : index
    %90 = vector.load %arg5[%c0_98, %c0_99] : memref<256x128xf32, #tpu.memory_space<vmem>>, vector<256x128xf32>
    tpu.vector_store %arg5[%c0_98, %c0_99], %89 {strides = array<i32>} : memref<256x128xf32, #tpu.memory_space<vmem>>, vector<256x128xf32>,
    %c2_i32_100 = arith.constant 2 : i32
    %91 = arith.addi %0, %c2_i32_100 : i32
    %c0_101 = arith.constant 0 : index
    %92 = arith.index_cast %91 : i32 to index
    %c2_102 = arith.constant 2 : index
    %c0_103 = arith.constant 0 : index
    %93 = vector.load %arg2[%c0_101, %92, %c2_102, %c0_103] : memref<1x18x18x4xbf16, #tpu.memory_space<vmem>>, vector<1x16x16x4xbf16>
    %94 = vector.shape_cast %93 : vector<1x16x16x4xbf16> to vector<16x16x4xbf16>
    %c0_104 = arith.constant 0 : index
    %c0_105 = arith.constant 0 : index
    %95 = vector.load %arg5[%c0_104, %c0_105] : memref<256x128xf32, #tpu.memory_space<vmem>>, vector<256x128xf32>
    %96 = vector.shape_cast %94 : vector<16x16x4xbf16> to vector<256x4xbf16>
    %c2_106 = arith.constant 2 : index
    %c2_107 = arith.constant 2 : index
    %c0_108 = arith.constant 0 : index
    %c0_109 = arith.constant 0 : index
    %97 = vector.load %arg3[%c2_106, %c2_107, %c0_108, %c0_109] : memref<3x3x4x128xbf16, #tpu.memory_space<vmem>>, vector<1x1x4x128xbf16>
    %98 = vector.shape_cast %97 : vector<1x1x4x128xbf16> to vector<4x128xbf16>
    %cst_110 = arith.constant dense<0.000000e+00> : vector<256x128xf32>
    %99 = tpu.matmul %96, %98, %cst_110 {dimension_numbers = #tpu.dot_dimension_numbers<[1], [0], [0], [1], [0, 0, 1, 1], [], []>} : vector<256x4xbf16>, vector<4x128xbf16>, vector<256x128xf32> -> vector<256x128xf32>
    %100 = arith.addf %95, %99 : vector<256x128xf32>
    %c0_111 = arith.constant 0 : index
    %c0_112 = arith.constant 0 : index
    %101 = vector.load %arg5[%c0_111, %c0_112] : memref<256x128xf32, #tpu.memory_space<vmem>>, vector<256x128xf32>
    tpu.vector_store %arg5[%c0_111, %c0_112], %100 {strides = array<i32>} : memref<256x128xf32, #tpu.memory_space<vmem>>, vector<256x128xf32>,
    %c0_113 = arith.constant 0 : index
    %c0_114 = arith.constant 0 : index
    %102 = vector.load %arg5[%c0_113, %c0_114] : memref<256x128xf32, #tpu.memory_space<vmem>>, vector<256x128xf32>
    %c0_115 = arith.constant 0 : index
    %c0_116 = arith.constant 0 : index
    %c0_117 = arith.constant 0 : index
    %103 = vector.load %arg4[%c0_115, %c0_116, %c0_117] : memref<1x256x128xf32, #tpu.memory_space<vmem>>, vector<1x256x128xf32>
    %104 = vector.shape_cast %103 : vector<1x256x128xf32> to vector<256x128xf32>
    %105 = vector.shape_cast %102 : vector<256x128xf32> to vector<1x256x128xf32>
    tpu.vector_store %arg4[%c0_115, %c0_116, %c0_117], %105 {strides = array<i32>} : memref<1x256x128xf32, #tpu.memory_space<vmem>>, vector<1x256x128xf32>,
    return
  }
  func.func @transform_0(%arg0: i32, %arg1: i32) -> (i32, i32, i32, i32) {
    %c0_i32 = arith.constant 0 : i32
    %c0_i32_0 = arith.constant 0 : i32
    %c0_i32_1 = arith.constant 0 : i32
    %c0_i32_2 = arith.constant 0 : i32
    return %arg0, %c0_i32, %c0_i32_0, %c0_i32_1 : i32, i32, i32, i32
  }
  func.func @transform_1(%arg0: i32, %arg1: i32) -> (i32, i32, i32, i32) {
    %c0_i32 = arith.constant 0 : i32
    %c0_i32_0 = arith.constant 0 : i32
    %c0_i32_1 = arith.constant 0 : i32
    %c0_i32_2 = arith.constant 0 : i32
    %c0_i32_3 = arith.constant 0 : i32
    return %c0_i32, %c0_i32_0, %c0_i32_1, %c0_i32_2 : i32, i32, i32, i32
  }
  func.func @transform_2(%arg0: i32, %arg1: i32) -> (i32, i32, i32) {
    %c0_i32 = arith.constant 0 : i32
    %c0_i32_0 = arith.constant 0 : i32
    return %arg0, %arg1, %c0_i32 : i32, i32, i32
  }
}

</mosaic_0001>

<bundles_post_ra>
// kernel: _conv_forward_pallas.1
= control target key start
LH: loop header
LB: loop body
LE: loop exit
PB: predicated region body
PF: predicated region fallthrough
CT: control target
= control target key end

     0   :  { %s6902_s9 = smov 0   ;;  %s6904_s10 = smov 0   ;;  %s8597_s0 = inlined_call_operand.vmem [shape: bf16[2,18,18,4], index: 0, kind: input, shape index: {}]   ;;  %s8598_s1 = inlined_call_operand.vmem [shape: bf16[3,3,4,128], index: 1, kind: input, shape index: {}]   ;;  %s8599_s2 = inlined_call_operand.vmem [shape: f32[2,256,128], index: 2, kind: output, shape index: {}]  }
   0x1   :  { %s6906_s11 = smov 0  }
   0x2 LB: > { %s24_s12 = sadd.s32 1, %s6881_s10  ;;  %p5712_p0 = scmp.ge.s32.totalorder %s6885_s11, 1  ;;  %s6885_s11 = sphi %s6906_s11, %s12_s11   ;;  %s6881_s10 = sphi %s6904_s10, %s8705_s10   ;;  %s6877_s9 = sphi %s6902_s9, %s8704_s9  }
   0x3   : > { %p26_p1 = scmp.ge.s32.totalorder %s24_s12, 2  ;;  %p126_p2 = scmp.lt.s32.totalorder %s6885_s11, 3 }
   0x5   : > { %s8707_s12 = smov (%p26_p1, %s24_s12), 0  ;;  %p127_p3 = pnand %p5712_p0, %p126_p2 }
   0x7   : > { %130 = sbr.rel (%p127_p3) target bundleno = 545 (0x221), region = 28 }
   0xc   : > { %v268_v0 = vld [vmem:[%s8598_s1] sm:$0x3]  ;;  %vm398_vm0 = vcmask 1041408   ;;  %p152_p4 = scmp.lt.s32.totalorder %s6877_s9, 1  ;;  %v5748_v2 = vld [vmem:[%s8598_s1 + $0x2] sm:$0x3] }
   0xd   : > { %6781 = vmatprep.subr.msk.bf16.mxu1 %vm398_vm0, %v268_v0  ;;  %6780 = vmatprep.subr.msk.bf16.mxu0 %vm398_vm0, %v268_v0  ;;  %v400_v1 = vsel %vm398_vm0, %v268_v0, 0  ;;  %v5797_v3 = vld [vmem:[%s8598_s1 + $0x4] sm:$0x3]  ;;  %vm349_vm1 = vcmask 31744   ;;  %v5862_v8 = vld [vmem:[%s8598_s1 + $0x6] sm:$0x3] }
   0xe   : > { %6779 = vmatpush3.bf16.msra.mxu1 %v400_v1  ;;  %6473 = vmatpush3.bf16.msra.mxu0 %v400_v1  ;;  %s8709_s9 = smov (!%p152_p4, %s6877_s9), 1  ;;  %v1762_v7 = vsel %vm398_vm0, %v5797_v3, 0  ;;  %v1193_v10 = vsel %vm398_vm0, %v5748_v2, 0  ;;  %v5943_v11 = vld [vmem:[%s8598_s1 + $0x8] sm:$0x3]  ;;  %vm1548_vm2 = vcmask 1042432  }
   0xf   : > { %6782 = vmatprep.subr.msk.bf16.mxu1 %vm398_vm0, %v5748_v2  ;;  %6783 = vmatprep.subr.msk.bf16.mxu0 %vm398_vm0, %v5797_v3  ;;  %s6790_s19 = smul.u32 216, %s8709_s9  ;;  %vm707_vm3 = vsmask.f32 3328  ;;  %vm708_vm4 = vsmask.f32 7440  ;;  %vm1549_vm5 = vcmask 1046532  }
  0x10   : > { %v6972_v18 = vld [vmem:[%s8598_s1 + $0xa] sm:$0x3]  ;;  %v6977_v19 = vsel %vm398_vm0, %v5862_v8, 0  ;;  %v6982_v21 = vsel %vm398_vm0, %v5943_v11, 0  ;;  %vm6999_vm6 = vmor %vm1548_vm2, %vm1549_vm5  ;;  %s6318_s7 = sshll.u32 %s8709_s9, 8 }
  0x11   : > { %s6940_s22 = scalar_lea.vmem %s8597_s0, %s6790_s19  ;;  %v6988_v24 = vsel %vm398_vm0, %v6972_v18, 0  ;;  %vm7013_vm7 = vmor %vm707_vm3, %vm708_vm4  ;;  %s8487_s14 = scalar_lea.vmem %s8599_s2, %s6318_s7 }
  0x12   : > { %v6815_v4 = vld [vmem:[%s6940_s22] sm:$0xff]   ;;  %v6817_v6 = vld [vmem:[%s6940_s22 + $0xc] sm:$0xff]   ;;  %v6819_v12 = vld [vmem:[%s6940_s22 + $0x18] sm:$0xff]  }
  0x13   : > { %v6816_v5 = vld [vmem:[%s6940_s22 + $0x60] sm:$0xff]   ;;  %6474 = vmatprep.mubr.msk.bf16.mxu0 %vm349_vm1, %v6815_v4  ;;  %v6818_v9 = vld [vmem:[%s6940_s22 + $0x6c] sm:$0xff]   ;;  %v6820_v13 = vld [vmem:[%s6940_s22 + $0x78] sm:$0xff]  }
  0x14   : > { %6490 = vmatprep.mubr.msk.bf16.mxu1 %vm349_vm1, %v6816_v5  ;;  %6475 = vmatmul.mubr.msk.bf16.vlgmr.msra.gmra.mxu0 %vm349_vm1, %v6817_v6  ;;  %v6821_v14 = vld [vmem:[%s6940_s22 + $0x24] sm:$0xff]   ;;  %v6823_v16 = vld [vmem:[%s6940_s22 + $0x30] sm:$0xff]   ;;  %v6825_v20 = vld [vmem:[%s6940_s22 + $0x3c] sm:$0xff]  }
  0x15   : > { %6491 = vmatmul.mubr.msk.bf16.vlgmr.msra.gmra.mxu1 %vm349_vm1, %v6818_v9  ;;  %6541 = vmatpush3.bf16.msra.mxu0 %v1762_v7  ;;  %v6822_v15 = vld [vmem:[%s6940_s22 + $0x84] sm:$0xff]   ;;  %v6824_v17 = vld [vmem:[%s6940_s22 + $0x90] sm:$0xff]   ;;  %v6826_v22 = vld [vmem:[%s6940_s22 + $0x9c] sm:$0xff]  }
  0x16   : > { %6507 = vmatpush3.bf16.msra.mxu1 %v1193_v10  ;;  %6478 = vmatprep.mubr.msk.bf16.mxu0 %vm349_vm1, %v6819_v12  ;;  %v6827_v23 = vld [vmem:[%s6940_s22 + $0x48] sm:$0xff]   ;;  %v627_v26 = vld [vmem:[%s6940_s22] sm:$0xf]  ;;  %v628_v27 = vld [vmem:[%s6940_s22 + $0x4] sm:$0xf] }
  0x17   : > { %6494 = vmatprep.mubr.msk.bf16.mxu1 %vm349_vm1, %v6820_v13  ;;  %6784 = vmatprep.subr.msk.bf16.mxu1 %vm398_vm0, %v5862_v8  ;;  %v6828_v25 = vld [vmem:[%s6940_s22 + $0xa8] sm:$0xff]   ;;  %v711_v29 = vshrl.u32 %v627_v26, 16  ;;  %v714_v30 = vshll.u32 %v627_v26, 16  ;;  %v720_v31 = vshll.u32 %v628_v27, 16  ;;  %v724_v32 = vshrl.u32 %v628_v27, 16  ;;  %v6829_v2 = vld [vmem:[%s6940_s22 + $0x54] sm:$0xff]  }
  0x18   : > { %6785 = vmatprep.subr.msk.bf16.mxu0 %vm398_vm0, %v5943_v11  ;;  %v629_v28 = vld [vmem:[%s6940_s22 + $0x8] sm:$0x1]  ;;  %v1420_v33 = vld [vmem:[%s6940_s22] sm:$0xe]  ;;  %v1421_v35 = vld [vmem:[%s6940_s22 + $0x4] sm:$0xf] }
  0x19   : > { %v730_v34 = vshll.u32 %v629_v28, 16  ;;  %v1422_v36 = vld [vmem:[%s6940_s22 + $0x8] sm:$0x1]  ;;  %v5781_v37 = vrot.slane %v1420_v33, 9  ;;  %v713_v38 = vrot.slane %v711_v29, 4  ;;  %v716_v39 = vrot.slane %v714_v30, 5 }
  0x1a   : > { %v722_v40 = vrot.slane %v720_v31, 5  ;;  %v726_v41 = vrot.slane %v724_v32, 4  ;;  %v630_v43 = vld [vmem:[%s6940_s22 + $0xc] sm:$0xf]  ;;  %v1553_v45 = vrot.slane %v1421_v35, 5  ;;  %v1556_v46 = vrot.slane %v1422_v36, 5 }
  0x1b   : > { %v732_v44 = vrot.slane %v730_v34, 5  ;;  %v631_v47 = vld [vmem:[%s6940_s22 + $0x10] sm:$0xf]  ;;  %v735_v48 = vshrl.u32 %v630_v43, 16  ;;  %v717_v49 = vor.u32 %v716_v39, %v713_v38  ;;  %v632_v51 = vld [vmem:[%s6940_s22 + $0x14] sm:$0x1] }
  0x1c   : > { %6479 = vmatmul.mubr.msk.bf16.gmra.mxu0 %vm349_vm1, %v6821_v14  ;;  %v727_v50 = vor.u32 %v726_v41, %v722_v40  ;;  %v738_v52 = vshll.u32 %v630_v43, 16  ;;  %v744_v53 = vshll.u32 %v631_v47, 16  ;;  %v1423_v54 = vld [vmem:[%s6940_s22 + $0xc] sm:$0xe]  ;;  %v1554_v56 = vsel %vm6999_vm6, %v5781_v37, %v1553_v45  ;;  %v1424_v60 = vld [vmem:[%s6940_s22 + $0x10] sm:$0xf] }
  0x1d   : > { %6495 = vmatmul.mubr.msk.bf16.gmra.mxu1 %vm349_vm1, %v6822_v15  ;;  %6482 = vmatprep.mubr.msk.bf16.mxu0 %vm349_vm1, %v6823_v16  ;;  %v1555_v57 = vrot.slane %v1553_v45, 4  ;;  %v737_v58 = vrot.slane %v735_v48, 4  ;;  %v748_v59 = vshrl.u32 %v631_v47, 16  ;;  %v718_v61 = vrot.slane %v717_v49, 4  ;;  %v1425_v1 = vld [vmem:[%s6940_s22 + $0x14] sm:$0x1] }
  0x1e   : > { %6498 = vmatprep.mubr.msk.bf16.mxu1 %vm349_vm1, %v6824_v17  ;;  %v728_v62 = vrot.slane %v727_v50, 4  ;;  %v740_v63 = vrot.slane %v738_v52, 5  ;;  %v746_v0 = vrot.slane %v744_v53, 5  ;;  %v754_v5 = vshll.u32 %v632_v51, 16  ;;  %v633_v7 = vld [vmem:[%s6940_s22 + $0x18] sm:$0xf] }
  0x1f   : > { %v1557_v3 = vsel %vm6999_vm6, %v1555_v57, %v1556_v46  ;;  %v750_v4 = vrot.slane %v748_v59, 4  ;;  %v5782_v6 = vrot.slane %v1423_v54, 9  ;;  %v6830_v8 = vld [vmem:[%s6940_s22 + $0xb4] sm:$0xff]   ;;  %v723_v9 = vsel %vm7013_vm7, %v718_v61, %v722_v40  ;;  %v634_v13 = vld [vmem:[%s6940_s22 + $0x1c] sm:$0xf] }
  0x20   : > { %v733_v10 = vsel %vm7013_vm7, %v728_v62, %v732_v44  ;;  %v5798_v11 = vcombine.low %v1554_v56, %v1557_v3  ;;  %v741_v12 = vor.u32 %v740_v63, %v737_v58  ;;  %v756_v16 = vrot.slane %v754_v5, 5  ;;  %v1426_v27 = vld [vmem:[%s6940_s22 + $0x18] sm:$0xe]  ;;  %v1427_v32 = vld [vmem:[%s6940_s22 + $0x1c] sm:$0xf] }
  0x21   : > { %v5749_v14 = vcombine.low %v723_v9, %v733_v10  ;;  %v751_v15 = vor.u32 %v750_v4, %v746_v0  ;;  %v1560_v17 = vrot.slane %v1424_v60, 5  ;;  %v762_v26 = vshll.u32 %v633_v7, 16  ;;  %v1428_v37 = vld [vmem:[%s6940_s22 + $0x20] sm:$0x1]  ;;  %v636_v43 = vld [vmem:[%s6940_s22 + $0x24] sm:$0xf] }
  0x22   : > { %v768_v31 = vshll.u32 %v634_v13, 16  ;;  %v772_v36 = vshrl.u32 %v634_v13, 16  ;;  %v637_v48 = vld [vmem:[%s6940_s22 + $0x28] sm:$0xf]  ;;  %v5783_v50 = vrot.slane %v1426_v27, 9  ;;  %v1567_v51 = vrot.slane %v1427_v32, 5 }
  0x23   : > { %v752_v28 = vrot.slane %v751_v15, 4  ;;  %v1561_v29 = vsel %vm6999_vm6, %v5782_v6, %v1560_v17  ;;  %v1562_v30 = vrot.slane %v1560_v17, 4  ;;  %v764_v35 = vrot.slane %v762_v26, 5  ;;  %v638_v53 = vld [vmem:[%s6940_s22 + $0x2c] sm:$0x1] }
  0x24   : > { %6483 = vmatmul.mubr.msk.bf16.gmra.mxu0 %vm349_vm1, %v6825_v20  ;;  %v635_v20 = vld [vmem:[%s6940_s22 + $0x20] sm:$0x1]  ;;  %v770_v40 = vrot.slane %v768_v31, 5  ;;  %v774_v47 = vrot.slane %v772_v36, 4  ;;  %v1570_v52 = vrot.slane %v1428_v37, 5  ;;  %v783_v57 = vshrl.u32 %v636_v43, 16 }
  0x25   : > { %6499 = vmatmul.mubr.msk.bf16.gmra.mxu1 %vm349_vm1, %v6826_v22  ;;  %6486 = vmatprep.mubr.msk.bf16.mxu0 %vm349_vm1, %v6827_v23  ;;  %v742_v22 = vrot.slane %v741_v12, 4  ;;  %v1563_v23 = vrot.slane %v1425_v1, 5  ;;  %v757_v38 = vsel %vm7013_vm7, %v752_v28, %v756_v16  ;;  %v778_v41 = vshll.u32 %v635_v20, 16  ;;  %v1429_v59 = vld [vmem:[%s6940_s22 + $0x24] sm:$0xe] }
  0x26   : > { %6502 = vmatprep.mubr.msk.bf16.mxu1 %vm349_vm1, %v6828_v25  ;;  %v759_v25 = vshrl.u32 %v633_v7, 16  ;;  %v775_v56 = vor.u32 %v774_v47, %v770_v40  ;;  %v786_v58 = vshll.u32 %v636_v43, 16  ;;  %v1568_v60 = vsel %vm6999_vm6, %v5783_v50, %v1567_v51  ;;  %v1431_v5 = vld [vmem:[%s6940_s22 + $0x2c] sm:$0x1]  ;;  %v639_v10 = vld [vmem:[%s6940_s22 + $0x30] sm:$0xf] }
  0x27   : > { %v747_v33 = vsel %vm7013_vm7, %v742_v22, %v746_v0  ;;  %v1564_v39 = vsel %vm6999_vm6, %v1562_v30, %v1563_v23  ;;  %v780_v49 = vrot.slane %v778_v41, 5  ;;  %v1569_v61 = vrot.slane %v1567_v51, 4  ;;  %v1430_v0 = vld [vmem:[%s6940_s22 + $0x28] sm:$0xf]  ;;  %v640_v15 = vld [vmem:[%s6940_s22 + $0x34] sm:$0xf] }
  0x28   : > { %v761_v34 = vrot.slane %v759_v25, 4  ;;  %v5750_v44 = vcombine.low %v747_v33, %v757_v38  ;;  %v5799_v45 = vcombine.low %v1561_v29, %v1564_v39  ;;  %v792_v62 = vshll.u32 %v637_v48, 16  ;;  %v641_v23 = vld [vmem:[%s6940_s22 + $0x38] sm:$0x1]  ;;  %v1432_v28 = vld [vmem:[%s6940_s22 + $0x30] sm:$0xe] }
  0x29   : > { %v796_v63 = vshrl.u32 %v637_v48, 16  ;;  %v785_v3 = vrot.slane %v783_v57, 4  ;;  %v788_v4 = vrot.slane %v786_v58, 5  ;;  %v1571_v6 = vsel %vm6999_vm6, %v1569_v61, %v1570_v52  ;;  %v1433_v32 = vld [vmem:[%s6940_s22 + $0x34] sm:$0xf] }
  0x2a   : > { %v765_v46 = vor.u32 %v764_v35, %v761_v34  ;;  %v794_v7 = vrot.slane %v792_v62, 5  ;;  %v802_v9 = vshll.u32 %v638_v53, 16  ;;  %v5800_v12 = vcombine.low %v1568_v60, %v1571_v6  ;;  %v1434_v37 = vld [vmem:[%s6940_s22 + $0x38] sm:$0x1]  ;;  %v642_v41 = vld [vmem:[%s6940_s22 + $0x3c] sm:$0xf] }
  0x2b   : > { %v789_v13 = vor.u32 %v788_v4, %v785_v3  ;;  %v1574_v22 = vrot.slane %v1430_v0, 5  ;;  %v807_v26 = vshrl.u32 %v639_v10, 16  ;;  %v810_v27 = vshll.u32 %v639_v10, 16  ;;  %v643_v47 = vld [vmem:[%s6940_s22 + $0x40] sm:$0xf] }
  0x2c   : > { %6487 = vmatmul.mubr.msk.bf16.gmra.mxu0 %vm349_vm1, %v6829_v2  ;;  %v766_v54 = vrot.slane %v765_v46, 4  ;;  %v776_v2 = vrot.slane %v775_v56, 4  ;;  %v804_v20 = vrot.slane %v802_v9, 5  ;;  %v816_v31 = vshll.u32 %v640_v15, 16  ;;  %v644_v52 = vld [vmem:[%s6940_s22 + $0x44] sm:$0x1] }
  0x2d   : > { %6503 = vmatmul.mubr.msk.bf16.gmra.mxu1 %vm349_vm1, %v6830_v8  ;;  %6542 = vmatprep.mubr.msk.bf16.mxu0 %vm349_vm1, %v5798_v11  ;;  %v798_v8 = vrot.slane %v796_v63, 4  ;;  %v790_v25 = vrot.slane %v789_v13, 4  ;;  %v1576_v30 = vrot.slane %v1574_v22, 4  ;;  %v809_v34 = vrot.slane %v807_v26, 4  ;;  %v1435_v58 = vld [vmem:[%s6940_s22 + $0x3c] sm:$0xe] }
  0x2e   : > { %6508 = vmatprep.mubr.msk.bf16.mxu1 %vm349_vm1, %v5749_v14  ;;  %v771_v1 = vsel %vm7013_vm7, %v766_v54, %v770_v40  ;;  %v781_v11 = vsel %vm7013_vm7, %v776_v2, %v780_v49  ;;  %v5784_v14 = vrot.slane %v1429_v59, 9  ;;  %v812_v35 = vrot.slane %v810_v27, 5  ;;  %v1436_v63 = vld [vmem:[%s6940_s22 + $0x40] sm:$0xf]  ;;  %v1437_v4 = vld [vmem:[%s6940_s22 + $0x44] sm:$0x1] }
  0x2f   : > { %v5751_v16 = vcombine.low %v771_v1, %v781_v11  ;;  %v799_v17 = vor.u32 %v798_v8, %v794_v7  ;;  %v795_v33 = vsel %vm7013_vm7, %v790_v25, %v794_v7  ;;  %v820_v36 = vshrl.u32 %v640_v15, 16  ;;  %v645_v9 = vld [vmem:[%s6940_s22 + $0x48] sm:$0xf] }
  0x30   : > { %v1575_v29 = vsel %vm6999_vm6, %v5784_v14, %v1574_v22  ;;  %v818_v39 = vrot.slane %v816_v31, 5  ;;  %v826_v40 = vshll.u32 %v641_v23, 16  ;;  %v5785_v49 = vrot.slane %v1432_v28, 9  ;;  %v646_v14 = vld [vmem:[%s6940_s22 + $0x4c] sm:$0xf] }
  0x31   : > { %v822_v46 = vrot.slane %v820_v36, 4  ;;  %v1581_v50 = vrot.slane %v1433_v32, 5  ;;  %v1584_v51 = vrot.slane %v1434_v37, 5  ;;  %v831_v56 = vshrl.u32 %v642_v41, 16  ;;  %v647_v22 = vld [vmem:[%s6940_s22 + $0x50] sm:$0x1] }
  0x32   : > { %v828_v48 = vrot.slane %v826_v40, 5  ;;  %v834_v57 = vshll.u32 %v642_v41, 16  ;;  %v840_v61 = vshll.u32 %v643_v47, 16  ;;  %v844_v62 = vshrl.u32 %v643_v47, 16  ;;  %v1438_v27 = vld [vmem:[%s6940_s22 + $0x48] sm:$0xe] }
  0x33   : > { %v823_v54 = vor.u32 %v822_v46, %v818_v39  ;;  %v1582_v59 = vsel %vm6999_vm6, %v5785_v49, %v1581_v50  ;;  %v1583_v60 = vrot.slane %v1581_v50, 4  ;;  %v833_v2 = vrot.slane %v831_v56, 4  ;;  %v1439_v31 = vld [vmem:[%s6940_s22 + $0x4c] sm:$0xf]  ;;  %v1440_v36 = vld [vmem:[%s6940_s22 + $0x50] sm:$0x1] }
  0x34   : > { %6543 = vmatmul.mubr.msk.bf16.vlgmr.msra.gmra.mxu0 %vm349_vm1, %v5799_v45  ;;  %v813_v45 = vor.u32 %v812_v35, %v809_v34  ;;  %v836_v3 = vrot.slane %v834_v57, 5  ;;  %v842_v6 = vrot.slane %v840_v61, 5  ;;  %v846_v7 = vrot.slane %v844_v62, 4  ;;  %v648_v40 = vld [vmem:[%s6940_s22 + $0x54] sm:$0xf] }
  0x35   : > { %6509 = vmatmul.mubr.msk.bf16.vlgmr.msra.gmra.mxu1 %vm349_vm1, %v5750_v44  ;;  %6609 = vmatpush3.bf16.msra.mxu0 %v6982_v21  ;;  %v1577_v21 = vrot.slane %v1431_v5, 5  ;;  %v824_v1 = vrot.slane %v823_v54, 4  ;;  %v1585_v5 = vsel %vm6999_vm6, %v1583_v60, %v1584_v51  ;;  %v850_v8 = vshll.u32 %v644_v52, 16  ;;  %v649_v46 = vld [vmem:[%s6940_s22 + $0x58] sm:$0xf] }
  0x36   : > { %6575 = vmatpush3.bf16.msra.mxu1 %v6977_v19  ;;  %6546 = vmatprep.mubr.msk.bf16.mxu0 %vm349_vm1, %v5800_v12  ;;  %v800_v19 = vrot.slane %v799_v17, 4  ;;  %v814_v53 = vrot.slane %v813_v45, 4  ;;  %v5802_v11 = vcombine.low %v1582_v59, %v1585_v5  ;;  %v837_v12 = vor.u32 %v836_v3, %v833_v2  ;;  %v650_v51 = vld [vmem:[%s6940_s22 + $0x5c] sm:$0x1]  ;;  %v1441_v57 = vld [vmem:[%s6940_s22 + $0x54] sm:$0xe] }
  0x37   : > { %6786 = vmatprep.subr.msk.bf16.mxu1 %vm398_vm0, %v6972_v18  ;;  %6512 = vmatprep.mubr.msk.bf16.mxu1 %vm349_vm1, %v5751_v16  ;;  %v1578_v38 = vsel %vm6999_vm6, %v1576_v30, %v1577_v21  ;;  %v829_v10 = vsel %vm7013_vm7, %v824_v1, %v828_v48  ;;  %v5786_v13 = vrot.slane %v1435_v58, 9  ;;  %v847_v16 = vor.u32 %v846_v7, %v842_v6  ;;  %v1442_v62 = vld [vmem:[%s6940_s22 + $0x58] sm:$0xf]  ;;  %v1443_v3 = vld [vmem:[%s6940_s22 + $0x5c] sm:$0x1] }
  0x38   : > { %v805_v18 = vsel %vm7013_vm7, %v800_v19, %v804_v20  ;;  %v5801_v44 = vcombine.low %v1575_v29, %v1578_v38  ;;  %v819_v0 = vsel %vm7013_vm7, %v814_v53, %v818_v39  ;;  %v852_v17 = vrot.slane %v850_v8, 5  ;;  %v651_v8 = vld [vmem:[%s6940_s22 + $0x60] sm:$0xf] }
  0x39   : > { %v5752_v43 = vcombine.low %v795_v33, %v805_v18  ;;  %v5753_v15 = vcombine.low %v819_v0, %v829_v10  ;;  %v1588_v20 = vrot.slane %v1436_v63, 5  ;;  %v838_v23 = vrot.slane %v837_v12, 4 }
  0x3a   : > { %v1591_v25 = vrot.slane %v1437_v4, 5  ;;  %v855_v21 = vshrl.u32 %v645_v9, 16  ;;  %v858_v26 = vshll.u32 %v645_v9, 16  ;;  %v848_v28 = vrot.slane %v847_v16, 4 }
  0x3b   : > { %v1589_v19 = vsel %vm6999_vm6, %v5786_v13, %v1588_v20  ;;  %v1590_v29 = vrot.slane %v1588_v20, 4  ;;  %v864_v30 = vshll.u32 %v646_v14, 16  ;;  %v843_v32 = vsel %vm7013_vm7, %v838_v23, %v842_v6  ;;  %v652_v13 = vld [vmem:[%s6940_s22 + $0x64] sm:$0xf]  ;;  %v653_v20 = vld [vmem:[%s6940_s22 + $0x68] sm:$0x1] }
  0x3c   : > { %6547 = vmatmul.mubr.msk.bf16.gmra.mxu0 %vm349_vm1, %v5801_v44  ;;  %v857_v33 = vrot.slane %v855_v21, 4  ;;  %v860_v34 = vrot.slane %v858_v26, 5  ;;  %v868_v35 = vshrl.u32 %v646_v14, 16  ;;  %v853_v37 = vsel %vm7013_vm7, %v848_v28, %v852_v17  ;;  %v1444_v26 = vld [vmem:[%s6940_s22 + $0x60] sm:$0xe] }
  0x3d   : > { %6513 = vmatmul.mubr.msk.bf16.gmra.mxu1 %vm349_vm1, %v5752_v43  ;;  %6550 = vmatprep.mubr.msk.bf16.mxu0 %vm349_vm1, %v5802_v11  ;;  %v1592_v18 = vsel %vm6999_vm6, %v1590_v29, %v1591_v25  ;;  %v866_v38 = vrot.slane %v864_v30, 5  ;;  %v874_v39 = vshll.u32 %v647_v22, 16  ;;  %v5754_v41 = vcombine.low %v843_v32, %v853_v37  ;;  %v1445_v30 = vld [vmem:[%s6940_s22 + $0x64] sm:$0xf] }
  0x3e   : > { %6516 = vmatprep.mubr.msk.bf16.mxu1 %vm349_vm1, %v5753_v15  ;;  %v5803_v43 = vcombine.low %v1589_v19, %v1592_v18  ;;  %v861_v44 = vor.u32 %v860_v34, %v857_v33  ;;  %v870_v45 = vrot.slane %v868_v35, 4  ;;  %v5787_v48 = vrot.slane %v1438_v27, 9  ;;  %v1446_v35 = vld [vmem:[%s6940_s22 + $0x68] sm:$0x1] }
  0x3f   : > { %v876_v47 = vrot.slane %v874_v39, 5  ;;  %v1595_v49 = vrot.slane %v1439_v31, 5  ;;  %v1598_v50 = vrot.slane %v1440_v36, 5  ;;  %v879_v54 = vshrl.u32 %v648_v40, 16  ;;  %v654_v39 = vld [vmem:[%s6940_s22 + $0x6c] sm:$0xf] }
  0x40   : > { %v862_v52 = vrot.slane %v861_v44, 4  ;;  %v871_v53 = vor.u32 %v870_v45, %v866_v38  ;;  %v882_v56 = vshll.u32 %v648_v40, 16  ;;  %v888_v60 = vshll.u32 %v649_v46, 16  ;;  %v655_v45 = vld [vmem:[%s6940_s22 + $0x70] sm:$0xf] }
  0x41   : > { %v1596_v58 = vsel %vm6999_vm6, %v5787_v48, %v1595_v49  ;;  %v1597_v59 = vrot.slane %v1595_v49, 4  ;;  %v892_v61 = vshrl.u32 %v649_v46, 16  ;;  %v881_v1 = vrot.slane %v879_v54, 4 }
  0x42   : > { %v867_v63 = vsel %vm7013_vm7, %v862_v52, %v866_v38  ;;  %v872_v0 = vrot.slane %v871_v53, 4  ;;  %v884_v2 = vrot.slane %v882_v56, 5  ;;  %v890_v5 = vrot.slane %v888_v60, 5  ;;  %v1447_v56 = vld [vmem:[%s6940_s22 + $0x6c] sm:$0xe] }
  0x43   : > { %v1599_v4 = vsel %vm6999_vm6, %v1597_v59, %v1598_v50  ;;  %v894_v6 = vrot.slane %v892_v61, 4  ;;  %v898_v7 = vshll.u32 %v650_v51, 16  ;;  %v5788_v12 = vrot.slane %v1441_v57, 9  ;;  %v656_v50 = vld [vmem:[%s6940_s22 + $0x74] sm:$0x1] }
  0x44   : > { %6551 = vmatmul.mubr.msk.bf16.gmra.mxu0 %vm349_vm1, %v5803_v43  ;;  %v877_v9 = vsel %vm7013_vm7, %v872_v0, %v876_v47  ;;  %v5804_v10 = vcombine.low %v1596_v58, %v1599_v4  ;;  %v885_v11 = vor.u32 %v884_v2, %v881_v1  ;;  %v1602_v17 = vrot.slane %v1442_v62, 5  ;;  %v1448_v61 = vld [vmem:[%s6940_s22 + $0x70] sm:$0xf]  ;;  %v1449_v2 = vld [vmem:[%s6940_s22 + $0x74] sm:$0x1] }
  0x45   : > { %6517 = vmatmul.mubr.msk.bf16.gmra.mxu1 %vm349_vm1, %v5754_v41  ;;  %v5755_v14 = vcombine.low %v867_v63, %v877_v9  ;;  %v895_v15 = vor.u32 %v894_v6, %v890_v5  ;;  %v900_v16 = vrot.slane %v898_v7, 5  ;;  %v1605_v23 = vrot.slane %v1443_v3, 5  ;;  %v657_v7 = vld [vmem:[%s6940_s22 + $0x78] sm:$0xf] }
  0x46   : > { %6554 = vmatprep.mubr.msk.bf16.mxu0 %vm349_vm1, %v5804_v10  ;;  %v886_v22 = vrot.slane %v885_v11, 4  ;;  %v903_v25 = vshrl.u32 %v651_v8, 16  ;;  %v906_v21 = vshll.u32 %v651_v8, 16  ;;  %v1603_v28 = vsel %vm6999_vm6, %v5788_v12, %v1602_v17  ;;  %v658_v12 = vld [vmem:[%s6940_s22 + $0x7c] sm:$0xf] }
  0x47   : > { %6520 = vmatprep.mubr.msk.bf16.mxu1 %vm349_vm1, %v5755_v14  ;;  %v896_v27 = vrot.slane %v895_v15, 4  ;;  %v1604_v19 = vrot.slane %v1602_v17, 4  ;;  %v912_v29 = vshll.u32 %v652_v13, 16  ;;  %v916_v34 = vshrl.u32 %v652_v13, 16  ;;  %v659_v17 = vld [vmem:[%s6940_s22 + $0x80] sm:$0x1] }
  0x48   : > { %v891_v31 = vsel %vm7013_vm7, %v886_v22, %v890_v5  ;;  %v905_v32 = vrot.slane %v903_v25, 4  ;;  %v908_v33 = vrot.slane %v906_v21, 5  ;;  %v922_v38 = vshll.u32 %v653_v20, 16  ;;  %v1450_v21 = vld [vmem:[%s6940_s22 + $0x78] sm:$0xe] }
  0x49   : > { %v901_v36 = vsel %vm7013_vm7, %v896_v27, %v900_v16  ;;  %v1606_v37 = vsel %vm6999_vm6, %v1604_v19, %v1605_v23  ;;  %v914_v18 = vrot.slane %v912_v29, 5  ;;  %v918_v44 = vrot.slane %v916_v34, 4  ;;  %v1451_v29 = vld [vmem:[%s6940_s22 + $0x7c] sm:$0xf]  ;;  %v1452_v34 = vld [vmem:[%s6940_s22 + $0x80] sm:$0x1] }
  0x4a   : > { %v5756_v40 = vcombine.low %v891_v31, %v901_v36  ;;  %v5805_v41 = vcombine.low %v1603_v28, %v1606_v37  ;;  %v909_v43 = vor.u32 %v908_v33, %v905_v32  ;;  %v924_v46 = vrot.slane %v922_v38, 5  ;;  %v660_v38 = vld [vmem:[%s6940_s22 + $0x84] sm:$0xf] }
  0x4b   : > { %v5789_v47 = vrot.slane %v1444_v26, 9  ;;  %v1609_v48 = vrot.slane %v1445_v30, 5  ;;  %v1612_v49 = vrot.slane %v1446_v35, 5  ;;  %v919_v52 = vor.u32 %v918_v44, %v914_v18  ;;  %v661_v44 = vld [vmem:[%s6940_s22 + $0x88] sm:$0xf] }
  0x4c   : > { %6555 = vmatmul.mubr.msk.bf16.gmra.mxu0 %vm349_vm1, %v5805_v41  ;;  %v910_v51 = vrot.slane %v909_v43, 4  ;;  %v927_v53 = vshrl.u32 %v654_v39, 16  ;;  %v930_v54 = vshll.u32 %v654_v39, 16  ;;  %v936_v59 = vshll.u32 %v655_v45, 16 }
  0x4d   : > { %6521 = vmatmul.mubr.msk.bf16.gmra.mxu1 %vm349_vm1, %v5756_v40  ;;  %v1610_v57 = vsel %vm6999_vm6, %v5789_v47, %v1609_v48  ;;  %v1611_v58 = vrot.slane %v1609_v48, 4  ;;  %v940_v60 = vshrl.u32 %v655_v45, 16  ;;  %v920_v63 = vrot.slane %v919_v52, 4 }
  0x4e   : > { %v915_v62 = vsel %vm7013_vm7, %v910_v51, %v914_v18  ;;  %v929_v0 = vrot.slane %v927_v53, 4  ;;  %v932_v1 = vrot.slane %v930_v54, 5  ;;  %v938_v4 = vrot.slane %v936_v59, 5  ;;  %v1453_v54 = vld [vmem:[%s6940_s22 + $0x84] sm:$0xe] }
  0x4f   : > { %v1613_v3 = vsel %vm6999_vm6, %v1611_v58, %v1612_v49  ;;  %v942_v5 = vrot.slane %v940_v60, 4  ;;  %v946_v6 = vshll.u32 %v656_v50, 16  ;;  %v925_v8 = vsel %vm7013_vm7, %v920_v63, %v924_v46  ;;  %v662_v49 = vld [vmem:[%s6940_s22 + $0x8c] sm:$0x1]  ;;  %v1454_v60 = vld [vmem:[%s6940_s22 + $0x88] sm:$0xf] }
  0x50   : > { %v5806_v9 = vcombine.low %v1610_v57, %v1613_v3  ;;  %v933_v10 = vor.u32 %v932_v1, %v929_v0  ;;  %v5790_v11 = vrot.slane %v1447_v56, 9  ;;  %v5757_v13 = vcombine.low %v915_v62, %v925_v8  ;;  %v1455_v1 = vld [vmem:[%s6940_s22 + $0x8c] sm:$0x1] }
  0x51   : > { %v943_v14 = vor.u32 %v942_v5, %v938_v4  ;;  %v948_v15 = vrot.slane %v946_v6, 5  ;;  %v1616_v16 = vrot.slane %v1448_v61, 5  ;;  %v1619_v22 = vrot.slane %v1449_v2, 5  ;;  %v663_v6 = vld [vmem:[%s6940_s22 + $0x90] sm:$0xf] }
  0x52   : > { %6558 = vmatprep.mubr.msk.bf16.mxu0 %vm349_vm1, %v5806_v9  ;;  %v934_v20 = vrot.slane %v933_v10, 4  ;;  %v951_v23 = vshrl.u32 %v657_v7, 16  ;;  %v954_v25 = vshll.u32 %v657_v7, 16  ;;  %6524 = vmatprep.mubr.msk.bf16.mxu1 %vm349_vm1, %v5757_v13  ;;  %v960_v19 = vshll.u32 %v658_v12, 16 }
  0x53   : > { %v944_v26 = vrot.slane %v943_v14, 4  ;;  %v1617_v27 = vsel %vm6999_vm6, %v5790_v11, %v1616_v16  ;;  %v1618_v28 = vrot.slane %v1616_v16, 4  ;;  %v964_v33 = vshrl.u32 %v658_v12, 16  ;;  %v664_v11 = vld [vmem:[%s6940_s22 + $0x94] sm:$0xf] }
  0x54   : > { %v939_v30 = vsel %vm7013_vm7, %v934_v20, %v938_v4  ;;  %v953_v31 = vrot.slane %v951_v23, 4  ;;  %v956_v32 = vrot.slane %v954_v25, 5  ;;  %v962_v37 = vrot.slane %v960_v19, 5  ;;  %v665_v12 = vld [vmem:[%s6940_s22 + $0x98] sm:$0x1] }
  0x55   : > { %v949_v35 = vsel %vm7013_vm7, %v944_v26, %v948_v15  ;;  %v1620_v36 = vsel %vm6999_vm6, %v1618_v28, %v1619_v22  ;;  %v970_v18 = vshll.u32 %v659_v17, 16  ;;  %v966_v43 = vrot.slane %v964_v33, 4  ;;  %v1456_v25 = vld [vmem:[%s6940_s22 + $0x90] sm:$0xe] }
  0x56   : > { %v5758_v39 = vcombine.low %v939_v30, %v949_v35  ;;  %v5807_v40 = vcombine.low %v1617_v27, %v1620_v36  ;;  %v957_v41 = vor.u32 %v956_v32, %v953_v31  ;;  %v5791_v46 = vrot.slane %v1450_v21, 9  ;;  %v1457_v21 = vld [vmem:[%s6940_s22 + $0x94] sm:$0xf] }
  0x57   : > { %v972_v45 = vrot.slane %v970_v18, 5  ;;  %v1623_v47 = vrot.slane %v1451_v29, 5  ;;  %v1626_v48 = vrot.slane %v1452_v34, 5  ;;  %v967_v51 = vor.u32 %v966_v43, %v962_v37  ;;  %v1458_v29 = vld [vmem:[%s6940_s22 + $0x98] sm:$0x1] }
  0x58   : > { %6525 = vmatmul.mubr.msk.bf16.gmra.mxu1 %vm349_vm1, %v5758_v39  ;;  %6559 = vmatmul.mubr.msk.bf16.gmra.mxu0 %vm349_vm1, %v5807_v40  ;;  %v958_v50 = vrot.slane %v957_v41, 4  ;;  %v975_v52 = vshrl.u32 %v660_v38, 16  ;;  %v978_v53 = vshll.u32 %v660_v38, 16  ;;  %v984_v58 = vshll.u32 %v661_v44, 16  ;;  %v666_v34 = vld [vmem:[%s6940_s22 + $0x9c] sm:$0xf] }
  0x59   : > { %v1624_v56 = vsel %vm6999_vm6, %v5791_v46, %v1623_v47  ;;  %v1625_v57 = vrot.slane %v1623_v47, 4  ;;  %v988_v59 = vshrl.u32 %v661_v44, 16  ;;  %v968_v62 = vrot.slane %v967_v51, 4  ;;  %v667_v43 = vld [vmem:[%s6940_s22 + $0xa0] sm:$0xf] }
  0x5a   : > { %v963_v61 = vsel %vm7013_vm7, %v958_v50, %v962_v37  ;;  %v977_v63 = vrot.slane %v975_v52, 4  ;;  %v980_v0 = vrot.slane %v978_v53, 5  ;;  %v986_v3 = vrot.slane %v984_v58, 5  ;;  %v668_v44 = vld [vmem:[%s6940_s22 + $0xa4] sm:$0x1] }
  0x5b   : > { %v1627_v2 = vsel %vm6999_vm6, %v1625_v57, %v1626_v48  ;;  %v990_v4 = vrot.slane %v988_v59, 4  ;;  %v994_v5 = vshll.u32 %v662_v49, 16  ;;  %v973_v7 = vsel %vm7013_vm7, %v968_v62, %v972_v45  ;;  %v1459_v49 = vld [vmem:[%s6940_s22 + $0x9c] sm:$0xe] }
  0x5c   : > { %v5808_v8 = vcombine.low %v1624_v56, %v1627_v2  ;;  %v981_v9 = vor.u32 %v980_v0, %v977_v63  ;;  %v5792_v10 = vrot.slane %v1453_v54, 9  ;;  %v5759_v13 = vcombine.low %v963_v61, %v973_v7  ;;  %v1460_v54 = vld [vmem:[%s6940_s22 + $0xa0] sm:$0xf]  ;;  %v7221_v56 = vld [vmem:[%s8598_s1 + $0xc] sm:$0x3] }
  0x5d   : > { %v991_v14 = vor.u32 %v990_v4, %v986_v3  ;;  %v996_v15 = vrot.slane %v994_v5, 5  ;;  %v1630_v16 = vrot.slane %v1454_v60, 5  ;;  %v1633_v20 = vrot.slane %v1455_v1, 5  ;;  %v1461_v61 = vld [vmem:[%s6940_s22 + $0xa4] sm:$0x1]  ;;  %6787 = vmatprep.subr.msk.bf16.mxu0 %vm398_vm0, %v7221_v56 }
  0x5e   : > { %6562 = vmatprep.mubr.msk.bf16.mxu0 %vm349_vm1, %v5808_v8  ;;  %v982_v17 = vrot.slane %v981_v9, 4  ;;  %v999_v22 = vshrl.u32 %v663_v6, 16  ;;  %v1002_v23 = vshll.u32 %v663_v6, 16  ;;  %6528 = vmatprep.mubr.msk.bf16.mxu1 %vm349_vm1, %v5759_v13  ;;  %v1008_v19 = vshll.u32 %v664_v11, 16  ;;  %v669_v6 = vld [vmem:[%s6940_s22 + $0xa8] sm:$0xf] }
  0x5f   : > { %v992_v26 = vrot.slane %v991_v14, 4  ;;  %v1631_v27 = vsel %vm6999_vm6, %v5792_v10, %v1630_v16  ;;  %v1632_v28 = vrot.slane %v1630_v16, 4  ;;  %v1012_v33 = vshrl.u32 %v664_v11, 16  ;;  %v670_v11 = vld [vmem:[%s6940_s22 + $0xac] sm:$0xf] }
  0x60   : > { %v987_v30 = vsel %vm7013_vm7, %v982_v17, %v986_v3  ;;  %v1001_v31 = vrot.slane %v999_v22, 4  ;;  %v1004_v32 = vrot.slane %v1002_v23, 5  ;;  %v1010_v37 = vrot.slane %v1008_v19, 5 }
  0x61   : > { %v997_v35 = vsel %vm7013_vm7, %v992_v26, %v996_v15  ;;  %v1634_v36 = vsel %vm6999_vm6, %v1632_v28, %v1633_v20  ;;  %v1018_v18 = vshll.u32 %v665_v12, 16  ;;  %v1014_v41 = vrot.slane %v1012_v33, 4  ;;  %v671_v12 = vld [vmem:[%s6940_s22 + $0xb0] sm:$0x1] }
  0x62   : > { %v5760_v38 = vcombine.low %v987_v30, %v997_v35  ;;  %v5809_v39 = vcombine.low %v1631_v27, %v1634_v36  ;;  %v1005_v40 = vor.u32 %v1004_v32, %v1001_v31  ;;  %v5793_v46 = vrot.slane %v1456_v25, 9  ;;  %v1462_v25 = vld [vmem:[%s6940_s22 + $0xa8] sm:$0xe] }
  0x63   : > { %v1020_v45 = vrot.slane %v1018_v18, 5  ;;  %v1637_v47 = vrot.slane %v1457_v21, 5  ;;  %v1640_v48 = vrot.slane %v1458_v29, 5  ;;  %v1015_v51 = vor.u32 %v1014_v41, %v1010_v37  ;;  %v1463_v21 = vld [vmem:[%s6940_s22 + $0xac] sm:$0xf] }
  0x64   : > { %6529 = vmatmul.mubr.msk.bf16.gmra.mxu1 %vm349_vm1, %v5760_v38  ;;  %6563 = vmatmul.mubr.msk.bf16.gmra.mxu0 %vm349_vm1, %v5809_v39  ;;  %v1006_v50 = vrot.slane %v1005_v40, 4  ;;  %v1023_v52 = vshrl.u32 %v666_v34, 16  ;;  %v1026_v53 = vshll.u32 %v666_v34, 16  ;;  %v1032_v59 = vshll.u32 %v667_v43, 16  ;;  %v1464_v29 = vld [vmem:[%s6940_s22 + $0xb0] sm:$0x1] }
  0x65   : > { %v1638_v57 = vsel %vm6999_vm6, %v5793_v46, %v1637_v47  ;;  %v1639_v58 = vrot.slane %v1637_v47, 4  ;;  %v1036_v60 = vshrl.u32 %v667_v43, 16  ;;  %v1016_v63 = vrot.slane %v1015_v51, 4  ;;  %v672_v34 = vld [vmem:[%s6940_s22 + $0xb4] sm:$0xf] }
  0x66   : > { %v1011_v62 = vsel %vm7013_vm7, %v1006_v50, %v1010_v37  ;;  %v1025_v0 = vrot.slane %v1023_v52, 4  ;;  %v1028_v1 = vrot.slane %v1026_v53, 5  ;;  %v1034_v3 = vrot.slane %v1032_v59, 5  ;;  %v673_v43 = vld [vmem:[%s6940_s22 + $0xb8] sm:$0xf] }
  0x67   : > { %v1641_v2 = vsel %vm6999_vm6, %v1639_v58, %v1640_v48  ;;  %v1038_v4 = vrot.slane %v1036_v60, 4  ;;  %v1042_v5 = vshll.u32 %v668_v44, 16  ;;  %v1021_v7 = vsel %vm7013_vm7, %v1016_v63, %v1020_v45  ;;  %v674_v44 = vld [vmem:[%s6940_s22 + $0xbc] sm:$0x1] }
  0x68   : > { %v5810_v8 = vcombine.low %v1638_v57, %v1641_v2  ;;  %v1029_v9 = vor.u32 %v1028_v1, %v1025_v0  ;;  %v5794_v10 = vrot.slane %v1459_v49, 9  ;;  %v5761_v13 = vcombine.low %v1011_v62, %v1021_v7  ;;  %v1465_v49 = vld [vmem:[%s6940_s22 + $0xb4] sm:$0xe]  ;;  %v1467_v1 = vld [vmem:[%s6940_s22 + $0xbc] sm:$0x1] }
  0x69   : > { %v1039_v14 = vor.u32 %v1038_v4, %v1034_v3  ;;  %v1044_v15 = vrot.slane %v1042_v5, 5  ;;  %v1644_v16 = vrot.slane %v1460_v54, 5  ;;  %v1647_v20 = vrot.slane %v1461_v61, 5  ;;  %v1466_v54 = vld [vmem:[%s6940_s22 + $0xb8] sm:$0xf] }
  0x6a   : > { %6566 = vmatprep.mubr.msk.bf16.mxu0 %vm349_vm1, %v5810_v8  ;;  %v1030_v17 = vrot.slane %v1029_v9, 4  ;;  %v1047_v22 = vshrl.u32 %v669_v6, 16  ;;  %v1050_v23 = vshll.u32 %v669_v6, 16  ;;  %6532 = vmatprep.mubr.msk.bf16.mxu1 %vm349_vm1, %v5761_v13  ;;  %v1056_v19 = vshll.u32 %v670_v11, 16  ;;  %v5895_v6 = vld [vmem:[%s6940_s22 + $0xc] sm:$0xf] }
  0x6b   : > { %v1040_v26 = vrot.slane %v1039_v14, 4  ;;  %v1645_v27 = vsel %vm6999_vm6, %v5794_v10, %v1644_v16  ;;  %v1646_v28 = vrot.slane %v1644_v16, 4  ;;  %v1060_v33 = vshrl.u32 %v670_v11, 16  ;;  %v5896_v11 = vld [vmem:[%s6940_s22 + $0x10] sm:$0xf] }
  0x6c   : > { %v1035_v30 = vsel %vm7013_vm7, %v1030_v17, %v1034_v3  ;;  %v1049_v31 = vrot.slane %v1047_v22, 4  ;;  %v1052_v32 = vrot.slane %v1050_v23, 5  ;;  %v1058_v37 = vrot.slane %v1056_v19, 5  ;;  %v5897_v16 = vld [vmem:[%s6940_s22 + $0x14] sm:$0x1] }
  0x6d   : > { %v1045_v35 = vsel %vm7013_vm7, %v1040_v26, %v1044_v15  ;;  %v1648_v36 = vsel %vm6999_vm6, %v1646_v28, %v1647_v20  ;;  %v1066_v18 = vshll.u32 %v671_v12, 16  ;;  %v1062_v41 = vrot.slane %v1060_v33, 4  ;;  %v5899_v19 = vld [vmem:[%s6940_s22 + $0x1c] sm:$0xf] }
  0x6e   : > { %v5762_v38 = vcombine.low %v1035_v30, %v1045_v35  ;;  %v5811_v39 = vcombine.low %v1645_v27, %v1648_v36  ;;  %v1053_v40 = vor.u32 %v1052_v32, %v1049_v31  ;;  %v5795_v46 = vrot.slane %v1462_v25, 9  ;;  %v5898_v25 = vld [vmem:[%s6940_s22 + $0x18] sm:$0xf]  ;;  %v6831_v30 = vld [vmem:[%s6940_s22 + $0xc] sm:$0xff]  }
  0x6f   : > { %v1068_v45 = vrot.slane %v1066_v18, 5  ;;  %v1651_v47 = vrot.slane %v1463_v21, 5  ;;  %v1654_v48 = vrot.slane %v1464_v29, 5  ;;  %v1063_v51 = vor.u32 %v1062_v41, %v1058_v37  ;;  %v5900_v18 = vld [vmem:[%s6940_s22 + $0x20] sm:$0x1] }
  0x70   : > { %6533 = vmatmul.mubr.msk.bf16.gmra.mxu1 %vm349_vm1, %v5762_v38  ;;  %6567 = vmatmul.mubr.msk.bf16.gmra.mxu0 %vm349_vm1, %v5811_v39  ;;  %v1054_v50 = vrot.slane %v1053_v40, 4  ;;  %v1071_v52 = vshrl.u32 %v672_v34, 16  ;;  %v1074_v53 = vshll.u32 %v672_v34, 16  ;;  %v1080_v59 = vshll.u32 %v673_v43, 16 }
  0x71   : > { %v1652_v57 = vsel %vm6999_vm6, %v5795_v46, %v1651_v47  ;;  %v1653_v58 = vrot.slane %v1651_v47, 4  ;;  %v1084_v60 = vshrl.u32 %v673_v43, 16  ;;  %v1064_v62 = vrot.slane %v1063_v51, 4  ;;  %v5901_v43 = vld [vmem:[%s6940_s22 + $0x24] sm:$0xf] }
  0x72   : > { %v1059_v61 = vsel %vm7013_vm7, %v1054_v50, %v1058_v37  ;;  %v1073_v63 = vrot.slane %v1071_v52, 4  ;;  %v1076_v0 = vrot.slane %v1074_v53, 5  ;;  %v1082_v3 = vrot.slane %v1080_v59, 5  ;;  %v5903_v59 = vld [vmem:[%s6940_s22 + $0x2c] sm:$0x1] }
  0x73   : > { %v1655_v2 = vsel %vm6999_vm6, %v1653_v58, %v1654_v48  ;;  %v1086_v4 = vrot.slane %v1084_v60, 4  ;;  %v1090_v5 = vshll.u32 %v674_v44, 16  ;;  %v1069_v7 = vsel %vm7013_vm7, %v1064_v62, %v1068_v45  ;;  %v5902_v44 = vld [vmem:[%s6940_s22 + $0x28] sm:$0xf] }
  0x74   : > { %v5812_v8 = vcombine.low %v1652_v57, %v1655_v2  ;;  %v1077_v9 = vor.u32 %v1076_v0, %v1073_v63  ;;  %v5796_v10 = vrot.slane %v1465_v49, 9  ;;  %v5763_v12 = vcombine.low %v1059_v61, %v1069_v7  ;;  %v6832_v0 = vld [vmem:[%s6940_s22 + $0x18] sm:$0xff]  }
  0x75   : > { %v1087_v13 = vor.u32 %v1086_v4, %v1082_v3  ;;  %v1092_v14 = vrot.slane %v1090_v5, 5  ;;  %v1658_v15 = vrot.slane %v1466_v54, 5  ;;  %v1661_v20 = vrot.slane %v1467_v1, 5  ;;  %v5904_v5 = vld [vmem:[%s6940_s22 + $0x30] sm:$0xf] }
  0x76   : > { %6570 = vmatprep.mubr.msk.bf16.mxu0 %vm349_vm1, %v5812_v8  ;;  %v1078_v17 = vrot.slane %v1077_v9, 4  ;;  %v2496_v22 = vshrl.u32 %v5895_v6, 16  ;;  %v2499_v23 = vshll.u32 %v5895_v6, 16  ;;  %6536 = vmatprep.mubr.msk.bf16.mxu1 %vm349_vm1, %v5763_v12  ;;  %v2505_v28 = vshll.u32 %v5896_v11, 16 }
  0x77   : > { %v1088_v21 = vrot.slane %v1087_v13, 4  ;;  %v1659_v26 = vsel %vm6999_vm6, %v5796_v10, %v1658_v15  ;;  %v1660_v27 = vrot.slane %v1658_v15, 4  ;;  %v2509_v33 = vshrl.u32 %v5896_v11, 16  ;;  %v6833_v11 = vld [vmem:[%s6940_s22 + $0x24] sm:$0xff]  }
  0x78   : > { %v1083_v29 = vsel %vm7013_vm7, %v1078_v17, %v1082_v3  ;;  %v2498_v31 = vrot.slane %v2496_v22, 4  ;;  %v2501_v32 = vrot.slane %v2499_v23, 5  ;;  %v2507_v36 = vrot.slane %v2505_v28, 5 }
  0x79   : > { %v1093_v34 = vsel %vm7013_vm7, %v1088_v21, %v1092_v14  ;;  %v1662_v35 = vsel %vm6999_vm6, %v1660_v27, %v1661_v20  ;;  %v2515_v37 = vshll.u32 %v5897_v16, 16  ;;  %v2511_v41 = vrot.slane %v2509_v33, 4  ;;  %v5905_v14 = vld [vmem:[%s6940_s22 + $0x34] sm:$0xf] }
  0x7a   : > { %v5764_v38 = vcombine.low %v1083_v29, %v1093_v34  ;;  %v5813_v39 = vcombine.low %v1659_v26, %v1662_v35  ;;  %v2502_v40 = vor.u32 %v2501_v32, %v2498_v31  ;;  %v2520_v46 = vshrl.u32 %v5898_v25, 16  ;;  %v5908_v35 = vld [vmem:[%s6940_s22 + $0x40] sm:$0xf] }
  0x7b   : > { %v2517_v45 = vrot.slane %v2515_v37, 5  ;;  %v2523_v47 = vshll.u32 %v5898_v25, 16  ;;  %v2529_v48 = vshll.u32 %v5899_v19, 16  ;;  %v2512_v50 = vor.u32 %v2511_v41, %v2507_v36  ;;  %v5906_v25 = vld [vmem:[%s6940_s22 + $0x38] sm:$0x1] }
  0x7c   : > { %6537 = vmatmul.mubr.msk.bf16.gmra.mxu1 %vm349_vm1, %v5764_v38  ;;  %6571 = vmatmul.mubr.msk.bf16.gmra.mxu0 %vm349_vm1, %v5813_v39  ;;  %v2503_v49 = vrot.slane %v2502_v40, 4  ;;  %v2533_v51 = vshrl.u32 %v5899_v19, 16  ;;  %v2539_v52 = vshll.u32 %v5900_v18, 16  ;;  %v2522_v53 = vrot.slane %v2520_v46, 4  ;;  %v5909_v39 = vld [vmem:[%s6940_s22 + $0x44] sm:$0x1] }
  0x7d   : > { %6576 = vmatprep.mubr.msk.bf16.mxu1 %vm349_vm1, %v6831_v30  ;;  %v2525_v54 = vrot.slane %v2523_v47, 5  ;;  %v2531_v57 = vrot.slane %v2529_v48, 5  ;;  %v3970_v58 = vsel %vm398_vm0, %v7221_v56, 0  ;;  %v2513_v61 = vrot.slane %v2512_v50, 4  ;;  %v5907_v30 = vld [vmem:[%s6940_s22 + $0x3c] sm:$0xf] }
  0x7e   : > { %v2508_v60 = vsel %vm7013_vm7, %v2503_v49, %v2507_v36  ;;  %v2535_v62 = vrot.slane %v2533_v51, 4  ;;  %v2541_v63 = vrot.slane %v2539_v52, 5  ;;  %v2544_v2 = vshrl.u32 %v5901_v43, 16  ;;  %v5910_v49 = vld [vmem:[%s6940_s22 + $0x48] sm:$0xf]  ;;  %v6835_v52 = vld [vmem:[%s6940_s22 + $0x3c] sm:$0xff]  }
  0x7f   : > { %v2526_v1 = vor.u32 %v2525_v54, %v2522_v53  ;;  %v2547_v3 = vshll.u32 %v5901_v43, 16  ;;  %v2553_v4 = vshll.u32 %v5902_v44, 16  ;;  %v2518_v6 = vsel %vm7013_vm7, %v2513_v61, %v2517_v45  ;;  %v6834_v45 = vld [vmem:[%s6940_s22 + $0x30] sm:$0xff]  }
  0x80   : > { %v2536_v7 = vor.u32 %v2535_v62, %v2531_v57  ;;  %v2557_v56 = vshrl.u32 %v5902_v44, 16  ;;  %v2563_v8 = vshll.u32 %v5903_v59, 16  ;;  %v5944_v9 = vcombine.low %v2508_v60, %v2518_v6 }
  0x81   : > { %v2527_v10 = vrot.slane %v2526_v1, 4  ;;  %v2546_v12 = vrot.slane %v2544_v2, 4  ;;  %v2549_v13 = vrot.slane %v2547_v3, 5  ;;  %v2555_v16 = vrot.slane %v2553_v4, 5 }
  0x82   : > { %v2537_v15 = vrot.slane %v2536_v7, 4  ;;  %v2559_v17 = vrot.slane %v2557_v56, 4  ;;  %v2565_v20 = vrot.slane %v2563_v8, 5  ;;  %6610 = vmatprep.mubr.msk.bf16.mxu0 %vm349_vm1, %v5944_v9  ;;  %v2568_v21 = vshrl.u32 %v5904_v5, 16  ;;  %v5913_v7 = vld [vmem:[%s6940_s22 + $0x54] sm:$0xf] }
  0x83   : > { %v2532_v22 = vsel %vm7013_vm7, %v2527_v10, %v2531_v57  ;;  %v2550_v23 = vor.u32 %v2549_v13, %v2546_v12  ;;  %v2571_v26 = vshll.u32 %v5904_v5, 16  ;;  %v2577_v19 = vshll.u32 %v5905_v14, 16  ;;  %v5911_v57 = vld [vmem:[%s6940_s22 + $0x4c] sm:$0xf] }
  0x84   : > { %6577 = vmatmul.mubr.msk.bf16.vlgmr.msra.gmra.mxu1 %vm349_vm1, %v6832_v0  ;;  %v2542_v27 = vsel %vm7013_vm7, %v2537_v15, %v2541_v63  ;;  %v2560_v28 = vor.u32 %v2559_v17, %v2555_v16  ;;  %v2581_v29 = vshrl.u32 %v5905_v14, 16  ;;  %v2570_v33 = vrot.slane %v2568_v21, 4  ;;  %v5912_v0 = vld [vmem:[%s6940_s22 + $0x50] sm:$0x1]  ;;  %v6836_v13 = vld [vmem:[%s6940_s22 + $0x48] sm:$0xff]  }
  0x85   : > { %v5945_v31 = vcombine.low %v2532_v22, %v2542_v27  ;;  %6643 = vmatpush3.bf16.msra.mxu1 %v6988_v24  ;;  %6580 = vmatprep.mubr.msk.bf16.mxu1 %vm349_vm1, %v6833_v11  ;;  %v2551_v32 = vrot.slane %v2550_v23, 4  ;;  %v2573_v34 = vrot.slane %v2571_v26, 5  ;;  %v2579_v37 = vrot.slane %v2577_v19, 5  ;;  %v5914_v11 = vld [vmem:[%s6940_s22 + $0x58] sm:$0xf] }
  0x86   : > { %v2561_v36 = vrot.slane %v2560_v28, 4  ;;  %v2583_v18 = vrot.slane %v2581_v29, 4  ;;  %v2587_v38 = vshll.u32 %v5906_v25, 16  ;;  %v2592_v41 = vshrl.u32 %v5907_v30, 16  ;;  %v6837_v22 = vld [vmem:[%s6940_s22 + $0x54] sm:$0xff]  }
  0x87   : > { %6611 = vmatmul.mubr.msk.bf16.vlgmr.msra.gmra.mxu0 %vm349_vm1, %v5945_v31  ;;  %v2556_v40 = vsel %vm7013_vm7, %v2551_v32, %v2555_v16  ;;  %v2574_v24 = vor.u32 %v2573_v34, %v2570_v33  ;;  %v2595_v43 = vshll.u32 %v5907_v30, 16  ;;  %v2601_v48 = vshll.u32 %v5908_v35, 16  ;;  %v5915_v23 = vld [vmem:[%s6940_s22 + $0x5c] sm:$0x1]  ;;  %v5916_v29 = vld [vmem:[%s6940_s22 + $0x60] sm:$0xf] }
  0x88   : > { %6677 = vmatpush3.bf16.msra.mxu0 %v3970_v58  ;;  %v2566_v44 = vsel %vm7013_vm7, %v2561_v36, %v2565_v20  ;;  %v2584_v46 = vor.u32 %v2583_v18, %v2579_v37  ;;  %v2589_v47 = vrot.slane %v2587_v38, 5  ;;  %v2594_v53 = vrot.slane %v2592_v41, 4  ;;  %v5917_v34 = vld [vmem:[%s6940_s22 + $0x64] sm:$0xf]  ;;  %v5918_v41 = vld [vmem:[%s6940_s22 + $0x68] sm:$0x1] }
  0x89   : > { %v5946_v50 = vcombine.low %v2556_v40, %v2566_v44  ;;  %v2575_v51 = vrot.slane %v2574_v24, 4  ;;  %v2597_v54 = vrot.slane %v2595_v43, 5  ;;  %v2603_v60 = vrot.slane %v2601_v48, 5  ;;  %v5919_v43 = vld [vmem:[%s6940_s22 + $0x6c] sm:$0xf] }
  0x8a   : > { %v2585_v59 = vrot.slane %v2584_v46, 4  ;;  %v2605_v61 = vshrl.u32 %v5908_v35, 16  ;;  %v2611_v58 = vshll.u32 %v5909_v39, 16  ;;  %v2616_v1 = vshrl.u32 %v5910_v49, 16  ;;  %v5920_v48 = vld [vmem:[%s6940_s22 + $0x70] sm:$0xf] }
  0x8b   : > { %6614 = vmatprep.mubr.msk.bf16.mxu0 %vm349_vm1, %v5946_v50  ;;  %v2580_v62 = vsel %vm7013_vm7, %v2575_v51, %v2579_v37  ;;  %v2598_v63 = vor.u32 %v2597_v54, %v2594_v53  ;;  %v2619_v2 = vshll.u32 %v5910_v49, 16  ;;  %v2625_v6 = vshll.u32 %v5911_v57, 16 }
  0x8c   : > { %6581 = vmatmul.mubr.msk.bf16.gmra.mxu1 %vm349_vm1, %v6834_v45  ;;  %v2590_v3 = vsel %vm7013_vm7, %v2585_v59, %v2589_v47  ;;  %v2607_v4 = vrot.slane %v2605_v61, 4  ;;  %v2613_v5 = vrot.slane %v2611_v58, 5  ;;  %v2618_v9 = vrot.slane %v2616_v1, 4 }
  0x8d   : > { %v5947_v56 = vcombine.low %v2580_v62, %v2590_v3  ;;  %6584 = vmatprep.mubr.msk.bf16.mxu1 %vm349_vm1, %v6835_v52  ;;  %v2599_v8 = vrot.slane %v2598_v63, 4  ;;  %v2621_v10 = vrot.slane %v2619_v2, 5  ;;  %v2627_v14 = vrot.slane %v2625_v6, 5  ;;  %v6838_v63 = vld [vmem:[%s6940_s22 + $0x60] sm:$0xff]   ;;  %v5921_v3 = vld [vmem:[%s6940_s22 + $0x74] sm:$0x1] }
  0x8e   : > { %v2608_v12 = vor.u32 %v2607_v4, %v2603_v60  ;;  %v2629_v15 = vshrl.u32 %v5911_v57, 16  ;;  %v2635_v16 = vshll.u32 %v5912_v0, 16  ;;  %v2640_v25 = vshrl.u32 %v5913_v7, 16  ;;  %v6839_v6 = vld [vmem:[%s6940_s22 + $0x6c] sm:$0xff]  }
  0x8f   : > { %6615 = vmatmul.mubr.msk.bf16.gmra.mxu0 %vm349_vm1, %v5947_v56  ;;  %v2604_v17 = vsel %vm7013_vm7, %v2599_v8, %v2603_v60  ;;  %v2622_v20 = vor.u32 %v2621_v10, %v2618_v9  ;;  %v2643_v21 = vshll.u32 %v5913_v7, 16  ;;  %v2649_v19 = vshll.u32 %v5914_v11, 16  ;;  %v5922_v9 = vld [vmem:[%s6940_s22 + $0x78] sm:$0xf] }
  0x90   : > { %v2609_v26 = vrot.slane %v2608_v12, 4  ;;  %v2631_v27 = vrot.slane %v2629_v15, 4  ;;  %v2637_v28 = vrot.slane %v2635_v16, 5  ;;  %v2642_v31 = vrot.slane %v2640_v25, 4 }
  0x91   : > { %v2623_v30 = vrot.slane %v2622_v20, 4  ;;  %v2645_v32 = vrot.slane %v2643_v21, 5  ;;  %v2653_v33 = vshrl.u32 %v5914_v11, 16  ;;  %v2651_v37 = vrot.slane %v2649_v19, 5 }
  0x92   : > { %v2614_v35 = vsel %vm7013_vm7, %v2609_v26, %v2613_v5  ;;  %v2632_v36 = vor.u32 %v2631_v27, %v2627_v14  ;;  %v2659_v18 = vshll.u32 %v5915_v23, 16  ;;  %v2664_v46 = vshrl.u32 %v5916_v29, 16 }
  0x93   : > { %v5948_v38 = vcombine.low %v2604_v17, %v2614_v35  ;;  %v2628_v39 = vsel %vm7013_vm7, %v2623_v30, %v2627_v14  ;;  %v2646_v40 = vor.u32 %v2645_v32, %v2642_v31  ;;  %v2655_v24 = vrot.slane %v2653_v33, 4  ;;  %v5923_v14 = vld [vmem:[%s6940_s22 + $0x7c] sm:$0xf]  ;;  %v5925_v30 = vld [vmem:[%s6940_s22 + $0x84] sm:$0xf] }
  0x94   : > { %6585 = vmatmul.mubr.msk.bf16.gmra.mxu1 %vm349_vm1, %v6836_v13  ;;  %v2633_v44 = vrot.slane %v2632_v36, 4  ;;  %v2661_v45 = vrot.slane %v2659_v18, 5  ;;  %v2667_v47 = vshll.u32 %v5916_v29, 16  ;;  %v2673_v51 = vshll.u32 %v5917_v34, 16  ;;  %v7370_v31 = vld [vmem:[%s8598_s1 + $0xe] sm:$0x3] }
  0x95   : > { %6618 = vmatprep.mubr.msk.bf16.mxu0 %vm349_vm1, %v5948_v38  ;;  %6588 = vmatprep.mubr.msk.bf16.mxu1 %vm349_vm1, %v6837_v22  ;;  %v2647_v49 = vrot.slane %v2646_v40, 4  ;;  %v2656_v50 = vor.u32 %v2655_v24, %v2651_v37  ;;  %v2677_v52 = vshrl.u32 %v5917_v34, 16  ;;  %v2666_v54 = vrot.slane %v2664_v46, 4  ;;  %v5924_v22 = vld [vmem:[%s6940_s22 + $0x80] sm:$0x1]  ;;  %v6841_v46 = vld [vmem:[%s6940_s22 + $0x84] sm:$0xff]  }
  0x96   : > { %v2638_v53 = vsel %vm7013_vm7, %v2633_v44, %v2637_v28  ;;  %v2669_v57 = vrot.slane %v2667_v47, 5  ;;  %v2683_v59 = vshll.u32 %v5918_v41, 16  ;;  %v2675_v62 = vrot.slane %v2673_v51, 5  ;;  %v5926_v36 = vld [vmem:[%s6940_s22 + $0x88] sm:$0xf]  ;;  %6788 = vmatprep.subr.msk.bf16.mxu1 %vm398_vm0, %v7370_v31 }
  0x97   : > { %v5949_v60 = vcombine.low %v2628_v39, %v2638_v53  ;;  %v2652_v61 = vsel %vm7013_vm7, %v2647_v49, %v2651_v37  ;;  %v2657_v58 = vrot.slane %v2656_v50, 4  ;;  %v2679_v1 = vrot.slane %v2677_v52, 4  ;;  %v6840_v39 = vld [vmem:[%s6940_s22 + $0x78] sm:$0xff]   ;;  %v5927_v24 = vld [vmem:[%s6940_s22 + $0x8c] sm:$0x1] }
  0x98   : > { %v2670_v0 = vor.u32 %v2669_v57, %v2666_v54  ;;  %v2685_v2 = vrot.slane %v2683_v59, 5  ;;  %v2688_v4 = vshrl.u32 %v5919_v43, 16  ;;  %v2691_v7 = vshll.u32 %v5919_v43, 16  ;;  %v5928_v41 = vld [vmem:[%s6940_s22 + $0x90] sm:$0xf] }
  0x99   : > { %6619 = vmatmul.mubr.msk.bf16.gmra.mxu0 %vm349_vm1, %v5949_v60  ;;  %v2662_v5 = vsel %vm7013_vm7, %v2657_v58, %v2661_v45  ;;  %v2697_v56 = vshll.u32 %v5920_v48, 16  ;;  %v2701_v8 = vshrl.u32 %v5920_v48, 16  ;;  %v2680_v12 = vor.u32 %v2679_v1, %v2675_v62  ;;  %v7389_v52 = vld [vmem:[%s8598_s1 + $0x10] sm:$0x3]  ;;  %v5929_v60 = vld [vmem:[%s6940_s22 + $0x94] sm:$0xf] }
  0x9a   : > { %v5950_v10 = vcombine.low %v2652_v61, %v2662_v5  ;;  %v2671_v11 = vrot.slane %v2670_v0, 4  ;;  %v2690_v13 = vrot.slane %v2688_v4, 4  ;;  %v2693_v15 = vrot.slane %v2691_v7, 5  ;;  %6789 = vmatprep.subr.msk.bf16.mxu0 %vm398_vm0, %v7389_v52  ;;  %v5930_v0 = vld [vmem:[%s6940_s22 + $0x98] sm:$0x1] }
  0x9b   : > { %v2699_v16 = vrot.slane %v2697_v56, 5  ;;  %v2703_v17 = vrot.slane %v2701_v8, 4  ;;  %v2707_v20 = vshll.u32 %v5921_v3, 16  ;;  %v2681_v25 = vrot.slane %v2680_v12, 4  ;;  %v5931_v1 = vld [vmem:[%s6940_s22 + $0x9c] sm:$0xf] }
  0x9c   : > { %6622 = vmatprep.mubr.msk.bf16.mxu0 %vm349_vm1, %v5950_v10  ;;  %6589 = vmatmul.mubr.msk.bf16.gmra.mxu1 %vm349_vm1, %v6838_v63  ;;  %v2676_v23 = vsel %vm7013_vm7, %v2671_v11, %v2675_v62  ;;  %v2712_v21 = vshrl.u32 %v5922_v9, 16  ;;  %v2715_v26 = vshll.u32 %v5922_v9, 16  ;;  %v2694_v27 = vor.u32 %v2693_v15, %v2690_v13 }
  0x9d   : > { %6592 = vmatprep.mubr.msk.bf16.mxu1 %vm349_vm1, %v6839_v6  ;;  %v2704_v28 = vor.u32 %v2703_v17, %v2699_v16  ;;  %v2709_v19 = vrot.slane %v2707_v20, 5  ;;  %v2721_v29 = vshll.u32 %v5923_v14, 16  ;;  %v2686_v32 = vsel %vm7013_vm7, %v2681_v25, %v2685_v2  ;;  %v6843_v20 = vld [vmem:[%s6940_s22 + $0x9c] sm:$0xff]  }
  0x9e   : > { %v2714_v33 = vrot.slane %v2712_v21, 4  ;;  %v2717_v34 = vrot.slane %v2715_v26, 5  ;;  %v2725_v35 = vshrl.u32 %v5923_v14, 16  ;;  %v5951_v37 = vcombine.low %v2676_v23, %v2686_v32 }
  0x9f   : > { %v2695_v18 = vrot.slane %v2694_v27, 4  ;;  %v2705_v38 = vrot.slane %v2704_v28, 4  ;;  %v2723_v40 = vrot.slane %v2721_v29, 5  ;;  %v2731_v45 = vshll.u32 %v5924_v22, 16  ;;  %v5932_v22 = vld [vmem:[%s6940_s22 + $0xa0] sm:$0xf] }
  0xa0   : > { %v2718_v43 = vor.u32 %v2717_v34, %v2714_v33  ;;  %v2727_v44 = vrot.slane %v2725_v35, 4  ;;  %v2736_v47 = vshrl.u32 %v5925_v30, 16  ;;  %v2739_v50 = vshll.u32 %v5925_v30, 16  ;;  %v5933_v29 = vld [vmem:[%s6940_s22 + $0xa4] sm:$0x1] }
  0xa1   : > { %6623 = vmatmul.mubr.msk.bf16.gmra.mxu0 %vm349_vm1, %v5951_v37  ;;  %v2700_v48 = vsel %vm7013_vm7, %v2695_v18, %v2699_v16  ;;  %v2710_v49 = vsel %vm7013_vm7, %v2705_v38, %v2709_v19  ;;  %v2745_v51 = vshll.u32 %v5926_v36, 16  ;;  %v2733_v59 = vrot.slane %v2731_v45, 5  ;;  %v6842_v16 = vld [vmem:[%s6940_s22 + $0x90] sm:$0xff]  }
  0xa2   : > { %v5952_v53 = vcombine.low %v2700_v48, %v2710_v49  ;;  %v2719_v54 = vrot.slane %v2718_v43, 4  ;;  %v2728_v57 = vor.u32 %v2727_v44, %v2723_v40  ;;  %v2738_v61 = vrot.slane %v2736_v47, 4  ;;  %v5936_v48 = vld [vmem:[%s6940_s22 + $0xb0] sm:$0x1] }
  0xa3   : > { %v2741_v58 = vrot.slane %v2739_v50, 5  ;;  %v2747_v62 = vrot.slane %v2745_v51, 5  ;;  %v2749_v63 = vshrl.u32 %v5926_v36, 16  ;;  %v2755_v4 = vshll.u32 %v5927_v24, 16  ;;  %v5934_v36 = vld [vmem:[%s6940_s22 + $0xa8] sm:$0xf] }
  0xa4   : > { %6626 = vmatprep.mubr.msk.bf16.mxu0 %vm349_vm1, %v5952_v53  ;;  %6593 = vmatmul.mubr.msk.bf16.gmra.mxu1 %vm349_vm1, %v6840_v39  ;;  %v2724_v2 = vsel %vm7013_vm7, %v2719_v54, %v2723_v40  ;;  %v2729_v3 = vrot.slane %v2728_v57, 4  ;;  %v2760_v5 = vshrl.u32 %v5928_v41, 16  ;;  %v2763_v56 = vshll.u32 %v5928_v41, 16  ;;  %v5935_v40 = vld [vmem:[%s6940_s22 + $0xac] sm:$0xf] }
  0xa5   : > { %6596 = vmatprep.mubr.msk.bf16.mxu1 %vm349_vm1, %v6841_v46  ;;  %v2742_v6 = vor.u32 %v2741_v58, %v2738_v61  ;;  %v2751_v7 = vrot.slane %v2749_v63, 4  ;;  %v2769_v8 = vshll.u32 %v5929_v60, 16  ;;  %v2757_v10 = vrot.slane %v2755_v4, 5  ;;  %v6844_v53 = vld [vmem:[%s6940_s22 + $0xa8] sm:$0xff]   ;;  %v5938_v63 = vld [vmem:[%s6940_s22 + $0xb8] sm:$0xf] }
  0xa6   : > { %v2734_v9 = vsel %vm7013_vm7, %v2729_v3, %v2733_v59  ;;  %v2762_v11 = vrot.slane %v2760_v5, 4  ;;  %v2773_v12 = vshrl.u32 %v5929_v60, 16  ;;  %v2765_v17 = vrot.slane %v2763_v56, 5  ;;  %v5937_v59 = vld [vmem:[%s6940_s22 + $0xb4] sm:$0xf] }
  0xa7   : > { %v5953_v13 = vcombine.low %v2724_v2, %v2734_v9  ;;  %v2743_v14 = vrot.slane %v2742_v6, 4  ;;  %v2752_v15 = vor.u32 %v2751_v7, %v2747_v62  ;;  %v2771_v23 = vrot.slane %v2769_v8, 5  ;;  %v6845_v6 = vld [vmem:[%s6940_s22 + $0xb4] sm:$0xff]   ;;  %v5939_v7 = vld [vmem:[%s6940_s22 + $0xbc] sm:$0x1] }
  0xa8   : > { %v2775_v25 = vrot.slane %v2773_v12, 4  ;;  %v2779_v21 = vshll.u32 %v5930_v0, 16  ;;  %v2784_v26 = vshrl.u32 %v5931_v1, 16  ;;  %v2766_v19 = vor.u32 %v2765_v17, %v2762_v11 }
  0xa9   : > { %6627 = vmatmul.mubr.msk.bf16.gmra.mxu0 %vm349_vm1, %v5953_v13  ;;  %v2748_v27 = vsel %vm7013_vm7, %v2743_v14, %v2747_v62  ;;  %v2753_v28 = vrot.slane %v2752_v15, 4  ;;  %v2787_v30 = vshll.u32 %v5931_v1, 16  ;;  %v2793_v35 = vshll.u32 %v5932_v22, 16  ;;  %v5940_v13 = vld [vmem:[%s6940_s22 + $0xc0] sm:$0xf] }
  0xaa   : > { %v2776_v32 = vor.u32 %v2775_v25, %v2771_v23  ;;  %v2781_v33 = vrot.slane %v2779_v21, 5  ;;  %v2786_v34 = vrot.slane %v2784_v26, 4  ;;  %v2767_v18 = vrot.slane %v2766_v19, 4  ;;  %v5942_v26 = vld [vmem:[%s6940_s22 + $0xc8] sm:$0x1] }
  0xab   : > { %v2758_v37 = vsel %vm7013_vm7, %v2753_v28, %v2757_v10  ;;  %v2789_v38 = vrot.slane %v2787_v30, 5  ;;  %v2797_v39 = vshrl.u32 %v5932_v22, 16  ;;  %v2795_v43 = vrot.slane %v2793_v35, 5  ;;  %v5976_v30 = vld [vmem:[%s6940_s22 + $0xc] sm:$0xe] }
  0xac   : > { %v5954_v24 = vcombine.low %v2748_v27, %v2758_v37  ;;  %6597 = vmatmul.mubr.msk.bf16.gmra.mxu1 %vm349_vm1, %v6842_v16  ;;  %v2777_v41 = vrot.slane %v2776_v32, 4  ;;  %v2803_v44 = vshll.u32 %v5933_v29, 16  ;;  %v2772_v45 = vsel %vm7013_vm7, %v2767_v18, %v2771_v23  ;;  %v5977_v32 = vld [vmem:[%s6940_s22 + $0x10] sm:$0xf]  ;;  %v5978_v37 = vld [vmem:[%s6940_s22 + $0x14] sm:$0x1] }
  0xad   : > { %6600 = vmatprep.mubr.msk.bf16.mxu1 %vm349_vm1, %v6843_v20  ;;  %v2790_v46 = vor.u32 %v2789_v38, %v2786_v34  ;;  %v2799_v47 = vrot.slane %v2797_v39, 4  ;;  %v2808_v49 = vshrl.u32 %v5934_v36, 16  ;;  %v2811_v54 = vshll.u32 %v5934_v36, 16  ;;  %v5941_v20 = vld [vmem:[%s6940_s22 + $0xc4] sm:$0xf] }
  0xae   : > { %6630 = vmatprep.mubr.msk.bf16.mxu0 %vm349_vm1, %v5954_v24  ;;  %v2782_v50 = vsel %vm7013_vm7, %v2777_v41, %v2781_v33  ;;  %v2805_v51 = vrot.slane %v2803_v44, 5  ;;  %v2817_v57 = vshll.u32 %v5935_v40, 16  ;;  %v2821_v2 = vshrl.u32 %v5935_v40, 16  ;;  %v5979_v24 = vld [vmem:[%s6940_s22 + $0x18] sm:$0xe] }
  0xaf   : > { %v5955_v60 = vcombine.low %v2772_v45, %v2782_v50  ;;  %v2791_v61 = vrot.slane %v2790_v46, 4  ;;  %v2800_v58 = vor.u32 %v2799_v47, %v2795_v43  ;;  %v2810_v62 = vrot.slane %v2808_v49, 4  ;;  %v5980_v47 = vld [vmem:[%s6940_s22 + $0x1c] sm:$0xf] }
  0xb0   : > { %v2813_v0 = vrot.slane %v2811_v54, 5  ;;  %v2819_v1 = vrot.slane %v2817_v57, 5  ;;  %v2827_v3 = vshll.u32 %v5936_v48, 16  ;;  %v2832_v56 = vshrl.u32 %v5937_v59, 16  ;;  %v5981_v48 = vld [vmem:[%s6940_s22 + $0x20] sm:$0x1] }
  0xb1   : > { %6631 = vmatmul.mubr.msk.bf16.gmra.mxu0 %vm349_vm1, %v5955_v60  ;;  %v2796_v4 = vsel %vm7013_vm7, %v2791_v61, %v2795_v43  ;;  %v2801_v5 = vrot.slane %v2800_v58, 4  ;;  %v2835_v8 = vshll.u32 %v5937_v59, 16  ;;  %v2823_v10 = vrot.slane %v2821_v2, 4  ;;  %v6846_v43 = vld [vmem:[%s6940_s22 + $0xc0] sm:$0xff]   ;;  %v5983_v58 = vld [vmem:[%s6940_s22 + $0x28] sm:$0xf] }
  0xb2   : > { %v2814_v9 = vor.u32 %v2813_v0, %v2810_v62  ;;  %v2829_v11 = vrot.slane %v2827_v3, 5  ;;  %v2841_v12 = vshll.u32 %v5938_v63, 16  ;;  %v2834_v15 = vrot.slane %v2832_v56, 4  ;;  %v5982_v54 = vld [vmem:[%s6940_s22 + $0x24] sm:$0xe] }
  0xb3   : > { %v2806_v14 = vsel %vm7013_vm7, %v2801_v5, %v2805_v51  ;;  %v2837_v16 = vrot.slane %v2835_v8, 5  ;;  %v2845_v17 = vshrl.u32 %v5938_v63, 16  ;;  %v2824_v25 = vor.u32 %v2823_v10, %v2819_v1  ;;  %v5984_v2 = vld [vmem:[%s6940_s22 + $0x2c] sm:$0x1]  ;;  %v5985_v3 = vld [vmem:[%s6940_s22 + $0x30] sm:$0xe] }
  0xb4   : > { %v5956_v22 = vcombine.low %v2796_v4, %v2806_v14  ;;  %6601 = vmatmul.mubr.msk.bf16.gmra.mxu1 %vm349_vm1, %v6844_v53  ;;  %v2815_v23 = vrot.slane %v2814_v9, 4  ;;  %v2843_v21 = vrot.slane %v2841_v12, 5  ;;  %v2851_v19 = vshll.u32 %v5939_v7, 16  ;;  %v5987_v12 = vld [vmem:[%s6940_s22 + $0x38] sm:$0x1] }
  0xb5   : > { %6604 = vmatprep.mubr.msk.bf16.mxu1 %vm349_vm1, %v6845_v6  ;;  %v2838_v27 = vor.u32 %v2837_v16, %v2834_v15  ;;  %v2847_v28 = vrot.slane %v2845_v17, 4  ;;  %v2856_v29 = vshrl.u32 %v5940_v13, 16  ;;  %v2825_v34 = vrot.slane %v2824_v25, 4  ;;  %v6847_v16 = vld [vmem:[%s6940_s22 + $0x18] sm:$0xff]  }
  0xb6   : > { %6634 = vmatprep.mubr.msk.bf16.mxu0 %vm349_vm1, %v5956_v22  ;;  %v2820_v33 = vsel %vm7013_vm7, %v2815_v23, %v2819_v1  ;;  %v2859_v35 = vshll.u32 %v5940_v13, 16  ;;  %v2865_v36 = vshll.u32 %v5941_v20, 16  ;;  %v2853_v39 = vrot.slane %v2851_v19, 5  ;;  %v5988_v13 = vld [vmem:[%s6940_s22 + $0x3c] sm:$0xe] }
  0xb7   : > { %v2839_v18 = vrot.slane %v2838_v27, 4  ;;  %v2848_v38 = vor.u32 %v2847_v28, %v2843_v21  ;;  %v2858_v40 = vrot.slane %v2856_v29, 4  ;;  %v2830_v41 = vsel %vm7013_vm7, %v2825_v34, %v2829_v11  ;;  %v5986_v11 = vld [vmem:[%s6940_s22 + $0x34] sm:$0xf]  ;;  %v5989_v22 = vld [vmem:[%s6940_s22 + $0x40] sm:$0xf] }
  0xb8   : > { %v2861_v44 = vrot.slane %v2859_v35, 5  ;;  %v2867_v45 = vrot.slane %v2865_v36, 5  ;;  %v2869_v46 = vshrl.u32 %v5941_v20, 16  ;;  %v5957_v49 = vcombine.low %v2820_v33, %v2830_v41  ;;  %v5990_v23 = vld [vmem:[%s6940_s22 + $0x44] sm:$0x1] }
  0xb9   : > { %v2844_v50 = vsel %vm7013_vm7, %v2839_v18, %v2843_v21  ;;  %v2849_v51 = vrot.slane %v2848_v38, 4  ;;  %v2875_v53 = vshll.u32 %v5942_v26, 16  ;;  %v6024_v60 = vrot.slane %v5976_v30, 9  ;;  %v5992_v28 = vld [vmem:[%s6940_s22 + $0x4c] sm:$0xf] }
  0xba   : > { %v2862_v57 = vor.u32 %v2861_v44, %v2858_v40  ;;  %v2871_v59 = vrot.slane %v2869_v46, 4  ;;  %v3335_v61 = vrot.slane %v5977_v32, 5  ;;  %6635 = vmatmul.mubr.msk.bf16.gmra.mxu0 %vm349_vm1, %v5957_v49  ;;  %v3338_v0 = vrot.slane %v5978_v37, 5  ;;  %v5993_v32 = vld [vmem:[%s6940_s22 + $0x50] sm:$0x1] }
  0xbb   : > { %v2854_v62 = vsel %vm7013_vm7, %v2849_v51, %v2853_v39  ;;  %v2877_v63 = vrot.slane %v2875_v53, 5  ;;  %v6025_v1 = vrot.slane %v5979_v24, 9  ;;  %v3342_v8 = vrot.slane %v5980_v47, 5  ;;  %v5994_v37 = vld [vmem:[%s6940_s22 + $0x54] sm:$0xe] }
  0xbc   : > { %v5958_v4 = vcombine.low %v2844_v50, %v2854_v62  ;;  %6605 = vmatmul.mubr.msk.bf16.gmra.mxu1 %vm349_vm1, %v6846_v43  ;;  %v2863_v5 = vrot.slane %v2862_v57, 4  ;;  %v2872_v6 = vor.u32 %v2871_v59, %v2867_v45  ;;  %v3336_v7 = vsel %vm6999_vm6, %v6024_v60, %v3335_v61  ;;  %v5995_v18 = vld [vmem:[%s6940_s22 + $0x58] sm:$0xf]  ;;  %v5996_v41 = vld [vmem:[%s6940_s22 + $0x5c] sm:$0x1]  ;;  %v6848_v59 = vld [vmem:[%s6940_s22 + $0x24] sm:$0xff]  }
  0xbd   : > { %v3337_v56 = vrot.slane %v3335_v61, 4  ;;  %v3345_v9 = vrot.slane %v5981_v48, 5  ;;  %v4760_v10 = vsel %vm398_vm0, %v7370_v31, 0  ;;  %v7472_v17 = vsel %vm398_vm0, %v7389_v52, 0  ;;  %v5991_v31 = vld [vmem:[%s6940_s22 + $0x48] sm:$0xe] }
  0xbe   : > { %6638 = vmatprep.mubr.msk.bf16.mxu0 %vm349_vm1, %v5958_v4  ;;  %v2868_v14 = vsel %vm7013_vm7, %v2863_v5, %v2867_v45  ;;  %v2873_v15 = vrot.slane %v2872_v6, 4  ;;  %v6026_v20 = vrot.slane %v5982_v54, 9  ;;  %v3343_v21 = vsel %vm6999_vm6, %v6025_v1, %v3342_v8  ;;  %v5997_v43 = vld [vmem:[%s6940_s22 + $0x60] sm:$0xe]  ;;  %v5998_v53 = vld [vmem:[%s6940_s22 + $0x64] sm:$0xf] }
  0xbf   : > { %v3339_v25 = vsel %vm6999_vm6, %v3337_v56, %v3338_v0  ;;  %v3344_v26 = vrot.slane %v3342_v8, 4  ;;  %v3349_v27 = vrot.slane %v5983_v58, 5  ;;  %v3352_v29 = vrot.slane %v5984_v2, 5  ;;  %v5999_v54 = vld [vmem:[%s6940_s22 + $0x68] sm:$0x1] }
  0xc0   : > { %v2878_v19 = vsel %vm7013_vm7, %v2873_v15, %v2877_v63  ;;  %v6041_v52 = vcombine.low %v3336_v7, %v3339_v25  ;;  %v6027_v30 = vrot.slane %v5985_v3, 9  ;;  %v3356_v39 = vrot.slane %v5986_v11, 5  ;;  %v6000_v57 = vld [vmem:[%s6940_s22 + $0x6c] sm:$0xe]  ;;  %v6001_v63 = vld [vmem:[%s6940_s22 + $0x70] sm:$0xf] }
  0xc1   : > { %v5959_v33 = vcombine.low %v2868_v14, %v2878_v19  ;;  %v3346_v34 = vsel %vm6999_vm6, %v3344_v26, %v3345_v9  ;;  %v3350_v35 = vsel %vm6999_vm6, %v6026_v20, %v3349_v27  ;;  %v3351_v36 = vrot.slane %v3349_v27, 4  ;;  %v6002_v0 = vld [vmem:[%s6940_s22 + $0x74] sm:$0x1]  ;;  %v6003_v1 = vld [vmem:[%s6940_s22 + $0x78] sm:$0xe] }
  0xc2   : > { %6644 = vmatprep.mubr.msk.bf16.mxu1 %vm349_vm1, %v6041_v52  ;;  %v6042_v38 = vcombine.low %v3343_v21, %v3346_v34  ;;  %v3359_v40 = vrot.slane %v5987_v12, 5  ;;  %v6028_v24 = vrot.slane %v5988_v13, 9  ;;  %v3363_v45 = vrot.slane %v5989_v22, 5  ;;  %v6004_v6 = vld [vmem:[%s6940_s22 + $0x7c] sm:$0xf]  ;;  %v6849_v12 = vld [vmem:[%s6940_s22 + $0x30] sm:$0xff]  }
  0xc3   : > { %6639 = vmatmul.mubr.msk.bf16.gmra.mxu0 %vm349_vm1, %v5959_v33  ;;  %v3353_v44 = vsel %vm6999_vm6, %v3351_v36, %v3352_v29  ;;  %v3366_v46 = vrot.slane %v5990_v23, 5  ;;  %v6029_v47 = vrot.slane %v5991_v31, 9  ;;  %v7501_v49 = vsel %vm6999_vm6, %v6027_v30, %v3356_v39  ;;  %v6006_v11 = vld [vmem:[%s6940_s22 + $0x84] sm:$0xe]  ;;  %v6007_v20 = vld [vmem:[%s6940_s22 + $0x88] sm:$0xf] }
  0xc4   : > { %6678 = vmatprep.mubr.msk.bf16.mxu0 %vm349_vm1, %v6847_v16  ;;  %6645 = vmatmul.mubr.msk.bf16.vlgmr.msra.gmra.mxu1 %vm349_vm1, %v6042_v38  ;;  %v6043_v48 = vcombine.low %v3350_v35, %v3353_v44  ;;  %v3358_v50 = vrot.slane %v3356_v39, 4  ;;  %v3370_v51 = vrot.slane %v5992_v28, 5  ;;  %v3364_v60 = vsel %vm6999_vm6, %v6028_v24, %v3363_v45  ;;  %v6008_v21 = vld [vmem:[%s6940_s22 + $0x8c] sm:$0x1]  ;;  %v6009_v52 = vld [vmem:[%s6940_s22 + $0x90] sm:$0xe] }
  0xc5   : > { %6711 = vmatpush3.bf16.msra.mxu1 %v4760_v10  ;;  %v3365_v61 = vrot.slane %v3363_v45, 4  ;;  %v3373_v58 = vrot.slane %v5993_v32, 5  ;;  %v6030_v62 = vrot.slane %v5994_v37, 9  ;;  %v3377_v5 = vrot.slane %v5995_v18, 5  ;;  %v6005_v10 = vld [vmem:[%s6940_s22 + $0x80] sm:$0x1] }
  0xc6   : > { %6648 = vmatprep.mubr.msk.bf16.mxu1 %vm349_vm1, %v6043_v48  ;;  %v3360_v2 = vsel %vm6999_vm6, %v3358_v50, %v3359_v40  ;;  %v7517_v3 = vsel %vm6999_vm6, %v6029_v47, %v3370_v51  ;;  %v3372_v4 = vrot.slane %v3370_v51, 4  ;;  %v3380_v8 = vrot.slane %v5996_v41, 5  ;;  %v6010_v35 = vld [vmem:[%s6940_s22 + $0x94] sm:$0xf]  ;;  %v7554_v36 = vld [vmem:[%s6940_s22 + $0x98] sm:$0x1] }
  0xc7   : > { %v6044_v7 = vcombine.low %v7501_v49, %v3360_v2  ;;  %v3367_v56 = vsel %vm6999_vm6, %v3365_v61, %v3366_v46  ;;  %v6031_v9 = vrot.slane %v5997_v43, 9  ;;  %v7532_v15 = vsel %vm6999_vm6, %v6030_v62, %v3377_v5  ;;  %v6012_v37 = vld [vmem:[%s6940_s22 + $0x9c] sm:$0xe]  ;;  %v6013_v41 = vld [vmem:[%s6940_s22 + $0xa0] sm:$0xf] }
  0xc8   : > { %v6045_v13 = vcombine.low %v3364_v60, %v3367_v56  ;;  %v7528_v14 = vsel %vm6999_vm6, %v3372_v4, %v3373_v58  ;;  %v3379_v16 = vrot.slane %v3377_v5, 4  ;;  %v3384_v23 = vrot.slane %v5998_v53, 5  ;;  %v6014_v43 = vld [vmem:[%s6940_s22 + $0xa4] sm:$0x1]  ;;  %v6015_v44 = vld [vmem:[%s6940_s22 + $0xa8] sm:$0xe] }
  0xc9   : > { %v6046_v22 = vcombine.low %v7517_v3, %v7528_v14  ;;  %v3387_v31 = vrot.slane %v5999_v54, 5  ;;  %v6032_v25 = vrot.slane %v6000_v57, 9  ;;  %v3391_v27 = vrot.slane %v6001_v63, 5  ;;  %v6016_v49 = vld [vmem:[%s6940_s22 + $0xac] sm:$0xf]  ;;  %v6850_v61 = vld [vmem:[%s6940_s22 + $0x3c] sm:$0xff]  }
  0xca   : > { %v7540_v26 = vsel %vm6999_vm6, %v3379_v16, %v3380_v8  ;;  %v3394_v28 = vrot.slane %v6002_v0, 5  ;;  %v6033_v19 = vrot.slane %v6003_v1, 9  ;;  %v7548_v30 = vsel %vm6999_vm6, %v6031_v9, %v3384_v23  ;;  %v6018_v60 = vld [vmem:[%s6940_s22 + $0xb4] sm:$0xe]  ;;  %v6019_v2 = vld [vmem:[%s6940_s22 + $0xb8] sm:$0xf] }
  0xcb   : > { %6679 = vmatmul.mubr.msk.bf16.vlgmr.msra.gmra.mxu0 %vm349_vm1, %v6848_v59  ;;  %v6047_v29 = vcombine.low %v7532_v15, %v7540_v26  ;;  %v3386_v32 = vrot.slane %v3384_v23, 4  ;;  %v3398_v34 = vrot.slane %v6004_v6, 5  ;;  %v7561_v18 = vsel %vm6999_vm6, %v6032_v25, %v3391_v27  ;;  %v6017_v59 = vld [vmem:[%s6940_s22 + $0xb0] sm:$0x1]  ;;  %v6851_v4 = vld [vmem:[%s6940_s22 + $0x48] sm:$0xff]   ;;  %v6852_v26 = vld [vmem:[%s6940_s22 + $0x54] sm:$0xff]  }
  0xcc   : > { %6745 = vmatpush3.bf16.msra.mxu0 %v7472_v17  ;;  %6682 = vmatprep.mubr.msk.bf16.mxu0 %vm349_vm1, %v6849_v12  ;;  %v3393_v38 = vrot.slane %v3391_v27, 4  ;;  %v3401_v40 = vrot.slane %v6005_v10, 5  ;;  %v6034_v24 = vrot.slane %v6006_v11, 9  ;;  %v3405_v48 = vrot.slane %v6007_v20, 5  ;;  %v6020_v9 = vld [vmem:[%s6940_s22 + $0xbc] sm:$0x1] }
  0xcd   : > { %6649 = vmatmul.mubr.msk.bf16.gmra.mxu1 %vm349_vm1, %v6044_v7  ;;  %v7571_v17 = vsel %vm6999_vm6, %v3386_v32, %v3387_v31  ;;  %v7575_v45 = vsel %vm6999_vm6, %v6033_v19, %v3398_v34  ;;  %v3400_v46 = vrot.slane %v3398_v34, 4  ;;  %v3408_v54 = vrot.slane %v6008_v21, 5  ;;  %v6021_v20 = vld [vmem:[%s6940_s22 + $0xc0] sm:$0xe]  ;;  %v6219_v15 = vld [vmem:[%s6940_s22 + $0x18] sm:$0xe] }
  0xce   : > { %6652 = vmatprep.mubr.msk.bf16.mxu1 %vm349_vm1, %v6045_v13  ;;  %v6048_v50 = vcombine.low %v7548_v30, %v7571_v17  ;;  %v7585_v51 = vsel %vm6999_vm6, %v3393_v38, %v3394_v28  ;;  %v6035_v57 = vrot.slane %v6009_v52, 9  ;;  %v7602_v0 = vsel %vm6999_vm6, %v6034_v24, %v3405_v48  ;;  %v6022_v28 = vld [vmem:[%s6940_s22 + $0xc4] sm:$0xf]  ;;  %v6143_v14 = vld [vmem:[%s6940_s22 + $0x2c] sm:$0x1] }
  0xcf   : > { %v6049_v58 = vcombine.low %v7561_v18, %v7585_v51  ;;  %v7596_v62 = vsel %vm6999_vm6, %v3400_v46, %v3401_v40  ;;  %v3407_v1 = vrot.slane %v3405_v48, 4  ;;  %v3412_v7 = vrot.slane %v6010_v35, 5  ;;  %v6144_v51 = vld [vmem:[%s6940_s22 + $0x30] sm:$0xf] }
  0xd0   : > { %v3415_v56 = vrot.slane %v7554_v36, 5  ;;  %v6036_v8 = vrot.slane %v6012_v37, 9  ;;  %v3419_v12 = vrot.slane %v6013_v41, 5  ;;  %v3422_v13 = vrot.slane %v6014_v43, 5  ;;  %v6023_v41 = vld [vmem:[%s6940_s22 + $0xc8] sm:$0x1] }
  0xd1   : > { %v7616_v11 = vsel %vm6999_vm6, %v3407_v1, %v3408_v54  ;;  %v6037_v16 = vrot.slane %v6015_v44, 9  ;;  %v7625_v25 = vsel %vm6999_vm6, %v6035_v57, %v3412_v7  ;;  %v3414_v21 = vrot.slane %v3412_v7, 4  ;;  %v6138_v43 = vld [vmem:[%s6940_s22 + $0x18] sm:$0xf]  ;;  %v6139_v57 = vld [vmem:[%s6940_s22 + $0x1c] sm:$0xf] }
  0xd2   : > { %v3426_v27 = vrot.slane %v6016_v49, 5  ;;  %v7633_v52 = vsel %vm6999_vm6, %v6036_v8, %v3419_v12  ;;  %v3421_v32 = vrot.slane %v3419_v12, 4  ;;  %v3429_v34 = vrot.slane %v6017_v59, 5  ;;  %v6853_v8 = vld [vmem:[%s6940_s22 + $0x60] sm:$0xff]  }
  0xd3   : > { %6683 = vmatmul.mubr.msk.bf16.gmra.mxu0 %vm349_vm1, %v6850_v61  ;;  %v6038_v35 = vrot.slane %v6018_v60, 9  ;;  %v7640_v37 = vsel %vm6999_vm6, %v3414_v21, %v3415_v56  ;;  %v3433_v24 = vrot.slane %v6019_v2, 5  ;;  %v3436_v49 = vrot.slane %v6020_v9, 5  ;;  %v6140_v61 = vld [vmem:[%s6940_s22 + $0x20] sm:$0x1] }
  0xd4   : > { %v7550_v33 = vpop.f32.mrf.mxu0  ;;  %6686 = vmatprep.mubr.msk.bf16.mxu0 %vm349_vm1, %v6851_v4  ;;  %v7644_v38 = vsel %vm6999_vm6, %v6037_v16, %v3426_v27  ;;  %v3428_v40 = vrot.slane %v3426_v27, 4  ;;  %v7658_v48 = vsel %vm6999_vm6, %v3421_v32, %v3422_v13  ;;  %v6039_v54 = vrot.slane %v6021_v20, 9  ;;  %v6220_v56 = vld [vmem:[%s6940_s22 + $0x1c] sm:$0xf]  ;;  %v6221_v21 = vld [vmem:[%s6940_s22 + $0x20] sm:$0x1] }
  0xd5   : > { %v7563_v39 = vpop.f32.mrf.mxu1  ;;  %6653 = vmatmul.mubr.msk.bf16.gmra.mxu1 %vm349_vm1, %v6046_v22  ;;  %v7675_v59 = vsel %vm6999_vm6, %v6038_v35, %v3433_v24  ;;  %v3435_v60 = vrot.slane %v3433_v24, 4  ;;  %v3440_v2 = vrot.slane %v6022_v28, 5  ;;  %v3443_v4 = vrot.slane %v6023_v41, 5 }
  0xd6   : > { %v7577_v47 = vpop.f32.mrf.mxu0  ;;  %6656 = vmatprep.mubr.msk.bf16.mxu1 %vm349_vm1, %v6047_v29  ;;  %v7671_v22 = vsel %vm6999_vm6, %v3428_v40, %v3429_v34  ;;  %v4278_v7 = vshrl.u32 %v6138_v43, 16  ;;  %v4281_v13 = vshll.u32 %v6138_v43, 16  ;;  %v4287_v16 = vshll.u32 %v6139_v57, 16 }
  0xd7   : > { %v7587_v53 = vpop.f32.mrf.mxu1  ;;  %v7690_v12 = vsel %vm6999_vm6, %v3435_v60, %v3436_v49  ;;  %v4291_v20 = vshrl.u32 %v6139_v57, 16  ;;  %v7699_v32 = vsel %vm6999_vm6, %v6039_v54, %v3440_v2  ;;  %v3442_v34 = vrot.slane %v3440_v2, 4  ;;  %v6141_v57 = vld [vmem:[%s6940_s22 + $0x24] sm:$0xf] }
  0xd8   : > { %v7598_v63 = vpop.f32.mrf.mxu0  ;;  %v4280_v35 = vrot.slane %v4278_v7, 4  ;;  %v4283_v24 = vrot.slane %v4281_v13, 5  ;;  %v4289_v41 = vrot.slane %v4287_v16, 5  ;;  %v4297_v49 = vshll.u32 %v6140_v61, 16  ;;  %v6142_v7 = vld [vmem:[%s6940_s22 + $0x28] sm:$0xf] }
  0xd9   : > { %v7608_v6 = vpop.f32.mrf.mxu1  ;;  %v4293_v43 = vrot.slane %v4291_v20, 4  ;;  %v7709_v28 = vsel %vm6999_vm6, %v3442_v34, %v3443_v4  ;;  %v6267_v54 = vrot.slane %v6219_v15, 9  ;;  %v5117_v29 = vrot.slane %v6220_v56, 5  ;;  %v6222_v34 = vld [vmem:[%s6940_s22 + $0x24] sm:$0xe] }
  0xda   : > { %v7612_v10 = vpop.f32.mrf.mxu0  ;;  %v5120_v2 = vrot.slane %v6221_v21, 5  ;;  %v4299_v20 = vrot.slane %v4297_v49, 5  ;;  %v4305_v21 = vshll.u32 %v6141_v57, 16  ;;  %v6224_v49 = vld [vmem:[%s6940_s22 + $0x2c] sm:$0x1]  ;;  %v4321_v18 = vshll.u32 %v6143_v14, 16 }
  0xdb   : > { %v7619_v23 = vpop.f32.mrf.mxu1  ;;  %6687 = vmatmul.mubr.msk.bf16.gmra.mxu0 %vm349_vm1, %v6852_v26  ;;  %v4284_v26 = vor.u32 %v4283_v24, %v4280_v35  ;;  %v4294_v16 = vor.u32 %v4293_v43, %v4289_v41  ;;  %v7726_v4 = vsel %vm6999_vm6, %v6267_v54, %v5117_v29  ;;  %v5119_v56 = vrot.slane %v5117_v29, 4  ;;  %v6223_v35 = vld [vmem:[%s6940_s22 + $0x28] sm:$0xf]  ;;  %v6854_v29 = vld [vmem:[%s6940_s22 + $0x6c] sm:$0xff]  }
  0xdc   : > { %8604 = vst [vmem:[#allocation3_spill] sm:$0xff] %v7619_v23  ;;  %v7629_v19 = vpop.f32.mrf.mxu0  ;;  %6690 = vmatprep.mubr.msk.bf16.mxu0 %vm349_vm1, %v6853_v8  ;;  %v4302_v8 = vshrl.u32 %v6141_v57, 16  ;;  %v4311_v24 = vshll.u32 %v6142_v7, 16  ;;  %v4315_v43 = vshrl.u32 %v6142_v7, 16  ;;  %v4307_v44 = vrot.slane %v4305_v21, 5 }
  0xdd   : > { %v7636_v36 = vpop.f32.mrf.mxu1  ;;  %6657 = vmatmul.mubr.msk.bf16.gmra.mxu1 %vm349_vm1, %v6048_v50  ;;  %v4285_v17 = vrot.slane %v4284_v26, 4  ;;  %v4295_v50 = vrot.slane %v4294_v16, 4  ;;  %v7742_v57 = vsel %vm6999_vm6, %v5119_v56, %v5120_v2  ;;  %v6145_v2 = vld [vmem:[%s6940_s22 + $0x34] sm:$0xf] }
  0xde   : > { %8605 = vst [vmem:[#allocation4_spill] sm:$0xff] %v7636_v36  ;;  %v7654_v46 = vpop.f32.mrf.mxu0  ;;  %6660 = vmatprep.mubr.msk.bf16.mxu1 %vm349_vm1, %v6049_v58  ;;  %v4304_v61 = vrot.slane %v4302_v8, 4  ;;  %v6855_v58 = vld [vmem:[%s6940_s22 + $0x78] sm:$0xff]   ;;  %v4313_v5 = vrot.slane %v4311_v24, 5  ;;  %v4317_v21 = vrot.slane %v4315_v43, 4 }
  0xdf   : > { %v7665_v3 = vpop.f32.mrf.mxu1  ;;  %v4290_v26 = vsel %vm7013_vm7, %v4285_v17, %v4289_v41  ;;  %v4300_v7 = vsel %vm7013_vm7, %v4295_v50, %v4299_v20  ;;  %v5124_v41 = vrot.slane %v6223_v35, 5  ;;  %v5127_v17 = vrot.slane %v6224_v49, 5  ;;  %v6146_v20 = vld [vmem:[%s6940_s22 + $0x38] sm:$0x1] }
  0xe0   : > { %8606 = vst [vmem:[#allocation5_spill] sm:$0xff] %v7665_v3  ;;  %v7680_v1 = vpop.f32.mrf.mxu0  ;;  %v7757_v8 = vcombine.low %v4290_v26, %v4300_v7  ;;  %v4308_v14 = vor.u32 %v4307_v44, %v4304_v61  ;;  %v4326_v50 = vshrl.u32 %v6144_v51, 16  ;;  %v4329_v26 = vshll.u32 %v6144_v51, 16  ;;  %v6225_v44 = vld [vmem:[%s6940_s22 + $0x30] sm:$0xe] }
  0xe1   : > { %v7686_v9 = vpop.f32.mrf.mxu1  ;;  %v4335_v7 = vshll.u32 %v6145_v2, 16  ;;  %v5126_v35 = vrot.slane %v5124_v41, 4  ;;  %v4339_v49 = vshrl.u32 %v6145_v2, 16  ;;  %v8615_v2 = vcombine.low %v7602_v0, %v7616_v11 }
  0xe2   : > { %8607 = vst [vmem:[#allocation6_spill] sm:$0xff] %v7686_v9  ;;  %v7693_v27 = vpop.f32.mrf.mxu0  ;;  %v4309_v16 = vrot.slane %v4308_v14, 4  ;;  %v4328_v43 = vrot.slane %v4326_v50, 4 }
  0xe3   : > { %v7701_v40 = vpop.f32.mrf.mxu1  ;;  %6691 = vmatmul.mubr.msk.bf16.gmra.mxu0 %vm349_vm1, %v6854_v29  ;;  %v6226_v29 = vld [vmem:[%s6940_s22 + $0x34] sm:$0xf] }
  0xe4   : > { %8608 = vst [vmem:[#allocation7_spill] sm:$0xff] %v7701_v40  ;;  %v7705_v60 = vpop.f32.mrf.mxu0  ;;  %v4318_v40 = vor.u32 %v4317_v21, %v4313_v5  ;;  %6694 = vmatprep.mubr.msk.bf16.mxu0 %vm349_vm1, %v6855_v58  ;;  %v4314_v58 = vsel %vm7013_vm7, %v4309_v16, %v4313_v5  ;;  %v4331_v21 = vrot.slane %v4329_v26, 5  ;;  %v6269_v5 = vrot.slane %v6225_v44, 9  ;;  %v6856_v16 = vld [vmem:[%s6940_s22 + $0x84] sm:$0xff]  }
  0xe5   : > { %v7713_v13 = vpop.f32.mrf.mxu1 }
  0xe6   : > { %8609 = vst [vmem:[#allocation8_spill] sm:$0xff] %v7713_v13  ;;  %v7722_v15 = vpop.f32.mrf.mxu0  ;;  %v6268_v13 = vrot.slane %v6222_v34, 9  ;;  %v4319_v14 = vrot.slane %v4318_v40, 4  ;;  %v6147_v40 = vld [vmem:[%s6940_s22 + $0x3c] sm:$0xf]  ;;  %v4332_v11 = vor.u32 %v4331_v21, %v4328_v43 }
  0xe7   : > { %v7734_v30 = vpop.f32.mrf.mxu1 }
  0xe8   : > { %8610 = vst [vmem:[#allocation9_spill] sm:$0xff] %v7734_v30  ;;  %v7738_v54 = vpop.f32.mrf.mxu0  ;;  %v4323_v30 = vrot.slane %v4321_v18, 5  ;;  %v7771_v34 = vsel %vm6999_vm6, %v6268_v13, %v5124_v41  ;;  %v8614_v18 = vcombine.low %v7575_v45, %v7596_v62  ;;  %v4337_v13 = vrot.slane %v4335_v7, 5  ;;  %v6227_v41 = vld [vmem:[%s6940_s22 + $0x38] sm:$0x1] }
  0xe9   : > { %v7746_v31 = vpop.f32.mrf.mxu1  ;;  %v7791_v45 = vsel %vm6999_vm6, %v5126_v35, %v5127_v17  ;;  %v4341_v62 = vrot.slane %v4339_v49, 4  ;;  %v5134_v49 = vrot.slane %v6227_v41, 5  ;;  %v4333_v3 = vrot.slane %v4332_v11, 4  ;;  %v6228_v41 = vld [vmem:[%s6940_s22 + $0x3c] sm:$0xe] }
  0xea   : > { %8611 = vst [vmem:[#allocation10_spill] sm:$0xff] %v7746_v31  ;;  %v7755_v56 = vpop.f32.mrf.mxu0  ;;  %6661 = vmatmul.mubr.msk.bf16.gmra.mxu1 %vm349_vm1, %v8614_v18  ;;  %v4345_v18 = vshll.u32 %v6146_v20, 16  ;;  %v4324_v7 = vsel %vm7013_vm7, %v4319_v14, %v4323_v30 }
  0xeb   : > { %v7759_v31 = vpop.f32.mrf.mxu1  ;;  %6664 = vmatprep.mubr.msk.bf16.mxu1 %vm349_vm1, %v8615_v2  ;;  %v5131_v2 = vrot.slane %v6226_v29, 5  ;;  %v7805_v20 = vcombine.low %v4314_v58, %v4324_v7  ;;  %v4342_v44 = vor.u32 %v4341_v62, %v4337_v13  ;;  %v4350_v29 = vshrl.u32 %v6147_v40, 16  ;;  %6695 = vmatmul.mubr.msk.bf16.gmra.mxu0 %vm349_vm1, %v6856_v16 }
  0xec   : > { %8612 = vst [vmem:[#allocation11_spill] sm:$0xff] %v7759_v31  ;;  %v7763_v24 = vpop.f32.mrf.mxu0  ;;  %v4347_v35 = vrot.slane %v4345_v18, 5  ;;  %v6149_v31 = vld [vmem:[%s6940_s22 + $0x44] sm:$0x1]  ;;  %v4353_v58 = vshll.u32 %v6147_v40, 16  ;;  %v4338_v11 = vsel %vm7013_vm7, %v4333_v3, %v4337_v13  ;;  %v6270_v16 = vrot.slane %v6228_v41, 9 }
  0xed   : > { %v7767_v61 = vpop.f32.mrf.mxu1  ;;  %v7812_v30 = vsel %vm6999_vm6, %v6269_v5, %v5131_v2  ;;  %v5133_v43 = vrot.slane %v5131_v2, 4  ;;  %v4343_v21 = vrot.slane %v4342_v44, 4  ;;  %v4352_v2 = vrot.slane %v4350_v29, 4  ;;  %v6150_v13 = vld [vmem:[%s6940_s22 + $0x48] sm:$0xf] }
  0xee   : > { %8613 = vst [vmem:[#allocation12_spill] sm:$0xff] %v7767_v61  ;;  %v7778_v51 = vpop.f32.mrf.mxu0  ;;  %v6857_v61 = vld [vmem:[%s6940_s22 + $0x90] sm:$0xff]   ;;  %v4369_v0 = vshll.u32 %v6149_v31, 16  ;;  %v4355_v44 = vrot.slane %v4353_v58, 5 }
  0xef   : > { %v7787_v50 = vpop.f32.mrf.mxu1  ;;  %v7822_v5 = vsel %vm6999_vm6, %v5133_v43, %v5134_v49  ;;  %6698 = vmatprep.mubr.msk.bf16.mxu0 %vm349_vm1, %v6857_v61  ;;  %v8619_v49 = vcombine.low %v7625_v25, %v7640_v37 }
  0xf0   : > { %8616 = vst [vmem:[#allocation13_spill] sm:$0xff] %v7787_v50  ;;  %v7795_v26 = vpop.f32.mrf.mxu0  ;;  %v6148_v50 = vld [vmem:[%s6940_s22 + $0x40] sm:$0xf]  ;;  %v4371_v29 = vrot.slane %v4369_v0, 5  ;;  %v4374_v0 = vshrl.u32 %v6150_v13, 16 }
  0xf1   : > { %v7803_v17 = vpop.f32.mrf.mxu1  ;;  %v4359_v7 = vshll.u32 %v6148_v50, 16  ;;  %v4363_v62 = vshrl.u32 %v6148_v50, 16  ;;  %v4348_v50 = vsel %vm7013_vm7, %v4343_v21, %v4347_v35  ;;  %v8620_v21 = vcombine.low %v7633_v52, %v7658_v48 }
  0xf2   : > { %8617 = vst [vmem:[#allocation14_spill] sm:$0xff] %v7803_v17  ;;  %v7808_v9 = vpop.f32.mrf.mxu0  ;;  %v6229_v17 = vld [vmem:[%s6940_s22 + $0x40] sm:$0xf]  ;;  %6665 = vmatmul.mubr.msk.bf16.gmra.mxu1 %vm349_vm1, %v8619_v49  ;;  %v7837_v43 = vcombine.low %v4338_v11, %v4348_v50  ;;  %v6151_v50 = vld [vmem:[%s6940_s22 + $0x4c] sm:$0xf] }
  0xf3   : > { %v7814_v14 = vpop.f32.mrf.mxu1  ;;  %v4361_v3 = vrot.slane %v4359_v7, 5  ;;  %v4365_v35 = vrot.slane %v4363_v62, 4  ;;  %6668 = vmatprep.mubr.msk.bf16.mxu1 %vm349_vm1, %v8620_v21  ;;  %v4356_v7 = vor.u32 %v4355_v44, %v4352_v2  ;;  %v5138_v25 = vrot.slane %v6229_v17, 5  ;;  %v6858_v49 = vld [vmem:[%s6940_s22 + $0x9c] sm:$0xff]   ;;  %v6859_v62 = vld [vmem:[%s6940_s22 + $0xa8] sm:$0xff]  }
  0xf4   : > { %8618 = vst [vmem:[#allocation15_spill] sm:$0xff] %v7814_v14  ;;  %v6544_v18 = vpop.f32.mrf.mxu0  ;;  %v6230_v14 = vld [vmem:[%s6940_s22 + $0x44] sm:$0x1]  ;;  %v4376_v44 = vrot.slane %v4374_v0, 4  ;;  %6699 = vmatmul.mubr.msk.bf16.gmra.mxu0 %vm349_vm1, %v6858_v49 }
  0xf5   : > { %v6510_v40 = vpop.f32.mrf.mxu1  ;;  %v5141_v37 = vrot.slane %v6230_v14, 5  ;;  %v4357_v52 = vrot.slane %v4356_v7, 4  ;;  %v7851_v48 = vsel %vm6999_vm6, %v6270_v16, %v5138_v25  ;;  %v5140_v17 = vrot.slane %v5138_v25, 4  ;;  %v6152_v16 = vld [vmem:[%s6940_s22 + $0x50] sm:$0x1]  ;;  %6702 = vmatprep.mubr.msk.bf16.mxu0 %vm349_vm1, %v6859_v62 }
  0xf6   : > { %v1358_v31 = vadd.f32 %v6510_v40, %v7550_v33  ;;  %v1798_v61 = vpop.f32.mrf.mxu0  ;;  %v4366_v40 = vor.u32 %v4365_v35, %v4361_v3  ;;  %v4377_v14 = vshll.u32 %v6150_v13, 16  ;;  %v4383_v13 = vshll.u32 %v6151_v50, 16  ;;  %v6232_v25 = vld [vmem:[%s6940_s22 + $0x4c] sm:$0xf] }
  0xf7   : > { %v1229_v58 = vpop.f32.mrf.mxu1  ;;  %v4362_v35 = vsel %vm7013_vm7, %v4357_v52, %v4361_v3  ;;  %v7860_v21 = vsel %vm6999_vm6, %v5140_v17, %v5141_v37  ;;  %v6233_v37 = vld [vmem:[%s6940_s22 + $0x50] sm:$0x1]  ;;  %v6153_v17 = vld [vmem:[%s6940_s22 + $0x54] sm:$0xf]  ;;  %v4393_v62 = vshll.u32 %v6152_v16, 16 }
  0xf8   : > { %v7844_v36 = vadd.f32 %v6544_v18, %v1358_v31  ;;  %v1356_v33 = vadd.f32 %v1229_v58, %v7577_v47  ;;  %v6545_v11 = vpop.f32.mrf.mxu0  ;;  %v4367_v2 = vrot.slane %v4366_v40, 4  ;;  %v4379_v58 = vrot.slane %v4377_v14, 5 }
  0xf9   : > { %v6511_v23 = vpop.f32.mrf.mxu1  ;;  %v6287_v3 = vcombine.low %v7851_v48, %v7860_v21  ;;  %v4385_v49 = vrot.slane %v4383_v13, 5  ;;  %v4395_v16 = vrot.slane %v4393_v62, 5  ;;  %v6154_v13 = vld [vmem:[%s6940_s22 + $0x58] sm:$0xf] }
  0xfa   : > { %v7853_v41 = vadd.f32 %v1798_v61, %v1356_v33  ;;  %v1359_v18 = vadd.f32 %v6511_v23, %v7598_v63  ;;  %v1801_v47 = vpop.f32.mrf.mxu0  ;;  %v6231_v61 = vld [vmem:[%s6940_s22 + $0x48] sm:$0xe]  ;;  %v4372_v7 = vsel %vm7013_vm7, %v4367_v2, %v4371_v29  ;;  %v4380_v52 = vor.u32 %v4379_v58, %v4376_v44  ;;  %v6860_v58 = vld [vmem:[%s6940_s22 + $0xb4] sm:$0xff]  }
  0xfb   : > { %v1232_v31 = vpop.f32.mrf.mxu1  ;;  %v7875_v0 = vcombine.low %v4362_v35, %v4372_v7  ;;  %v8622_v2 = vcombine.low %v7675_v59, %v7690_v12 }
  0xfc   : > { %v7865_v63 = vadd.f32 %v6545_v11, %v1359_v18  ;;  %v1357_v23 = vadd.f32 %v1232_v31, %v7612_v10  ;;  %v6548_v40 = vpop.f32.mrf.mxu0  ;;  %v4387_v11 = vshrl.u32 %v6151_v50, 16  ;;  %v8621_v10 = vcombine.low %v7644_v38, %v7671_v22  ;;  %6703 = vmatmul.mubr.msk.bf16.gmra.mxu0 %vm349_vm1, %v6860_v58 }
  0xfd   : > { %v6514_v33 = vpop.f32.mrf.mxu1  ;;  %v6271_v18 = vrot.slane %v6231_v61, 9  ;;  %v4381_v31 = vrot.slane %v4380_v52, 4  ;;  %v5145_v38 = vrot.slane %v6232_v25, 5  ;;  %v5148_v22 = vrot.slane %v6233_v37, 5  ;;  %v6155_v52 = vld [vmem:[%s6940_s22 + $0x5c] sm:$0x1] }
  0xfe   : > { %6669 = vmatmul.mubr.msk.bf16.gmra.mxu1 %vm349_vm1, %v8621_v10  ;;  %v7882_v29 = vadd.f32 %v1801_v47, %v1357_v23  ;;  %v1362_v14 = vadd.f32 %v6514_v33, %v7629_v19  ;;  %v1814_v44 = vpop.f32.mrf.mxu0  ;;  %v4389_v35 = vrot.slane %v4387_v11, 4  ;;  %v4398_v61 = vshrl.u32 %v6153_v17, 16  ;;  %v6861_v23 = vld [vmem:[%s6940_s22 + $0xc0] sm:$0xff]  }
  0xff   : > { %6672 = vmatprep.mubr.msk.bf16.mxu1 %vm349_vm1, %v8622_v2  ;;  %v1245_v50 = vpop.f32.mrf.mxu1  ;;  %v4386_v7 = vsel %vm7013_vm7, %v4381_v31, %v4385_v49  ;;  %v7899_v25 = vsel %vm6999_vm6, %v6271_v18, %v5145_v38  ;;  %v5147_v37 = vrot.slane %v5145_v38, 4  ;;  %v4401_v10 = vshll.u32 %v6153_v17, 16  ;;  %v6235_v31 = vld [vmem:[%s6940_s22 + $0x58] sm:$0xf]  ;;  %v6236_v38 = vld [vmem:[%s6940_s22 + $0x5c] sm:$0x1]  ;;  %6706 = vmatprep.mubr.msk.bf16.mxu0 %vm349_vm1, %v6861_v23 }
 0x100   : > { %v7890_v47 = vadd.f32 %v6548_v40, %v1362_v14  ;;  %v1360_v19 = vadd.f32 %v1245_v50, %v7654_v46  ;;  %v6549_v12 = vpop.f32.mrf.mxu0  ;;  %v4390_v33 = vor.u32 %v4389_v35, %v4385_v49  ;;  %v4400_v11 = vrot.slane %v4398_v61, 4  ;;  %v6234_v14 = vld [vmem:[%s6940_s22 + $0x54] sm:$0xe] }
 0x101   : > { %v6515_v59 = vpop.f32.mrf.mxu1  ;;  %v7908_v49 = vsel %vm6999_vm6, %v5147_v37, %v5148_v22  ;;  %v4407_v50 = vshll.u32 %v6154_v13, 16  ;;  %v4411_v18 = vshrl.u32 %v6154_v13, 16  ;;  %v4403_v35 = vrot.slane %v4401_v10, 5 }
 0x102   : > { %v7901_v40 = vadd.f32 %v1814_v44, %v1360_v19  ;;  %v1363_v46 = vadd.f32 %v6515_v59, %v7680_v1  ;;  %v4391_v2 = vrot.slane %v4390_v33, 4  ;;  %v6288_v17 = vcombine.low %v7899_v25, %v7908_v49  ;;  %v6156_v19 = vld [vmem:[%s6940_s22 + $0x60] sm:$0xf]  ;;  %v1817_v22 = vpop.f32.mrf.mxu0 }
 0x103   : > { %v1248_v62 = vpop.f32.mrf.mxu1  ;;  %v4409_v61 = vrot.slane %v4407_v50, 5  ;;  %v4413_v59 = vrot.slane %v4411_v18, 4  ;;  %v4417_v58 = vshll.u32 %v6155_v52, 16  ;;  %v6272_v23 = vrot.slane %v6234_v14, 9 }
 0x104   : > { %v7912_v44 = vadd.f32 %v6549_v12, %v1363_v46  ;;  %v1361_v1 = vadd.f32 %v1248_v62, %v7693_v27  ;;  %v4396_v13 = vsel %vm7013_vm7, %v4391_v2, %v4395_v16  ;;  %v6157_v12 = vld [vmem:[%s6940_s22 + $0x64] sm:$0xf]  ;;  %v8623_v27 = vcombine.low %v7699_v32, %v7709_v28  ;;  %v6862_v2 = vld [vmem:[%s6940_s22 + $0xcc] sm:$0xff]  }
 0x105   : > { %v7929_v37 = vcombine.low %v4386_v7, %v4396_v13  ;;  %v4404_v46 = vor.u32 %v4403_v35, %v4400_v11  ;;  %v4414_v10 = vor.u32 %v4413_v59, %v4409_v61  ;;  %v4419_v16 = vrot.slane %v4417_v58, 5  ;;  %v6237_v59 = vld [vmem:[%s6940_s22 + $0x60] sm:$0xe]  ;;  %6707 = vmatmul.mubr.msk.bf16.gmra.mxu0 %vm349_vm1, %v6862_v2 }
 0x106   : > { %6673 = vmatmul.mubr.msk.bf16.gmra.mxu1 %vm349_vm1, %v8623_v27  ;;  %v7927_v33 = vadd.f32 %v1817_v22, %v1361_v1  ;;  %v5152_v62 = vrot.slane %v6235_v31, 5  ;;  %v5155_v52 = vrot.slane %v6236_v38, 5  ;;  %v4422_v28 = vshrl.u32 %v6156_v19, 16  ;;  %v6518_v1 = vpop.f32.mrf.mxu1  ;;  %v6552_v22 = vpop.f32.mrf.mxu0  ;;  %v6158_v38 = vld [vmem:[%s6940_s22 + $0x68] sm:$0x1] }
 0x107   : > { %6712 = vmatprep.mubr.msk.bf16.mxu1 %vm349_vm1, %v7757_v8  ;;  %v4405_v50 = vrot.slane %v4404_v46, 4  ;;  %v4425_v32 = vshll.u32 %v6156_v19, 16  ;;  %v4431_v18 = vshll.u32 %v6157_v12, 16  ;;  %v4415_v7 = vrot.slane %v4414_v10, 4 }
 0x108   : > { %v7936_v11 = vsel %vm6999_vm6, %v6272_v23, %v5152_v62  ;;  %v5154_v8 = vrot.slane %v5152_v62, 4  ;;  %v4435_v14 = vshrl.u32 %v6157_v12, 16  ;;  %v1366_v31 = vadd.f32 %v6518_v1, %v7705_v60  ;;  %v1261_v46 = vpop.f32.mrf.mxu1  ;;  %v1830_v23 = vpop.f32.mrf.mxu0  ;;  %v6238_v60 = vld [vmem:[%s6940_s22 + $0x64] sm:$0xf]  ;;  %v6239_v62 = vld [vmem:[%s6940_s22 + $0x68] sm:$0x1] }
 0x109   : > { %v4410_v35 = vsel %vm7013_vm7, %v4405_v50, %v4409_v61  ;;  %v4424_v13 = vrot.slane %v4422_v28, 4  ;;  %v4427_v19 = vrot.slane %v4425_v32, 5  ;;  %v4420_v58 = vsel %vm7013_vm7, %v4415_v7, %v4419_v16  ;;  %v6159_v32 = vld [vmem:[%s6940_s22 + $0x6c] sm:$0xf] }
 0x10a   : > { %v7947_v27 = vsel %vm6999_vm6, %v5154_v8, %v5155_v52  ;;  %v4433_v12 = vrot.slane %v4431_v18, 5  ;;  %v4437_v10 = vrot.slane %v4435_v14, 4  ;;  %v7952_v61 = vadd.f32 %v6552_v22, %v1366_v31  ;;  %v6519_v18 = vpop.f32.mrf.mxu1  ;;  %v6553_v1 = vpop.f32.mrf.mxu0 }
 0x10b   : > { %v7954_v50 = vcombine.low %v4410_v35, %v4420_v58  ;;  %v6289_v28 = vcombine.low %v7936_v11, %v7947_v27  ;;  %v1364_v16 = vadd.f32 %v1261_v46, %v7722_v15  ;;  %v8624_v52 = vcombine.low %v7726_v4, %v7742_v57 }
 0x10c   : > { %v4428_v7 = vor.u32 %v4427_v19, %v4424_v13  ;;  %v4438_v2 = vor.u32 %v4437_v10, %v4433_v12  ;;  %v4441_v22 = vshll.u32 %v6158_v38, 16  ;;  %v6273_v8 = vrot.slane %v6237_v59, 9  ;;  %v1264_v57 = vpop.f32.mrf.mxu1  ;;  %v6160_v19 = vld [vmem:[%s6940_s22 + $0x70] sm:$0xf]  ;;  %v1833_v10 = vpop.f32.mrf.mxu0 }
 0x10d   : > { %6746 = vmatprep.mubr.msk.bf16.mxu0 %vm349_vm1, %v8624_v52  ;;  %v7966_v14 = vadd.f32 %v1830_v23, %v1364_v16  ;;  %v1367_v15 = vadd.f32 %v6519_v18, %v7738_v54  ;;  %v5159_v31 = vrot.slane %v6238_v60, 5  ;;  %v5162_v4 = vrot.slane %v6239_v62, 5  ;;  %v6161_v23 = vld [vmem:[%s6940_s22 + $0x74] sm:$0x1]  ;;  %v6241_v18 = vld [vmem:[%s6940_s22 + $0x70] sm:$0xf] }
 0x10e   : > { %6713 = vmatmul.mubr.msk.bf16.vlgmr.msra.gmra.mxu1 %vm349_vm1, %v7805_v20  ;;  %v4429_v35 = vrot.slane %v4428_v7, 4  ;;  %v4439_v13 = vrot.slane %v4438_v2, 4  ;;  %v4443_v38 = vrot.slane %v4441_v22, 5  ;;  %v4446_v59 = vshrl.u32 %v6159_v32, 16 }
 0x10f   : > { %6716 = vmatprep.mubr.msk.bf16.mxu1 %vm349_vm1, %v7837_v43  ;;  %v7972_v20 = vadd.f32 %v6553_v1, %v1367_v15  ;;  %v1365_v58 = vadd.f32 %v1264_v57, %v7755_v56  ;;  %v7977_v54 = vsel %vm6999_vm6, %v6273_v8, %v5159_v31  ;;  %v5161_v46 = vrot.slane %v5159_v31, 4  ;;  %v6240_v43 = vld [vmem:[%s6940_s22 + $0x6c] sm:$0xe]  ;;  %v6242_v56 = vld [vmem:[%s6940_s22 + $0x74] sm:$0x1] }
 0x110   : > { %v4434_v60 = vsel %vm7013_vm7, %v4429_v35, %v4433_v12  ;;  %v4444_v62 = vsel %vm7013_vm7, %v4439_v13, %v4443_v38  ;;  %v4448_v16 = vrot.slane %v4446_v59, 4  ;;  %v4449_v52 = vshll.u32 %v6159_v32, 16  ;;  %v6162_v8 = vld [vmem:[%s6940_s22 + $0x78] sm:$0xf] }
 0x111   : > { %v7987_v1 = vadd.f32 %v1833_v10, %v1365_v58  ;;  %v7989_v7 = vcombine.low %v4434_v60, %v4444_v62  ;;  %v7993_v2 = vsel %vm6999_vm6, %v5161_v46, %v5162_v4  ;;  %v4455_v22 = vshll.u32 %v6160_v19, 16  ;;  %v6163_v58 = vld [vmem:[%s6940_s22 + $0x7c] sm:$0xf]  ;;  %v6522_v46 = vpop.f32.mrf.mxu1  ;;  %v6556_v10 = vpop.f32.mrf.mxu0 }
 0x112   : > { %v6290_v12 = vcombine.low %v7977_v54, %v7993_v2  ;;  %v4451_v15 = vrot.slane %v4449_v52, 5  ;;  %v4459_v31 = vshrl.u32 %v6160_v19, 16  ;;  %v4465_v57 = vshll.u32 %v6161_v23, 16 }
 0x113   : > { %v8625_v32 = vcombine.low %v7771_v34, %v7791_v45  ;;  %v4457_v35 = vrot.slane %v4455_v22, 5  ;;  %v6274_v13 = vrot.slane %v6240_v43, 9  ;;  %v5166_v38 = vrot.slane %v6241_v18, 5  ;;  %v1277_v52 = vpop.f32.mrf.mxu1  ;;  %v1846_v18 = vpop.f32.mrf.mxu0 }
 0x114   : > { %v5169_v59 = vrot.slane %v6242_v56, 5  ;;  %v8626_v4 = vcombine.low %v7812_v30, %v7822_v5  ;;  %v4452_v19 = vor.u32 %v4451_v15, %v4448_v16  ;;  %v4461_v23 = vrot.slane %v4459_v31, 4  ;;  %v6164_v56 = vld [vmem:[%s6940_s22 + $0x80] sm:$0x1] }
 0x115   : > { %6747 = vmatmul.mubr.msk.bf16.vlgmr.msra.gmra.mxu0 %vm349_vm1, %v8625_v32  ;;  %v4467_v60 = vrot.slane %v4465_v57, 5  ;;  %v4470_v62 = vshrl.u32 %v6162_v8, 16  ;;  %v1370_v34 = vadd.f32 %v6522_v46, %v7763_v24  ;;  %v8012_v45 = vsel %vm6999_vm6, %v6274_v13, %v5166_v38  ;;  %v6243_v57 = vld [vmem:[%s6940_s22 + $0x78] sm:$0xe]  ;;  %v6244_v32 = vld [vmem:[%s6940_s22 + $0x7c] sm:$0xf]  ;;  %v6557_v46 = vpop.f32.mrf.mxu0 }
 0x116   : > { %6750 = vmatprep.mubr.msk.bf16.mxu0 %vm349_vm1, %v8626_v4  ;;  %6717 = vmatmul.mubr.msk.bf16.gmra.mxu1 %vm349_vm1, %v7875_v0  ;;  %v5168_v30 = vrot.slane %v5166_v38, 4  ;;  %v4473_v5 = vshll.u32 %v6162_v8, 16  ;;  %v4453_v43 = vrot.slane %v4452_v19, 4  ;;  %v4462_v16 = vor.u32 %v4461_v23, %v4457_v35  ;;  %v6523_v4 = vpop.f32.mrf.mxu1 }
 0x117   : > { %6720 = vmatprep.mubr.msk.bf16.mxu1 %vm349_vm1, %v7929_v37  ;;  %v4472_v22 = vrot.slane %v4470_v62, 4  ;;  %v4479_v0 = vshll.u32 %v6163_v58, 16  ;;  %v8017_v15 = vadd.f32 %v6556_v10, %v1370_v34  ;;  %v1368_v31 = vadd.f32 %v1277_v52, %v7778_v51  ;;  %v6245_v62 = vld [vmem:[%s6940_s22 + $0x80] sm:$0x1] }
 0x118   : > { %v8021_v24 = vsel %vm6999_vm6, %v5168_v30, %v5169_v59  ;;  %v4475_v8 = vrot.slane %v4473_v5, 5  ;;  %v4458_v37 = vsel %vm7013_vm7, %v4453_v43, %v4457_v35  ;;  %v4463_v13 = vrot.slane %v4462_v16, 4  ;;  %v1280_v34 = vpop.f32.mrf.mxu1  ;;  %v6165_v16 = vld [vmem:[%s6940_s22 + $0x84] sm:$0xf] }
 0x119   : > { %v6291_v38 = vcombine.low %v8012_v45, %v8021_v24  ;;  %v4481_v10 = vrot.slane %v4479_v0, 5  ;;  %v8030_v19 = vadd.f32 %v1846_v18, %v1368_v31  ;;  %v1371_v59 = vadd.f32 %v6523_v4, %v7795_v26  ;;  %v6246_v31 = vld [vmem:[%s6940_s22 + $0x84] sm:$0xe]  ;;  %v6248_v4 = vld [vmem:[%s6940_s22 + $0x8c] sm:$0x1] }
 0x11a   : > { %v4476_v51 = vor.u32 %v4475_v8, %v4472_v22  ;;  %v4483_v23 = vshrl.u32 %v6163_v58, 16  ;;  %v4468_v35 = vsel %vm7013_vm7, %v4463_v13, %v4467_v60  ;;  %v4489_v30 = vshll.u32 %v6164_v56, 16  ;;  %v6166_v22 = vld [vmem:[%s6940_s22 + $0x88] sm:$0xf]  ;;  %v6167_v60 = vld [vmem:[%s6940_s22 + $0x8c] sm:$0x1]  ;;  %v1849_v56 = vpop.f32.mrf.mxu0 }
 0x11b   : > { %v6275_v5 = vrot.slane %v6243_v57, 9  ;;  %v5173_v43 = vrot.slane %v6244_v32, 5  ;;  %v6194_v52 = vcombine.low %v4458_v37, %v4468_v35  ;;  %v8041_v26 = vadd.f32 %v6557_v46, %v1371_v59  ;;  %v6247_v8 = vld [vmem:[%s6940_s22 + $0x88] sm:$0xf] }
 0x11c   : > { %v1369_v58 = vadd.f32 %v1280_v34, %v7808_v9  ;;  %v4477_v18 = vrot.slane %v4476_v51, 4  ;;  %v4485_v0 = vrot.slane %v4483_v23, 4  ;;  %v4491_v48 = vrot.slane %v4489_v30, 5  ;;  %v6168_v23 = vld [vmem:[%s6940_s22 + $0x90] sm:$0xf]  ;;  %v6526_v34 = vpop.f32.mrf.mxu1 }
 0x11d   : > { %6751 = vmatmul.mubr.msk.bf16.gmra.mxu0 %vm349_vm1, %v6287_v3  ;;  %v8052_v21 = vsel %vm6999_vm6, %v6275_v5, %v5173_v43  ;;  %v5175_v3 = vrot.slane %v5173_v43, 4  ;;  %v5176_v49 = vrot.slane %v6245_v62, 5  ;;  %v4497_v32 = vshll.u32 %v6165_v16, 16 }
 0x11e   : > { %6754 = vmatprep.mubr.msk.bf16.mxu0 %vm349_vm1, %v6288_v17  ;;  %6721 = vmatmul.mubr.msk.bf16.gmra.mxu1 %vm349_vm1, %v7954_v50  ;;  %v8057_v9 = vadd.f32 %v1849_v56, %v1369_v58  ;;  %v4482_v25 = vsel %vm7013_vm7, %v4477_v18, %v4481_v10  ;;  %v4494_v17 = vshrl.u32 %v6165_v16, 16  ;;  %v4486_v57 = vor.u32 %v4485_v0, %v4481_v10  ;;  %v1293_v56 = vpop.f32.mrf.mxu1 }
 0x11f   : > { %6724 = vmatprep.mubr.msk.bf16.mxu1 %vm349_vm1, %v7989_v7  ;;  %v4503_v37 = vshll.u32 %v6166_v22, 16  ;;  %v4507_v13 = vshrl.u32 %v6166_v22, 16  ;;  %v8067_v50 = vsel %vm6999_vm6, %v5175_v3, %v5176_v49  ;;  %v4513_v59 = vshll.u32 %v6167_v60, 16  ;;  %v6560_v7 = vpop.f32.mrf.mxu0  ;;  %v6169_v3 = vld [vmem:[%s6940_s22 + $0x94] sm:$0xf] }
 0x120   : > { %v4496_v46 = vrot.slane %v4494_v17, 4  ;;  %v6276_v51 = vrot.slane %v6246_v31, 9  ;;  %v4487_v62 = vrot.slane %v4486_v57, 4  ;;  %v6292_v35 = vcombine.low %v8052_v21, %v8067_v50  ;;  %v6527_v27 = vpop.f32.mrf.mxu1  ;;  %v6253_v21 = vld [vmem:[%s6940_s22 + $0xa0] sm:$0xf] }
 0x121   : > { %v4499_v10 = vrot.slane %v4497_v32, 5  ;;  %v4505_v30 = vrot.slane %v4503_v37, 5  ;;  %v1374_v5 = vadd.f32 %v6526_v34, %v7563_v39  ;;  %v4509_v43 = vrot.slane %v4507_v13, 4  ;;  %v1862_v0 = vpop.f32.mrf.mxu0  ;;  %v6170_v13 = vld [vmem:[%s6940_s22 + $0x98] sm:$0x1]  ;;  %v8627_v34 = vld [vmem:[#allocation3_spill] sm:$0xff] }
 0x122   : > { %v4515_v16 = vrot.slane %v4513_v59, 5  ;;  %v5180_v58 = vrot.slane %v6247_v8, 5  ;;  %v4492_v18 = vsel %vm7013_vm7, %v4487_v62, %v4491_v48  ;;  %v5183_v60 = vrot.slane %v6248_v4, 5  ;;  %v6249_v59 = vld [vmem:[%s6940_s22 + $0x90] sm:$0xe] }
 0x123   : > { %v4500_v22 = vor.u32 %v4499_v10, %v4496_v46  ;;  %v4518_v31 = vshrl.u32 %v6168_v23, 16  ;;  %v6195_v49 = vcombine.low %v4482_v25, %v4492_v18  ;;  %v8080_v39 = vadd.f32 %v6560_v7, %v1374_v5  ;;  %v6251_v10 = vld [vmem:[%s6940_s22 + $0x98] sm:$0x1]  ;;  %v6254_v50 = vld [vmem:[%s6940_s22 + $0xa4] sm:$0x1] }
 0x124   : > { %v4510_v17 = vor.u32 %v4509_v43, %v4505_v30  ;;  %v8084_v8 = vsel %vm6999_vm6, %v6276_v51, %v5180_v58  ;;  %v5182_v57 = vrot.slane %v5180_v58, 4  ;;  %v1372_v11 = vadd.f32 %v1293_v56, %v7587_v53 }
 0x125   : > { %6755 = vmatmul.mubr.msk.bf16.gmra.mxu0 %vm349_vm1, %v6289_v28  ;;  %v4501_v48 = vrot.slane %v4500_v22, 4  ;;  %v6561_v28 = vpop.f32.mrf.mxu0  ;;  %v4520_v25 = vrot.slane %v4518_v31, 4  ;;  %v1375_v37 = vadd.f32 %v6527_v27, %v7608_v6  ;;  %v4521_v54 = vshll.u32 %v6168_v23, 16  ;;  %v6250_v6 = vld [vmem:[%s6940_s22 + $0x94] sm:$0xf] }
 0x126   : > { %6758 = vmatprep.mubr.msk.bf16.mxu0 %vm349_vm1, %v6290_v12  ;;  %6725 = vmatmul.mubr.msk.bf16.gmra.mxu1 %vm349_vm1, %v6194_v52  ;;  %v4511_v32 = vrot.slane %v4510_v17, 4  ;;  %v4527_v2 = vshll.u32 %v6169_v3, 16  ;;  %v8099_v12 = vsel %vm6999_vm6, %v5182_v57, %v5183_v60  ;;  %v8101_v4 = vadd.f32 %v1862_v0, %v1372_v11  ;;  %v1296_v52 = vpop.f32.mrf.mxu1 }
 0x127   : > { %6728 = vmatprep.mubr.msk.bf16.mxu1 %vm349_vm1, %v6195_v49  ;;  %v4506_v53 = vsel %vm7013_vm7, %v4501_v48, %v4505_v30  ;;  %v4531_v46 = vshrl.u32 %v6169_v3, 16  ;;  %v6293_v23 = vcombine.low %v8084_v8, %v8099_v12  ;;  %v8109_v62 = vadd.f32 %v6561_v28, %v1375_v37  ;;  %v6171_v30 = vld [vmem:[%s6940_s22 + $0x9c] sm:$0xf]  ;;  %v1865_v43 = vpop.f32.mrf.mxu0  ;;  %v6172_v3 = vld [vmem:[%s6940_s22 + $0xa0] sm:$0xf] }
 0x128   : > { %v4516_v51 = vsel %vm7013_vm7, %v4511_v32, %v4515_v16  ;;  %v1373_v7 = vadd.f32 %v1296_v52, %v8627_v34  ;;  %v4523_v58 = vrot.slane %v4521_v54, 5  ;;  %v4529_v18 = vrot.slane %v4527_v2, 5  ;;  %v6173_v28 = vld [vmem:[%s6940_s22 + $0xa4] sm:$0x1]  ;;  %v6252_v54 = vld [vmem:[%s6940_s22 + $0x9c] sm:$0xe] }
 0x129   : > { %v6196_v5 = vcombine.low %v4506_v53, %v4516_v51  ;;  %v4533_v22 = vrot.slane %v4531_v46, 4  ;;  %v4537_v56 = vshll.u32 %v6170_v13, 16  ;;  %v6277_v0 = vrot.slane %v6249_v59, 9  ;;  %v6530_v13 = vpop.f32.mrf.mxu1  ;;  %v6564_v45 = vpop.f32.mrf.mxu0  ;;  %v8628_v53 = vld [vmem:[#allocation4_spill] sm:$0xff] }
 0x12a   : > { %v8114_v60 = vadd.f32 %v1865_v43, %v1373_v7  ;;  %v5187_v16 = vrot.slane %v6250_v6, 5  ;;  %v4524_v31 = vor.u32 %v4523_v58, %v4520_v25  ;;  %v5190_v17 = vrot.slane %v6251_v10, 5 }
 0x12b   : > { %v4534_v49 = vor.u32 %v4533_v22, %v4529_v18  ;;  %v4542_v48 = vshrl.u32 %v6171_v30, 16  ;;  %v4539_v57 = vrot.slane %v4537_v56, 5  ;;  %v4545_v32 = vshll.u32 %v6171_v30, 16  ;;  %v1309_v7 = vpop.f32.mrf.mxu1  ;;  %v1878_v10 = vpop.f32.mrf.mxu0  ;;  %v6174_v22 = vld [vmem:[%s6940_s22 + $0xa8] sm:$0xf] }
 0x12c   : > { %v5188_v11 = vsel %vm6999_vm6, %v6277_v0, %v5187_v16  ;;  %v5189_v27 = vrot.slane %v5187_v16, 4  ;;  %v4525_v25 = vrot.slane %v4524_v31, 4  ;;  %v1378_v52 = vadd.f32 %v6530_v13, %v8628_v53  ;;  %v6175_v13 = vld [vmem:[%s6940_s22 + $0xac] sm:$0xf]  ;;  %v6176_v53 = vld [vmem:[%s6940_s22 + $0xb0] sm:$0x1] }
 0x12d   : > { %6759 = vmatmul.mubr.msk.bf16.gmra.mxu0 %vm349_vm1, %v6291_v38  ;;  %v4535_v37 = vrot.slane %v4534_v49, 4  ;;  %v4544_v24 = vrot.slane %v4542_v48, 4  ;;  %v4551_v38 = vshll.u32 %v6172_v3, 16  ;;  %v4547_v46 = vrot.slane %v4545_v32, 5  ;;  %v6531_v31 = vpop.f32.mrf.mxu1  ;;  %v8629_v48 = vld [vmem:[#allocation5_spill] sm:$0xff] }
 0x12e   : > { %6762 = vmatprep.mubr.msk.bf16.mxu0 %vm349_vm1, %v6292_v35  ;;  %6729 = vmatmul.mubr.msk.bf16.gmra.mxu1 %vm349_vm1, %v6196_v5  ;;  %v5191_v2 = vsel %vm6999_vm6, %v5189_v27, %v5190_v17  ;;  %v4555_v59 = vshrl.u32 %v6172_v3, 16  ;;  %v4530_v35 = vsel %vm7013_vm7, %v4525_v25, %v4529_v18  ;;  %v8139_v5 = vadd.f32 %v6564_v45, %v1378_v52  ;;  %v6565_v18 = vpop.f32.mrf.mxu0 }
 0x12f   : > { %v4540_v6 = vsel %vm7013_vm7, %v4535_v37, %v4539_v57  ;;  %v6294_v51 = vcombine.low %v5188_v11, %v5191_v2  ;;  %v4553_v34 = vrot.slane %v4551_v38, 5  ;;  %v4548_v43 = vor.u32 %v4547_v46, %v4544_v24  ;;  %v8630_v11 = vld [vmem:[#allocation6_spill] sm:$0xff]  ;;  %v8631_v46 = vld [vmem:[#allocation7_spill] sm:$0xff] }
 0x130   : > { %v6197_v30 = vcombine.low %v4530_v35, %v4540_v6  ;;  %v4557_v58 = vrot.slane %v4555_v59, 4  ;;  %v4561_v56 = vshll.u32 %v6173_v28, 16  ;;  %v6278_v0 = vrot.slane %v6252_v54, 9  ;;  %v1312_v28 = vpop.f32.mrf.mxu1  ;;  %v1881_v12 = vpop.f32.mrf.mxu0 }
 0x131   : > { %v5194_v16 = vrot.slane %v6253_v21, 5  ;;  %v5197_v3 = vrot.slane %v6254_v50, 5  ;;  %v4549_v49 = vrot.slane %v4548_v43, 4  ;;  %v1376_v57 = vadd.f32 %v1309_v7, %v8629_v48  ;;  %v6255_v21 = vld [vmem:[%s6940_s22 + $0xa8] sm:$0xe] }
 0x132   : > { %6732 = vmatprep.mubr.msk.bf16.mxu1 %vm349_vm1, %v6197_v30  ;;  %v4558_v17 = vor.u32 %v4557_v58, %v4553_v34  ;;  %v1379_v27 = vadd.f32 %v6531_v31, %v8630_v11  ;;  %v4563_v32 = vrot.slane %v4561_v56, 5  ;;  %v4566_v45 = vshrl.u32 %v6174_v22, 16  ;;  %v6256_v50 = vld [vmem:[%s6940_s22 + $0xac] sm:$0xf]  ;;  %v6177_v30 = vld [vmem:[%s6940_s22 + $0xb4] sm:$0xf]  ;;  %v6534_v48 = vpop.f32.mrf.mxu1 }
 0x133   : > { %v5195_v25 = vsel %vm6999_vm6, %v6278_v0, %v5194_v16  ;;  %v5196_v37 = vrot.slane %v5194_v16, 4  ;;  %v4554_v24 = vsel %vm7013_vm7, %v4549_v49, %v4553_v34  ;;  %v8154_v54 = vadd.f32 %v1878_v10, %v1376_v57  ;;  %v6257_v10 = vld [vmem:[%s6940_s22 + $0xb0] sm:$0x1]  ;;  %v6178_v31 = vld [vmem:[%s6940_s22 + $0xb8] sm:$0xf]  ;;  %v6568_v57 = vpop.f32.mrf.mxu0 }
 0x134   : > { %v4559_v38 = vrot.slane %v4558_v17, 4  ;;  %v8156_v2 = vadd.f32 %v6565_v18, %v1379_v27  ;;  %v1377_v8 = vadd.f32 %v1312_v28, %v8631_v46  ;;  %v4569_v59 = vshll.u32 %v6174_v22, 16  ;;  %v1325_v46 = vpop.f32.mrf.mxu1 }
 0x135   : > { %6763 = vmatmul.mubr.msk.bf16.gmra.mxu0 %vm349_vm1, %v6293_v23  ;;  %v5198_v52 = vsel %vm6999_vm6, %v5196_v37, %v5197_v3  ;;  %v4568_v23 = vrot.slane %v4566_v45, 4  ;;  %v4575_v34 = vshll.u32 %v6175_v13, 16  ;;  %v4579_v7 = vshrl.u32 %v6175_v13, 16  ;;  %v8632_v37 = vld [vmem:[#allocation8_spill] sm:$0xff]  ;;  %v6179_v13 = vld [vmem:[%s6940_s22 + $0xbc] sm:$0x1] }
 0x136   : > { %6766 = vmatprep.mubr.msk.bf16.mxu0 %vm349_vm1, %v6294_v51  ;;  %v4564_v35 = vsel %vm7013_vm7, %v4559_v38, %v4563_v32  ;;  %v6295_v6 = vcombine.low %v5195_v25, %v5198_v52  ;;  %v8169_v43 = vadd.f32 %v1881_v12, %v1377_v8  ;;  %v4571_v58 = vrot.slane %v4569_v59, 5  ;;  %v6258_v52 = vld [vmem:[%s6940_s22 + $0xb4] sm:$0xe]  ;;  %v1894_v8 = vpop.f32.mrf.mxu0 }
 0x137   : > { %v6198_v51 = vcombine.low %v4554_v24, %v4564_v35  ;;  %v4585_v56 = vshll.u32 %v6176_v53, 16  ;;  %v4577_v0 = vrot.slane %v4575_v34, 5  ;;  %v4581_v16 = vrot.slane %v4579_v7, 4  ;;  %v6260_v35 = vld [vmem:[%s6940_s22 + $0xbc] sm:$0x1] }
 0x138   : > { %v6279_v22 = vrot.slane %v6255_v21, 9  ;;  %v5201_v3 = vrot.slane %v6256_v50, 5  ;;  %v4572_v18 = vor.u32 %v4571_v58, %v4568_v23  ;;  %v5204_v17 = vrot.slane %v6257_v10, 5  ;;  %v6259_v50 = vld [vmem:[%s6940_s22 + $0xb8] sm:$0xf]  ;;  %v6569_v58 = vpop.f32.mrf.mxu0 }
 0x139   : > { %6733 = vmatmul.mubr.msk.bf16.gmra.mxu1 %vm349_vm1, %v6198_v51  ;;  %v4587_v49 = vrot.slane %v4585_v56, 5  ;;  %v4590_v11 = vshrl.u32 %v6177_v30, 16  ;;  %v4582_v27 = vor.u32 %v4581_v16, %v4577_v0  ;;  %v1382_v28 = vadd.f32 %v6534_v48, %v8632_v37  ;;  %v6535_v51 = vpop.f32.mrf.mxu1  ;;  %v6180_v48 = vld [vmem:[%s6940_s22 + $0xc0] sm:$0xf] }
 0x13a   : > { %v5202_v32 = vsel %vm6999_vm6, %v6279_v22, %v5201_v3  ;;  %v5203_v25 = vrot.slane %v5201_v3, 4  ;;  %v4573_v45 = vrot.slane %v4572_v18, 4  ;;  %v4593_v38 = vshll.u32 %v6177_v30, 16 }
 0x13b   : > { %v4592_v24 = vrot.slane %v4590_v11, 4  ;;  %v4599_v53 = vshll.u32 %v6178_v31, 16  ;;  %v4583_v12 = vrot.slane %v4582_v27, 4  ;;  %v8181_v59 = vadd.f32 %v6568_v57, %v1382_v28  ;;  %v8633_v27 = vld [vmem:[#allocation9_spill] sm:$0xff] }
 0x13c   : > { %v5205_v23 = vsel %vm6999_vm6, %v5203_v25, %v5204_v17  ;;  %v4603_v21 = vshrl.u32 %v6178_v31, 16  ;;  %v4578_v34 = vsel %vm7013_vm7, %v4573_v45, %v4577_v0  ;;  %v4595_v10 = vrot.slane %v4593_v38, 5  ;;  %v1328_v0 = vpop.f32.mrf.mxu1  ;;  %v8634_v25 = vld [vmem:[#allocation10_spill] sm:$0xff]  ;;  %v8635_v45 = vld [vmem:[#allocation11_spill] sm:$0xff]  ;;  %v1897_v38 = vpop.f32.mrf.mxu0 }
 0x13d   : > { %6767 = vmatmul.mubr.msk.bf16.gmra.mxu0 %vm349_vm1, %v6295_v6  ;;  %v6296_v7 = vcombine.low %v5202_v32, %v5205_v23  ;;  %v4601_v30 = vrot.slane %v4599_v53, 5  ;;  %v4588_v6 = vsel %vm7013_vm7, %v4583_v12, %v4587_v49  ;;  %v4609_v16 = vshll.u32 %v6179_v13, 16  ;;  %v6181_v53 = vld [vmem:[%s6940_s22 + $0xc4] sm:$0xf] }
 0x13e   : > { %v4605_v56 = vrot.slane %v4603_v21, 4  ;;  %v6280_v22 = vrot.slane %v6258_v52, 9  ;;  %v6199_v3 = vcombine.low %v4578_v34, %v4588_v6  ;;  %v4596_v31 = vor.u32 %v4595_v10, %v4592_v24  ;;  %v6263_v6 = vld [vmem:[%s6940_s22 + $0xc8] sm:$0x1] }
 0x13f   : > { %6770 = vmatprep.mubr.msk.bf16.mxu0 %vm349_vm1, %v6296_v7  ;;  %v5208_v18 = vrot.slane %v6259_v50, 5  ;;  %v5211_v17 = vrot.slane %v6260_v35, 5  ;;  %v4611_v11 = vrot.slane %v4609_v16, 5  ;;  %v1380_v32 = vadd.f32 %v1325_v46, %v8633_v27  ;;  %v6182_v46 = vld [vmem:[%s6940_s22 + $0xc8] sm:$0x1] }
 0x140   : > { %v4606_v57 = vor.u32 %v4605_v56, %v4601_v30  ;;  %v1383_v49 = vadd.f32 %v6535_v51, %v8634_v25  ;;  %6736 = vmatprep.mubr.msk.bf16.mxu1 %vm349_vm1, %v6199_v3  ;;  %v4597_v37 = vrot.slane %v4596_v31, 4  ;;  %v1381_v24 = vadd.f32 %v1328_v0, %v8635_v45  ;;  %v6261_v50 = vld [vmem:[%s6940_s22 + $0xc0] sm:$0xe]  ;;  %v6262_v51 = vld [vmem:[%s6940_s22 + $0xc4] sm:$0xf]  ;;  %v6572_v0 = vpop.f32.mrf.mxu0 }
 0x141   : > { %v5209_v28 = vsel %vm6999_vm6, %v6280_v22, %v5208_v18  ;;  %v5210_v13 = vrot.slane %v5208_v18, 4  ;;  %v8198_v12 = vadd.f32 %v1894_v8, %v1380_v32  ;;  %v4614_v21 = vshrl.u32 %v6180_v48, 16  ;;  %v6538_v18 = vpop.f32.mrf.mxu1  ;;  %v6184_v25 = vld [vmem:[%s6940_s22 + $0xd0] sm:$0xf] }
 0x142   : > { %v4607_v52 = vrot.slane %v4606_v57, 4  ;;  %v8200_v23 = vadd.f32 %v6569_v58, %v1383_v49  ;;  %v4602_v35 = vsel %vm7013_vm7, %v4597_v37, %v4601_v30  ;;  %v8208_v7 = vadd.f32 %v1897_v38, %v1381_v24  ;;  %v6183_v57 = vld [vmem:[%s6940_s22 + $0xcc] sm:$0xf]  ;;  %v1910_v24 = vpop.f32.mrf.mxu0 }
 0x143   : > { %v5212_v34 = vsel %vm6999_vm6, %v5210_v13, %v5211_v17  ;;  %v4617_v10 = vshll.u32 %v6180_v48, 16  ;;  %v4616_v56 = vrot.slane %v4614_v21, 4  ;;  %v4623_v16 = vshll.u32 %v6181_v53, 16  ;;  %v1341_v45 = vpop.f32.mrf.mxu1 }
 0x144   : > { %v4612_v8 = vsel %vm7013_vm7, %v4607_v52, %v4611_v11  ;;  %v6297_v58 = vcombine.low %v5209_v28, %v5212_v34  ;;  %v4627_v31 = vshrl.u32 %v6181_v53, 16  ;;  %v4633_v30 = vshll.u32 %v6182_v46, 16  ;;  %v8636_v28 = vld [vmem:[#allocation12_spill] sm:$0xff]  ;;  %v6185_v52 = vld [vmem:[%s6940_s22 + $0xd4] sm:$0x1] }
 0x145   : > { %v6200_v22 = vcombine.low %v4602_v35, %v4612_v8  ;;  %v4619_v3 = vrot.slane %v4617_v10, 5  ;;  %v4625_v17 = vrot.slane %v4623_v16, 5  ;;  %v6281_v48 = vrot.slane %v6261_v50, 9  ;;  %v6539_v8 = vpop.f32.mrf.mxu1 }
 0x146   : > { %6771 = vmatmul.mubr.msk.bf16.gmra.mxu0 %vm349_vm1, %v6297_v58  ;;  %v5215_v27 = vrot.slane %v6262_v51, 5  ;;  %v5218_v32 = vrot.slane %v6263_v6, 5  ;;  %v4629_v49 = vrot.slane %v4627_v31, 4  ;;  %v4635_v37 = vrot.slane %v4633_v30, 5  ;;  %v6264_v51 = vld [vmem:[%s6940_s22 + $0xcc] sm:$0xe]  ;;  %v6573_v58 = vpop.f32.mrf.mxu0 }
 0x147   : > { %6737 = vmatmul.mubr.msk.bf16.gmra.mxu1 %vm349_vm1, %v6200_v22  ;;  %v4620_v11 = vor.u32 %v4619_v3, %v4616_v56  ;;  %v1386_v13 = vadd.f32 %v6538_v18, %v8636_v28  ;;  %v4638_v46 = vshrl.u32 %v6183_v57, 16  ;;  %v4641_v21 = vshll.u32 %v6183_v57, 16  ;;  %v6265_v6 = vld [vmem:[%s6940_s22 + $0xd0] sm:$0xf]  ;;  %v6266_v31 = vld [vmem:[%s6940_s22 + $0xd4] sm:$0x1] }
 0x148   : > { %v5216_v38 = vsel %vm6999_vm6, %v6281_v48, %v5215_v27  ;;  %v5217_v53 = vrot.slane %v5215_v27, 4  ;;  %v4630_v35 = vor.u32 %v4629_v49, %v4625_v17  ;;  %v4647_v10 = vshll.u32 %v6184_v25, 16 }
 0x149   : > { %v4621_v50 = vrot.slane %v4620_v11, 4  ;;  %v8222_v34 = vadd.f32 %v6572_v0, %v1386_v13  ;;  %v4640_v16 = vrot.slane %v4638_v46, 4  ;;  %v4643_v22 = vrot.slane %v4641_v21, 5  ;;  %v1344_v0 = vpop.f32.mrf.mxu1  ;;  %v1913_v13 = vpop.f32.mrf.mxu0 }
 0x14a   : > { %v5219_v56 = vsel %vm6999_vm6, %v5217_v53, %v5218_v32  ;;  %v4651_v3 = vshrl.u32 %v6184_v25, 16  ;;  %v4631_v18 = vrot.slane %v4630_v35, 4  ;;  %v4649_v48 = vrot.slane %v4647_v10, 5  ;;  %v8638_v53 = vld [vmem:[#allocation13_spill] sm:$0xff] }
 0x14b   : > { %8637 = vst [vmem:[#allocation3_spill] sm:$0xff] %v8222_v34  ;;  %v4626_v30 = vsel %vm7013_vm7, %v4621_v50, %v4625_v17  ;;  %v6298_v57 = vcombine.low %v5216_v38, %v5219_v56  ;;  %v4644_v27 = vor.u32 %v4643_v22, %v4640_v16  ;;  %v4657_v49 = vshll.u32 %v6185_v52, 16  ;;  %v6578_v21 = vpop.f32.mrf.mxu1  ;;  %v8639_v56 = vld [vmem:[#allocation14_spill] sm:$0xff]  ;;  %v8640_v22 = vld [vmem:[#allocation15_spill] sm:$0xff] }
 0x14c   : > { %v4653_v11 = vrot.slane %v4651_v3, 4  ;;  %v6282_v28 = vrot.slane %v6264_v51, 9  ;;  %v4636_v34 = vsel %vm7013_vm7, %v4631_v18, %v4635_v37  ;;  %v5222_v32 = vrot.slane %v6265_v6, 5 }
 0x14d   : > { %6774 = vmatprep.mubr.msk.bf16.mxu0 %vm349_vm1, %v6298_v57  ;;  %v5225_v25 = vrot.slane %v6266_v31, 5  ;;  %v1384_v46 = vadd.f32 %v1341_v45, %v8638_v53  ;;  %v6201_v17 = vcombine.low %v4626_v30, %v4636_v34  ;;  %v4645_v50 = vrot.slane %v4644_v27, 4  ;;  %v2224_v37 = vpop.f32.mrf.mxu1  ;;  %v6612_v31 = vpop.f32.mrf.mxu0 }
 0x14e   : > { %v4654_v38 = vor.u32 %v4653_v11, %v4649_v48  ;;  %v4659_v35 = vrot.slane %v4657_v49, 5  ;;  %v5223_v10 = vsel %vm6999_vm6, %v6282_v28, %v5222_v32  ;;  %v5224_v52 = vrot.slane %v5222_v32, 4 }
 0x14f   : > { %v8237_v51 = vadd.f32 %v1910_v24, %v1384_v46  ;;  %v1387_v16 = vadd.f32 %v6539_v8, %v8639_v56  ;;  %6740 = vmatprep.mubr.msk.bf16.mxu1 %vm349_vm1, %v6201_v17  ;;  %v4650_v6 = vsel %vm7013_vm7, %v4645_v50, %v4649_v48  ;;  %v1385_v34 = vadd.f32 %v1344_v0, %v8640_v22  ;;  %v6579_v8 = vpop.f32.mrf.mxu1  ;;  %v3014_v0 = vpop.f32.mrf.mxu0 }
 0x150   : > { %v4655_v45 = vrot.slane %v4654_v38, 4  ;;  %v2353_v3 = vadd.f32 %v6578_v21, %v7844_v36  ;;  %v5226_v30 = vsel %vm6999_vm6, %v5224_v52, %v5225_v25  ;;  %v2351_v24 = vadd.f32 %v2224_v37, %v7853_v41 }
 0x151   : > { %v8247_v18 = vadd.f32 %v6573_v58, %v1387_v16  ;;  %v6299_v27 = vcombine.low %v5223_v10, %v5226_v30  ;;  %v8252_v11 = vadd.f32 %v1913_v13, %v1385_v34  ;;  %v2354_v42 = vadd.f32 %v6579_v8, %v7865_v63  ;;  %v2227_v28 = vpop.f32.mrf.mxu1  ;;  %v6613_v58 = vpop.f32.mrf.mxu0 }
 0x152   : > { %v4660_v57 = vsel %vm7013_vm7, %v4655_v45, %v4659_v35  ;;  %v8254_v48 = vadd.f32 %v6612_v31, %v2353_v3  ;;  %v8256_v36 = vadd.f32 %v3014_v0, %v2351_v24  ;;  %v2352_v41 = vadd.f32 %v2227_v28, %v7882_v29 }
 0x153   : > { %v6202_v49 = vcombine.low %v4650_v6, %v4660_v57  ;;  %6775 = vmatmul.mubr.msk.bf16.gmra.mxu0 %vm349_vm1, %v6299_v27  ;;  %v8262_v55 = vadd.f32 %v6613_v58, %v2354_v42  ;;  %v6582_v13 = vpop.f32.mrf.mxu1  ;;  %v3017_v32 = vpop.f32.mrf.mxu0 }
 0x154   : > { %v2357_v25 = vadd.f32 %v6582_v13, %v7890_v47  ;;  %v8265_v53 = vadd.f32 %v3017_v32, %v2352_v41 }
 0x155   : > { %6741 = vmatmul.mubr.msk.bf16.gmra.mxu1 %vm349_vm1, %v6202_v49  ;;  %v2240_v46 = vpop.f32.mrf.mxu1  ;;  %v6616_v21 = vpop.f32.mrf.mxu0 }
 0x156   : > { %v2355_v63 = vadd.f32 %v2240_v46, %v7901_v40  ;;  %v8268_v17 = vadd.f32 %v6616_v21, %v2357_v25 }
 0x157   : > { %v6583_v50 = vpop.f32.mrf.mxu1  ;;  %v3030_v38 = vpop.f32.mrf.mxu0 }
 0x158   : > { %v2358_v29 = vadd.f32 %v6583_v50, %v7912_v44  ;;  %v8271_v35 = vadd.f32 %v3030_v38, %v2355_v63 }
 0x159   : > { %v2243_v10 = vpop.f32.mrf.mxu1  ;;  %v6617_v52 = vpop.f32.mrf.mxu0 }
 0x15a   : > { %v2356_v56 = vadd.f32 %v2243_v10, %v7927_v33  ;;  %v8274_v16 = vadd.f32 %v6617_v52, %v2358_v29 }
 0x15b   : > { %v6586_v47 = vpop.f32.mrf.mxu1  ;;  %v3033_v37 = vpop.f32.mrf.mxu0 }
 0x15c   : > { %v2361_v6 = vadd.f32 %v6586_v47, %v7952_v61  ;;  %v8277_v45 = vadd.f32 %v3033_v37, %v2356_v56 }
 0x15d   : > { %v2256_v40 = vpop.f32.mrf.mxu1  ;;  %v6620_v3 = vpop.f32.mrf.mxu0 }
 0x15e   : > { %v2359_v22 = vadd.f32 %v2256_v40, %v7966_v14  ;;  %v8281_v31 = vadd.f32 %v6620_v3, %v2361_v6 }
 0x15f   : > { %v6587_v34 = vpop.f32.mrf.mxu1  ;;  %v3046_v24 = vpop.f32.mrf.mxu0 }
 0x160   : > { %v2362_v44 = vadd.f32 %v6587_v34, %v7972_v20  ;;  %v8284_v8 = vadd.f32 %v3046_v24, %v2359_v22 }
 0x161   : > { %v2259_v30 = vpop.f32.mrf.mxu1  ;;  %v6621_v27 = vpop.f32.mrf.mxu0 }
 0x162   : > { %v2360_v33 = vadd.f32 %v2259_v30, %v7987_v1  ;;  %v8287_v0 = vadd.f32 %v6621_v27, %v2362_v44 }
 0x163   : > { %v6590_v57 = vpop.f32.mrf.mxu1  ;;  %v3049_v14 = vpop.f32.mrf.mxu0 }
 0x164   : > { %v2365_v61 = vadd.f32 %v6590_v57, %v8017_v15  ;;  %v8290_v28 = vadd.f32 %v3049_v14, %v2360_v33 }
 0x165   : > { %v2272_v49 = vpop.f32.mrf.mxu1  ;;  %v6624_v58 = vpop.f32.mrf.mxu0 }
 0x166   : > { %v2363_v42 = vadd.f32 %v2272_v49, %v8030_v19  ;;  %v8293_v13 = vadd.f32 %v6624_v58, %v2365_v61 }
 0x167   : > { %v6591_v20 = vpop.f32.mrf.mxu1  ;;  %v3062_v32 = vpop.f32.mrf.mxu0 }
 0x168   : > { %v2366_v41 = vadd.f32 %v6591_v20, %v8041_v26  ;;  %v8296_v46 = vadd.f32 %v3062_v32, %v2363_v42 }
 0x169   : > { %v2275_v1 = vpop.f32.mrf.mxu1  ;;  %v6625_v21 = vpop.f32.mrf.mxu0 }
 0x16a   : > { %v2364_v25 = vadd.f32 %v2275_v1, %v8057_v9  ;;  %v8299_v50 = vadd.f32 %v6625_v21, %v2366_v41 }
 0x16b   : > { %v6594_v15 = vpop.f32.mrf.mxu1  ;;  %v3065_v38 = vpop.f32.mrf.mxu0 }
 0x16c   : > { %v2369_v63 = vadd.f32 %v6594_v15, %v8080_v39  ;;  %8641 = vst [vmem:[#allocation4_spill] sm:$0xff] %v8299_v50  ;;  %v8302_v10 = vadd.f32 %v3065_v38, %v2364_v25 }
 0x16d   : > { %v2288_v19 = vpop.f32.mrf.mxu1  ;;  %v6628_v52 = vpop.f32.mrf.mxu0 }
 0x16e   : > { %v2367_v29 = vadd.f32 %v2288_v19, %v8101_v4  ;;  %8642 = vst [vmem:[#allocation5_spill] sm:$0xff] %v8302_v10  ;;  %v8305_v47 = vadd.f32 %v6628_v52, %v2369_v63 }
 0x16f   : > { %v6595_v26 = vpop.f32.mrf.mxu1  ;;  %v3078_v37 = vpop.f32.mrf.mxu0 }
 0x170   : > { %v2370_v56 = vadd.f32 %v6595_v26, %v8109_v62  ;;  %8643 = vst [vmem:[#allocation6_spill] sm:$0xff] %v8305_v47  ;;  %v8308_v40 = vadd.f32 %v3078_v37, %v2367_v29 }
 0x171   : > { %v2291_v9 = vpop.f32.mrf.mxu1  ;;  %v6629_v22 = vpop.f32.mrf.mxu0 }
 0x172   : > { %v2368_v6 = vadd.f32 %v2291_v9, %v8114_v60  ;;  %8644 = vst [vmem:[#allocation7_spill] sm:$0xff] %v8308_v40  ;;  %v8311_v3 = vadd.f32 %v6629_v22, %v2370_v56 }
 0x173   : > { %v6598_v39 = vpop.f32.mrf.mxu1  ;;  %v3081_v44 = vpop.f32.mrf.mxu0 }
 0x174   : > { %v2373_v34 = vadd.f32 %v6598_v39, %v8139_v5  ;;  %8645 = vst [vmem:[#allocation8_spill] sm:$0xff] %v8311_v3  ;;  %v8314_v24 = vadd.f32 %v3081_v44, %v2368_v6 }
 0x175   : > { %v2304_v4 = vpop.f32.mrf.mxu1  ;;  %v6632_v33 = vpop.f32.mrf.mxu0 }
 0x176   : > { %v2371_v30 = vadd.f32 %v2304_v4, %v8154_v54  ;;  %8646 = vst [vmem:[#allocation9_spill] sm:$0xff] %v8314_v24  ;;  %v8317_v27 = vadd.f32 %v6632_v33, %v2373_v34 }
 0x177   : > { %v6599_v62 = vpop.f32.mrf.mxu1  ;;  %v3094_v61 = vpop.f32.mrf.mxu0 }
 0x178   : > { %v2374_v57 = vadd.f32 %v6599_v62, %v8156_v2  ;;  %8647 = vst [vmem:[#allocation10_spill] sm:$0xff] %v8317_v27  ;;  %v8320_v14 = vadd.f32 %v3094_v61, %v2371_v30 }
 0x179   : > { %v2307_v60 = vpop.f32.mrf.mxu1  ;;  %v6633_v42 = vpop.f32.mrf.mxu0 }
 0x17a   : > { %v2372_v49 = vadd.f32 %v2307_v60, %v8169_v43  ;;  %8648 = vst [vmem:[#allocation11_spill] sm:$0xff] %v8320_v14  ;;  %v8323_v58 = vadd.f32 %v6633_v42, %v2374_v57 }
 0x17b   : > { %v6602_v5 = vpop.f32.mrf.mxu1  ;;  %v3097_v41 = vpop.f32.mrf.mxu0 }
 0x17c   : > { %v2377_v20 = vadd.f32 %v6602_v5, %v8181_v59  ;;  %8649 = vst [vmem:[#allocation12_spill] sm:$0xff] %v8323_v58  ;;  %v8326_v32 = vadd.f32 %v3097_v41, %v2372_v49  ;;  %v8651_v59 = vld [vmem:[#allocation3_spill] sm:$0xff] }
 0x17d   : > { %v2320_v54 = vpop.f32.mrf.mxu1  ;;  %v6636_v21 = vpop.f32.mrf.mxu0 }
 0x17e   : > { %v2375_v1 = vadd.f32 %v2320_v54, %v8198_v12  ;;  %8650 = vst [vmem:[#allocation13_spill] sm:$0xff] %v8326_v32  ;;  %v8330_v63 = vadd.f32 %v6636_v21, %v2377_v20 }
 0x17f   : > { %v6603_v2 = vpop.f32.mrf.mxu1  ;;  %v3110_v38 = vpop.f32.mrf.mxu0 }
 0x180   : > { %v2378_v25 = vadd.f32 %v6603_v2, %v8200_v23  ;;  %v8333_v26 = vadd.f32 %v3110_v38, %v2375_v1 }
 0x181   : > { %v2323_v15 = vpop.f32.mrf.mxu1  ;;  %v6637_v56 = vpop.f32.mrf.mxu0 }
 0x182   : > { %v2376_v43 = vadd.f32 %v2323_v15, %v8208_v7  ;;  %v8336_v9 = vadd.f32 %v6637_v56, %v2378_v25 }
 0x183   : > { %v6606_v19 = vpop.f32.mrf.mxu1  ;;  %v3113_v23 = vpop.f32.mrf.mxu0 }
 0x184   : > { %v2381_v29 = vadd.f32 %v6606_v19, %v8651_v59  ;;  %v8339_v39 = vadd.f32 %v3113_v23, %v2376_v43 }
 0x185   : > { %v2336_v52 = vpop.f32.mrf.mxu1  ;;  %v6640_v22 = vpop.f32.mrf.mxu0 }
 0x186   : > { %v2379_v12 = vadd.f32 %v2336_v52, %v8237_v51  ;;  %v8342_v4 = vadd.f32 %v6640_v22, %v2381_v29 }
 0x187   : > { %v6607_v37 = vpop.f32.mrf.mxu1  ;;  %v3126_v30 = vpop.f32.mrf.mxu0 }
 0x188   : > { %v2382_v6 = vadd.f32 %v6607_v37, %v8247_v18  ;;  %v8346_v62 = vadd.f32 %v3126_v30, %v2379_v12 }
 0x189   : > { %v2339_v7 = vpop.f32.mrf.mxu1  ;;  %v6641_v33 = vpop.f32.mrf.mxu0 }
 0x18a   : > { %v2380_v34 = vadd.f32 %v2339_v7, %v8252_v11  ;;  %v8350_v57 = vadd.f32 %v6641_v33, %v2382_v6 }
 0x18b   : > { %v8344_v44 = vpop.f32.mrf.mxu1  ;;  %v3129_v18 = vpop.f32.mrf.mxu0 }
 0x18c   : > { %v8354_v61 = vadd.f32 %v3129_v18, %v2380_v34 }
 0x18d   : > { %v8348_v51 = vpop.f32.mrf.mxu1  ;;  %v8358_v11 = vpop.f32.mrf.mxu0 }
 0x18f   : > { %v8352_v60 = vpop.f32.mrf.mxu1  ;;  %v8360_v5 = vpop.f32.mrf.mxu0 }
 0x191   : > { %v8356_v49 = vpop.f32.mrf.mxu1  ;;  %v8364_v20 = vpop.f32.mrf.mxu0 }
 0x193   : > { %v8362_v42 = vpop.f32.mrf.mxu1  ;;  %v8368_v41 = vpop.f32.mrf.mxu0 }
 0x195   : > { %v8366_v54 = vpop.f32.mrf.mxu1  ;;  %v8372_v2 = vpop.f32.mrf.mxu0 }
 0x197   : > { %v8370_v1 = vpop.f32.mrf.mxu1  ;;  %v8376_v15 = vpop.f32.mrf.mxu0 }
 0x199   : > { %v8374_v25 = vpop.f32.mrf.mxu1  ;;  %v8380_v43 = vpop.f32.mrf.mxu0 }
 0x19b   : > { %v8378_v21 = vpop.f32.mrf.mxu1  ;;  %v8384_v38 = vpop.f32.mrf.mxu0 }
 0x19d   : > { %v8382_v19 = vpop.f32.mrf.mxu1  ;;  %v8388_v29 = vpop.f32.mrf.mxu0 }
 0x19f   : > { %v8386_v59 = vpop.f32.mrf.mxu1  ;;  %v8392_v56 = vpop.f32.mrf.mxu0 }
 0x1a1   : > { %v8390_v52 = vpop.f32.mrf.mxu1  ;;  %v8396_v37 = vpop.f32.mrf.mxu0 }
 0x1a3   : > { %v8394_v12 = vpop.f32.mrf.mxu1  ;;  %v8400_v6 = vpop.f32.mrf.mxu0 }
 0x1a5   : > { %v8398_v23 = vpop.f32.mrf.mxu1  ;;  %v8404_v22 = vpop.f32.mrf.mxu0 }
 0x1a7   : > { %v8402_v7 = vpop.f32.mrf.mxu1  ;;  %v8408_v30 = vpop.f32.mrf.mxu0 }
 0x1a8   : > { %8652 = vst [vmem:[#allocation14_spill] sm:$0xff] %v8402_v7  ;;  %8654 = vst [vmem:[#allocation3_spill] sm:$0xff] %v8408_v30 }
 0x1a9   : > { %v8406_v34 = vpop.f32.mrf.mxu1  ;;  %v8412_v18 = vpop.f32.mrf.mxu0 }
 0x1aa   : > { %8653 = vst [vmem:[#allocation15_spill] sm:$0xff] %v8406_v34  ;;  %8656 = vst [vmem:[#allocation17_spill] sm:$0xff] %v8412_v18 }
 0x1ab   : > { %v8410_v33 = vpop.f32.mrf.mxu1  ;;  %v8416_v58 = vpop.f32.mrf.mxu0 }
 0x1ac   : > { %8655 = vst [vmem:[#allocation16_spill] sm:$0xff] %v8410_v33  ;;  %8658 = vst [vmem:[#allocation19_spill] sm:$0xff] %v8416_v58 }
 0x1ad   : > { %v8414_v32 = vpop.f32.mrf.mxu1  ;;  %v8420_v27 = vpop.f32.mrf.mxu0 }
 0x1ae   : > { %8657 = vst [vmem:[#allocation18_spill] sm:$0xff] %v8414_v32  ;;  %8660 = vst [vmem:[#allocation21_spill] sm:$0xff] %v8420_v27 }
 0x1af   : > { %v8418_v14 = vpop.f32.mrf.mxu1  ;;  %v8424_v3 = vpop.f32.mrf.mxu0 }
 0x1b0   : > { %8659 = vst [vmem:[#allocation20_spill] sm:$0xff] %v8418_v14  ;;  %8662 = vst [vmem:[#allocation23_spill] sm:$0xff] %v8424_v3 }
 0x1b1   : > { %v8422_v24 = vpop.f32.mrf.mxu1  ;;  %v8428_v47 = vpop.f32.mrf.mxu0 }
 0x1b2   : > { %8661 = vst [vmem:[#allocation22_spill] sm:$0xff] %v8422_v24  ;;  %8664 = vst [vmem:[#allocation25_spill] sm:$0xff] %v8428_v47 }
 0x1b3   : > { %v8426_v40 = vpop.f32.mrf.mxu1  ;;  %v8432_v33 = vpop.f32.mrf.mxu0 }
 0x1b4   : > { %8663 = vst [vmem:[#allocation24_spill] sm:$0xff] %v8426_v40  ;;  %8666 = vst [vmem:[#allocation27_spill] sm:$0xff] %v8432_v33 }
 0x1b5   : > { %v8430_v34 = vpop.f32.mrf.mxu1  ;;  %v8436_v32 = vpop.f32.mrf.mxu0 }
 0x1b6   : > { %8665 = vst [vmem:[#allocation26_spill] sm:$0xff] %v8430_v34  ;;  %8668 = vst [vmem:[#allocation29_spill] sm:$0xff] %v8436_v32 }
 0x1b7   : > { %v8434_v18 = vpop.f32.mrf.mxu1  ;;  %v8440_v14 = vpop.f32.mrf.mxu0 }
 0x1b8   : > { %8667 = vst [vmem:[#allocation28_spill] sm:$0xff] %v8434_v18  ;;  %8670 = vst [vmem:[#allocation31_spill] sm:$0xff] %v8440_v14 }
 0x1b9   : > { %v8438_v58 = vpop.f32.mrf.mxu1  ;;  %v8443_v3 = vpop.f32.mrf.mxu0 }
 0x1ba   : > { %8669 = vst [vmem:[#allocation30_spill] sm:$0xff] %v8438_v58  ;;  %8671 = vst [vmem:[#allocation32_spill] sm:$0xff] %v8443_v3 }
 0x1bb   : > { %v8446_v10 = vpop.f32.mrf.mxu0 }
 0x1bc   : > { %8672 = vst [vmem:[#allocation33_spill] sm:$0xff] %v8446_v10 }
 0x1bd   : > { %v6704_v18 = vpop.f32.mrf.mxu0 }
 0x1be   : > { %v6670_v27 = vpop.f32.mrf.mxu1 }
 0x1bf   : > { %v3733_v24 = vadd.f32 %v6670_v27, %v8330_v63  ;;  %v4102_v14 = vpop.f32.mrf.mxu0 }
 0x1c0   : > { %v3676_v40 = vpop.f32.mrf.mxu1 }
 0x1c1   : > { %v3731_v47 = vadd.f32 %v3676_v40, %v8333_v26  ;;  %v8449_v32 = vadd.f32 %v6704_v18, %v3733_v24  ;;  %v6705_v63 = vpop.f32.mrf.mxu0  ;;  %v3709_v24 = vadd.f32 %v8344_v44, %v8254_v48  ;;  %v3710_v48 = vadd.f32 %v8352_v60, %v8262_v55 }
 0x1c2   : > { %v6671_v34 = vpop.f32.mrf.mxu1  ;;  %v3713_v55 = vadd.f32 %v8362_v42, %v8268_v17 }
 0x1c3   : > { %v3734_v33 = vadd.f32 %v6671_v34, %v8336_v9  ;;  %v8452_v50 = vadd.f32 %v4102_v14, %v3731_v47  ;;  %v4105_v10 = vpop.f32.mrf.mxu0  ;;  %v3707_v14 = vadd.f32 %v8348_v51, %v8256_v36  ;;  %v3708_v36 = vadd.f32 %v8356_v49, %v8265_v53 }
 0x1c4   : > { %v3679_v30 = vpop.f32.mrf.mxu1 }
 0x1c5   : > { %v3732_v58 = vadd.f32 %v3679_v30, %v8339_v39  ;;  %v8455_v40 = vadd.f32 %v6705_v63, %v3734_v33  ;;  %v6708_v30 = vpop.f32.mrf.mxu0  ;;  %v4135_v33 = vadd.f32 %v8358_v11, %v3709_v24  ;;  %v4136_v11 = vadd.f32 %v8364_v20, %v3710_v48 }
 0x1c6   : > { %v6674_v7 = vpop.f32.mrf.mxu1  ;;  %v3711_v20 = vadd.f32 %v8366_v54, %v8271_v35  ;;  %v4139_v24 = vadd.f32 %v8372_v2, %v3713_v55  ;;  %v3712_v35 = vadd.f32 %v8374_v25, %v8277_v45  ;;  %v3715_v45 = vadd.f32 %v8382_v19, %v8284_v8 }
 0x1c7   : > { %v3737_v27 = vadd.f32 %v6674_v7, %v8342_v4  ;;  %v8460_v34 = vadd.f32 %v4105_v10, %v3732_v58  ;;  %v3716_v8 = vadd.f32 %v8390_v52, %v8290_v28  ;;  %v3719_v28 = vadd.f32 %v8398_v23, %v8296_v46  ;;  %v8677_v46 = vld [vmem:[#allocation15_spill] sm:$0xff] }
 0x1c8   : > { %v3692_v3 = vpop.f32.mrf.mxu1 }
 0x1c9   : > { %v3735_v26 = vadd.f32 %v3692_v3, %v8346_v62  ;;  %v8465_v4 = vadd.f32 %v6708_v30, %v3737_v27  ;;  %v4118_v3 = vpop.f32.mrf.mxu0 }
 0x1ca   : > { %v6675_v9 = vpop.f32.mrf.mxu1 }
 0x1cb   : > { %v3738_v39 = vadd.f32 %v6675_v9, %v8350_v57  ;;  %v8471_v10 = vadd.f32 %v4118_v3, %v3735_v26  ;;  %v6709_v58 = vpop.f32.mrf.mxu0  ;;  %v4133_v57 = vadd.f32 %v8360_v5, %v3707_v14  ;;  %v4134_v5 = vadd.f32 %v8368_v41, %v3708_v36 }
 0x1cc   : > { %v3695_v47 = vpop.f32.mrf.mxu1  ;;  %v4137_v41 = vadd.f32 %v8376_v15, %v3711_v20  ;;  %v4142_v20 = vadd.f32 %v8400_v6, %v3716_v8 }
 0x1cd   : > { %v3736_v7 = vadd.f32 %v3695_v47, %v8354_v61  ;;  %v8476_v51 = vadd.f32 %v6709_v58, %v3738_v39  ;;  %v4121_v61 = vpop.f32.mrf.mxu0  ;;  %v3714_v39 = vadd.f32 %v8370_v1, %v8274_v16  ;;  %v3717_v16 = vadd.f32 %v8378_v21, %v8281_v31 }
 0x1ce   : > { %v6714_v62 = vpop.f32.mrf.mxu1  ;;  %v3718_v31 = vadd.f32 %v8386_v59, %v8287_v0  ;;  %v3721_v0 = vadd.f32 %v8394_v12, %v8293_v13  ;;  %v8674_v13 = vld [vmem:[#allocation14_spill] sm:$0xff] }
 0x1cf   : > { %v4925_v18 = vadd.f32 %v6714_v62, %v4135_v33  ;;  %v8482_v60 = vadd.f32 %v4121_v61, %v3736_v7  ;;  %v4140_v33 = vadd.f32 %v8380_v43, %v3714_v39 }
 0x1d0   : > { %v4796_v44 = vpop.f32.mrf.mxu1 }
 0x1d1   : > { %v4923_v63 = vadd.f32 %v4796_v44, %v4133_v57  ;;  %v4138_v44 = vadd.f32 %v8384_v38, %v3712_v35 }
 0x1d2   : > { %v6715_v27 = vpop.f32.mrf.mxu1 }
 0x1d3   : > { %v4926_v9 = vadd.f32 %v6715_v27, %v4136_v11  ;;  %v4141_v11 = vadd.f32 %v8392_v56, %v3715_v45 }
 0x1d4   : > { %v4799_v49 = vpop.f32.mrf.mxu1 }
 0x1d5   : > { %v6748_v53 = vpop.f32.mrf.mxu0  ;;  %v4924_v47 = vadd.f32 %v4799_v49, %v4134_v5 }
 0x1d6   : > { %v5491_v26 = vadd.f32 %v6748_v53, %v4925_v18  ;;  %v6718_v42 = vpop.f32.mrf.mxu1  ;;  %v4143_v18 = vadd.f32 %v8388_v29, %v3717_v16  ;;  %v4144_v53 = vadd.f32 %v8396_v37, %v3718_v31 }
 0x1d7   : > { %v5362_v17 = vpop.f32.mrf.mxu0  ;;  %v4929_v3 = vadd.f32 %v6718_v42, %v4139_v24  ;;  %v8673_v42 = vld [vmem:[#allocation4_spill] sm:$0xff] }
 0x1d8   : > { %5587 = vst [vmem:[%s8487_s14 + $0x10] sm:$0xff] %v5491_v26  ;;  %v5489_v30 = vadd.f32 %v5362_v17, %v4923_v63  ;;  %v4812_v7 = vpop.f32.mrf.mxu1  ;;  %v4147_v17 = vadd.f32 %v8404_v22, %v3721_v0  ;;  %v3722_v12 = vadd.f32 %v8674_v13, %v8673_v42  ;;  %v8691_v42 = vld [vmem:[#allocation10_spill] sm:$0xff]  ;;  %v8692_v13 = vld [vmem:[#allocation24_spill] sm:$0xff] }
 0x1d9   : > { %v6749_v14 = vpop.f32.mrf.mxu0  ;;  %v4927_v48 = vadd.f32 %v4812_v7, %v4137_v41  ;;  %v8676_v7 = vld [vmem:[#allocation5_spill] sm:$0xff] }
 0x1da   : > { %5585 = vst [vmem:[%s8487_s14] sm:$0xff] %v5489_v30  ;;  %v5492_v54 = vadd.f32 %v6749_v14, %v4926_v9  ;;  %v6719_v2 = vpop.f32.mrf.mxu1  ;;  %v3720_v23 = vadd.f32 %v8677_v46, %v8676_v7  ;;  %v8694_v7 = vld [vmem:[#allocation11_spill] sm:$0xff]  ;;  %v8695_v46 = vld [vmem:[#allocation26_spill] sm:$0xff] }
 0x1db   : > { %v5365_v62 = vpop.f32.mrf.mxu0  ;;  %v4930_v57 = vadd.f32 %v6719_v2, %v4140_v33  ;;  %v8679_v2 = vld [vmem:[#allocation6_spill] sm:$0xff]  ;;  %v8680_v33 = vld [vmem:[#allocation16_spill] sm:$0xff] }
 0x1dc   : > { %5588 = vst [vmem:[%s8487_s14 + $0x18] sm:$0xff] %v5492_v54  ;;  %v5490_v1 = vadd.f32 %v5365_v62, %v4924_v47  ;;  %v4815_v15 = vpop.f32.mrf.mxu1  ;;  %v8675_v47 = vld [vmem:[#allocation3_spill] sm:$0xff]  ;;  %v3725_v16 = vadd.f32 %v8680_v33, %v8679_v2  ;;  %v8698_v2 = vld [vmem:[#allocation28_spill] sm:$0xff] }
 0x1dd   : > { %v6752_v58 = vpop.f32.mrf.mxu0  ;;  %v4928_v61 = vadd.f32 %v4815_v15, %v4138_v44  ;;  %v4145_v14 = vadd.f32 %v8675_v47, %v3719_v28  ;;  %v8681_v44 = vld [vmem:[#allocation19_spill] sm:$0xff] }
 0x1de   : > { %5586 = vst [vmem:[%s8487_s14 + $0x8] sm:$0xff] %v5490_v1  ;;  %v5495_v25 = vadd.f32 %v6752_v58, %v4929_v3  ;;  %v6722_v43 = vpop.f32.mrf.mxu1  ;;  %v8678_v3 = vld [vmem:[#allocation17_spill] sm:$0xff]  ;;  %v4146_v45 = vadd.f32 %v8681_v44, %v3720_v23  ;;  %v3727_v23 = vadd.f32 %v8695_v46, %v8694_v7 }
 0x1df   : > { %v5378_v36 = vpop.f32.mrf.mxu0  ;;  %v4933_v55 = vadd.f32 %v6722_v43, %v4143_v18  ;;  %v4148_v62 = vadd.f32 %v8678_v3, %v3722_v12  ;;  %v3729_v12 = vadd.f32 %v8692_v13, %v8691_v42  ;;  %v8700_v44 = vld [vmem:[#allocation13_spill] sm:$0xff] }
 0x1e0   : > { %5591 = vst [vmem:[%s8487_s14 + $0x30] sm:$0xff] %v5495_v25  ;;  %v5493_v21 = vadd.f32 %v5378_v36, %v4927_v48  ;;  %v4828_v38 = vpop.f32.mrf.mxu1  ;;  %v8682_v25 = vld [vmem:[#allocation7_spill] sm:$0xff] }
 0x1e1   : > { %v6753_v27 = vpop.f32.mrf.mxu0  ;;  %v4931_v49 = vadd.f32 %v4828_v38, %v4141_v11  ;;  %v8685_v38 = vld [vmem:[#allocation8_spill] sm:$0xff] }
 0x1e2   : > { %5589 = vst [vmem:[%s8487_s14 + $0x20] sm:$0xff] %v5493_v21  ;;  %v5496_v19 = vadd.f32 %v6753_v27, %v4930_v57  ;;  %v6723_v29 = vpop.f32.mrf.mxu1  ;;  %v8683_v57 = vld [vmem:[#allocation18_spill] sm:$0xff]  ;;  %v8686_v11 = vld [vmem:[#allocation20_spill] sm:$0xff] }
 0x1e3   : > { %v5381_v63 = vpop.f32.mrf.mxu0  ;;  %v4934_v26 = vadd.f32 %v6723_v29, %v4144_v53  ;;  %v3723_v36 = vadd.f32 %v8683_v57, %v8682_v25  ;;  %v3726_v8 = vadd.f32 %v8686_v11, %v8685_v38  ;;  %v8687_v53 = vld [vmem:[#allocation23_spill] sm:$0xff] }
 0x1e4   : > { %5592 = vst [vmem:[%s8487_s14 + $0x38] sm:$0xff] %v5496_v19  ;;  %v5494_v59 = vadd.f32 %v5381_v63, %v4928_v61  ;;  %v4831_v56 = vpop.f32.mrf.mxu1  ;;  %v8684_v61 = vld [vmem:[#allocation21_spill] sm:$0xff] }
 0x1e5   : > { %v6756_v5 = vpop.f32.mrf.mxu0  ;;  %v4932_v39 = vadd.f32 %v4831_v56, %v4142_v20  ;;  %v4151_v27 = vadd.f32 %v8684_v61, %v3725_v16  ;;  %v4149_v0 = vadd.f32 %v8687_v53, %v3723_v36 }
 0x1e6   : > { %5590 = vst [vmem:[%s8487_s14 + $0x28] sm:$0xff] %v5494_v59  ;;  %v5499_v52 = vadd.f32 %v6756_v5, %v4933_v55  ;;  %v6726_v37 = vpop.f32.mrf.mxu1  ;;  %v8688_v59 = vld [vmem:[#allocation9_spill] sm:$0xff] }
 0x1e7   : > { %v5394_v9 = vpop.f32.mrf.mxu0  ;;  %v4937_v35 = vadd.f32 %v6726_v37, %v4147_v17 }
 0x1e8   : > { %5595 = vst [vmem:[%s8487_s14 + $0x50] sm:$0xff] %v5499_v52  ;;  %v5497_v24 = vadd.f32 %v5394_v9, %v4931_v49  ;;  %v4844_v6 = vpop.f32.mrf.mxu1  ;;  %v8689_v49 = vld [vmem:[#allocation22_spill] sm:$0xff] }
 0x1e9   : > { %v6757_v30 = vpop.f32.mrf.mxu0  ;;  %v4935_v48 = vadd.f32 %v4844_v6, %v4145_v14  ;;  %v3724_v5 = vadd.f32 %v8689_v49, %v8688_v59 }
 0x1ea   : > { %5593 = vst [vmem:[%s8487_s14 + $0x40] sm:$0xff] %v5497_v24  ;;  %v5500_v41 = vadd.f32 %v6757_v30, %v4934_v26  ;;  %v6727_v22 = vpop.f32.mrf.mxu1  ;;  %v8690_v26 = vld [vmem:[#allocation25_spill] sm:$0xff]  ;;  %v8693_v30 = vld [vmem:[#allocation27_spill] sm:$0xff] }
 0x1eb   : > { %v5397_v54 = vpop.f32.mrf.mxu0  ;;  %v4938_v18 = vadd.f32 %v6727_v22, %v4148_v62  ;;  %v4152_v9 = vadd.f32 %v8690_v26, %v3726_v8  ;;  %v4150_v6 = vadd.f32 %v8693_v30, %v3724_v5  ;;  %v8696_v22 = vld [vmem:[#allocation29_spill] sm:$0xff]  ;;  %v8697_v62 = vld [vmem:[#allocation12_spill] sm:$0xff] }
 0x1ec   : > { %5596 = vst [vmem:[%s8487_s14 + $0x58] sm:$0xff] %v5500_v41  ;;  %v5498_v1 = vadd.f32 %v5397_v54, %v4932_v39  ;;  %v4847_v15 = vpop.f32.mrf.mxu1  ;;  %v4155_v3 = vadd.f32 %v8696_v22, %v3729_v12  ;;  %v3730_v33 = vadd.f32 %v8698_v2, %v8697_v62  ;;  %v8703_v8 = vld [vmem:[#allocation33_spill] sm:$0xff] }
 0x1ed   : > { %v6760_v58 = vpop.f32.mrf.mxu0  ;;  %v4936_v55 = vadd.f32 %v4847_v15, %v4146_v45  ;;  %v8701_v45 = vld [vmem:[#allocation30_spill] sm:$0xff] }
 0x1ee   : > { %5594 = vst [vmem:[%s8487_s14 + $0x48] sm:$0xff] %v5498_v1  ;;  %v5503_v43 = vadd.f32 %v6760_v58, %v4937_v35  ;;  %v6730_v21 = vpop.f32.mrf.mxu1  ;;  %v8699_v58 = vld [vmem:[#allocation31_spill] sm:$0xff]  ;;  %v3728_v25 = vadd.f32 %v8701_v45, %v8700_v44 }
 0x1ef   : > { %v5410_v31 = vpop.f32.mrf.mxu0  ;;  %v4941_v20 = vadd.f32 %v6730_v21, %v4151_v27  ;;  %v4153_v15 = vadd.f32 %v8699_v58, %v3727_v23 }
 0x1f0   : > { %5599 = vst [vmem:[%s8487_s14 + $0x70] sm:$0xff] %v5503_v43  ;;  %v5501_v19 = vadd.f32 %v5410_v31, %v4935_v48  ;;  %v4860_v29 = vpop.f32.mrf.mxu1  ;;  %v8702_v31 = vld [vmem:[#allocation32_spill] sm:$0xff] }
 0x1f1   : > { %v6761_v63 = vpop.f32.mrf.mxu0  ;;  %v4939_v17 = vadd.f32 %v4860_v29, %v4149_v0  ;;  %v4156_v21 = vadd.f32 %v8702_v31, %v3730_v33 }
 0x1f2   : > { %5597 = vst [vmem:[%s8487_s14 + $0x60] sm:$0xff] %v5501_v19  ;;  %v5504_v56 = vadd.f32 %v6761_v63, %v4938_v18  ;;  %v6731_v52 = vpop.f32.mrf.mxu1  ;;  %v4154_v19 = vadd.f32 %v8703_v8, %v3728_v25 }
 0x1f3   : > { %v5413_v28 = vpop.f32.mrf.mxu0  ;;  %v4942_v14 = vadd.f32 %v6731_v52, %v4152_v9 }
 0x1f4   : > { %5600 = vst [vmem:[%s8487_s14 + $0x78] sm:$0xff] %v5504_v56  ;;  %v5502_v37 = vadd.f32 %v5413_v28, %v4936_v55  ;;  %v4863_v39 = vpop.f32.mrf.mxu1 }
 0x1f5   : > { %v6764_v24 = vpop.f32.mrf.mxu0  ;;  %v4940_v54 = vadd.f32 %v4863_v39, %v4150_v6 }
 0x1f6   : > { %5598 = vst [vmem:[%s8487_s14 + $0x68] sm:$0xff] %v5502_v37  ;;  %v5507_v47 = vadd.f32 %v6764_v24, %v4941_v20 }
 0x1f7   : > { %v5426_v41 = vpop.f32.mrf.mxu0 }
 0x1f8   : > { %5603 = vst [vmem:[%s8487_s14 + $0x90] sm:$0xff] %v5507_v47  ;;  %v5505_v35 = vadd.f32 %v5426_v41, %v4939_v17 }
 0x1f9   : > { %v6765_v16 = vpop.f32.mrf.mxu0  ;;  %v6734_v48 = vpop.f32.mrf.mxu1 }
 0x1fa   : > { %5601 = vst [vmem:[%s8487_s14 + $0x80] sm:$0xff] %v5505_v35  ;;  %v5508_v1 = vadd.f32 %v6765_v16, %v4942_v14  ;;  %v4945_v36 = vadd.f32 %v6734_v48, %v4155_v3 }
 0x1fb   : > { %v5429_v57 = vpop.f32.mrf.mxu0  ;;  %v4876_v18 = vpop.f32.mrf.mxu1 }
 0x1fc   : > { %5604 = vst [vmem:[%s8487_s14 + $0x98] sm:$0xff] %v5508_v1  ;;  %v5506_v43 = vadd.f32 %v5429_v57, %v4940_v54  ;;  %v4943_v27 = vadd.f32 %v4876_v18, %v4153_v15 }
 0x1fd   : > { %v6768_v61 = vpop.f32.mrf.mxu0  ;;  %v6735_v11 = vpop.f32.mrf.mxu1 }
 0x1fe   : > { %5602 = vst [vmem:[%s8487_s14 + $0x88] sm:$0xff] %v5506_v43  ;;  %v5511_v38 = vadd.f32 %v6768_v61, %v4945_v36  ;;  %v4946_v63 = vadd.f32 %v6735_v11, %v4156_v21 }
 0x1ff   : > { %v5442_v55 = vpop.f32.mrf.mxu0  ;;  %v4879_v53 = vpop.f32.mrf.mxu1 }
 0x200   : > { %5607 = vst [vmem:[%s8487_s14 + $0xb0] sm:$0xff] %v5511_v38  ;;  %v5509_v29 = vadd.f32 %v5442_v55, %v4943_v27  ;;  %v4944_v59 = vadd.f32 %v4879_v53, %v4154_v19 }
 0x201   : > { %v6769_v0 = vpop.f32.mrf.mxu0 }
 0x202   : > { %5605 = vst [vmem:[%s8487_s14 + $0xa0] sm:$0xff] %v5509_v29  ;;  %v5512_v49 = vadd.f32 %v6769_v0, %v4946_v63 }
 0x203   : > { %v5445_v5 = vpop.f32.mrf.mxu0 }
 0x204   : > { %5608 = vst [vmem:[%s8487_s14 + $0xb8] sm:$0xff] %v5512_v49  ;;  %v5510_v56 = vadd.f32 %v5445_v5, %v4944_v59 }
 0x206   : > { %5606 = vst [vmem:[%s8487_s14 + $0xa8] sm:$0xff] %v5510_v56  ;;  %v6772_v20 = vpop.f32.mrf.mxu0 }
 0x207   : > { %v6738_v28 = vpop.f32.mrf.mxu1 }
 0x208   : > { %v4949_v52 = vadd.f32 %v6738_v28, %v8449_v32  ;;  %v5458_v26 = vpop.f32.mrf.mxu0 }
 0x209   : > { %v4892_v9 = vpop.f32.mrf.mxu1 }
 0x20a   : > { %v5515_v37 = vadd.f32 %v6772_v20, %v4949_v52  ;;  %v4947_v17 = vadd.f32 %v4892_v9, %v8452_v50  ;;  %v6773_v13 = vpop.f32.mrf.mxu0 }
 0x20b   : > { %v6739_v42 = vpop.f32.mrf.mxu1 }
 0x20c   : > { %5611 = vst [vmem:[%s8487_s14 + $0xd0] sm:$0xff] %v5515_v37  ;;  %v5513_v12 = vadd.f32 %v5458_v26, %v4947_v17  ;;  %v4950_v24 = vadd.f32 %v6739_v42, %v8455_v40  ;;  %v5461_v47 = vpop.f32.mrf.mxu0 }
 0x20d   : > { %v4895_v39 = vpop.f32.mrf.mxu1 }
 0x20e   : > { %5609 = vst [vmem:[%s8487_s14 + $0xc0] sm:$0xff] %v5513_v12  ;;  %v5516_v30 = vadd.f32 %v6773_v13, %v4950_v24  ;;  %v4948_v6 = vadd.f32 %v4895_v39, %v8460_v34 }
 0x210   : > { %5612 = vst [vmem:[%s8487_s14 + $0xd8] sm:$0xff] %v5516_v30  ;;  %v5514_v32 = vadd.f32 %v5461_v47, %v4948_v6 }
 0x212   : > { %5610 = vst [vmem:[%s8487_s14 + $0xc8] sm:$0xff] %v5514_v32 }
 0x213   : > { %v6776_v14 = vpop.f32.mrf.mxu0 }
 0x215   : > { %v6742_v7 = vpop.f32.mrf.mxu1  ;;  %v5474_v46 = vpop.f32.mrf.mxu0 }
 0x216   : > { %v4953_v50 = vadd.f32 %v6742_v7, %v8465_v4 }
 0x217   : > { %v4908_v23 = vpop.f32.mrf.mxu1  ;;  %v6777_v54 = vpop.f32.mrf.mxu0 }
 0x218   : > { %v5519_v40 = vadd.f32 %v6776_v14, %v4953_v50  ;;  %v4951_v41 = vadd.f32 %v4908_v23, %v8471_v10 }
 0x219   : > { %v6743_v35 = vpop.f32.mrf.mxu1  ;;  %v5477_v33 = vpop.f32.mrf.mxu0 }
 0x21a   : > { %5615 = vst [vmem:[%s8487_s14 + $0xf0] sm:$0xff] %v5519_v40  ;;  %v5517_v34 = vadd.f32 %v5474_v46, %v4951_v41  ;;  %v4954_v22 = vadd.f32 %v6743_v35, %v8476_v51 }
 0x21b   : > { %v4911_v3 = vpop.f32.mrf.mxu1 }
 0x21c   : > { %5613 = vst [vmem:[%s8487_s14 + $0xe0] sm:$0xff] %v5517_v34  ;;  %v5520_v62 = vadd.f32 %v6777_v54, %v4954_v22  ;;  %v4952_v2 = vadd.f32 %v4911_v3, %v8482_v60 }
 0x21e   : > { %5616 = vst [vmem:[%s8487_s14 + $0xf8] sm:$0xff] %v5520_v62  ;;  %v5518_v4 = vadd.f32 %v5477_v33, %v4952_v2 }
 0x220   : > { %5614 = vst [vmem:[%s8487_s14 + $0xe8] sm:$0xff] %v5518_v4 }
 0x221 PF: > { %s12_s11 = sadd.s32 1, %s6885_s11   ;;  %s8704_s9 = smov %s6881_s10 }
 0x222   : > { %p9_p5 = scmp.ge.s32.totalorder %s12_s11, 4   ;;  %s8705_s10 = smov %s8707_s12 }
 0x224   :  { %11 = sbr.rel (!%p9_p5) target bundleno = 2 (0x2), region = 69 }

</bundles_post_ra>
